<compile_context>
chip_gen: v5e
topology: v5e:2x2
jax: 0.10.0
libtpu: 0.0.40
codegen_flags: <defaults>
</compile_context>

<pallas_src>
import math

import jax
import jax.numpy as jnp
from jax import lax
from jax.experimental import pallas as pl
from jax.experimental.pallas import tpu as pltpu


def _make_kernel(num_heads: int, d_k: int, eps: float = 1e-6):
    """Builds the decoder-block kernel; one grid step = `bt` batch elements."""

    def kernel(x_ref, enc_ref,
               wqkv_s_ref, bqkv_s_ref, wo_s_ref, bo_s_ref,
               wqkv_c_ref, bqkv_c_ref, wo_c_ref, bo_c_ref,
               w1_ref, b1_ref, w2_ref, b2_ref,
               ln_ref, out_ref, attn_scratch):
        bt, s_t, d = x_ref.shape
        s_s = enc_ref.shape[1]

        # Flatten the folded batch into rows (pure major-axis collapse).
        x = x_ref[...].reshape(bt * s_t, d)                       # f32
        enc16 = enc_ref[...].reshape(bt * s_s, d).astype(jnp.bfloat16)

        def layer_norm(t, i):
            alpha = ln_ref[i, 0]                                  # scalars from SMEM
            beta = ln_ref[i, 1]
            n = t.shape[-1]
            mean = jnp.mean(t, axis=-1, keepdims=True)
            # torch.Tensor.std -> unbiased (N-1); eps added to std, not var.
            var = jnp.sum((t - mean) ** 2, axis=-1, keepdims=True) * (1.0 / (n - 1))
            inv = pl.reciprocal(jnp.sqrt(var) + eps, approx=False)   # exact in LN
            return alpha * (t - mean) * inv + beta

        def attention(q16, k16, v16, s_q, s_k, wo_ref, bo_ref):
            # q16: (bt*s_q, D) bf16 (1/sqrt(d_k) already folded into W_q);
            # k16/v16: (bt*s_k, D) bf16.  Attention itself is per batch element;
            # bt is small by construction so a static unroll is fine.
            for bi in range(bt):
                qb = q16[bi * s_q:(bi + 1) * s_q, :]
                kb = k16[bi * s_k:(bi + 1) * s_k, :]
                vb = v16[bi * s_k:(bi + 1) * s_k, :]
                # All heads' score blocks row-stacked -> one softmax pass.
                scores = []
                for hh in range(num_heads):
                    sl = slice(hh * d_k, (hh + 1) * d_k)
                    scores.append(lax.dot_general(
                        qb[:, sl], kb[:, sl],
                        dimension_numbers=(((1,), (1,)), ((), ())),  # q @ k.T, no XLU transpose
                        preferred_element_type=jnp.float32))
                s_all = scores[0] if num_heads == 1 else jnp.concatenate(scores, axis=0)
                # NOTE: masks intentionally NOT applied (reference's masked_fill
                # result is never assigned, so the masks are no-ops).
                s_all = s_all - jnp.max(s_all, axis=-1, keepdims=True)
                p_all = jnp.exp(s_all)
                p_all = p_all * pl.reciprocal(
                    jnp.sum(p_all, axis=-1, keepdims=True), approx=True)
                p_all = p_all.astype(jnp.bfloat16)
                heads = []
                for hh in range(num_heads):
                    sl = slice(hh * d_k, (hh + 1) * d_k)
                    heads.append(jnp.dot(p_all[hh * s_q:(hh + 1) * s_q, :], vb[:, sl],
                                         preferred_element_type=jnp.float32))
                head_cat = heads[0] if num_heads == 1 else jnp.concatenate(heads, axis=1)
                # sliced store into VMEM scratch (replaces the row concatenate)
                attn_scratch[bi * s_q:(bi + 1) * s_q, :] = head_cat.astype(jnp.bfloat16)
            # ONE full-depth (K = D) output projection over all bt*s_q rows.
            return jnp.dot(attn_scratch[...], wo_ref[...],
                           preferred_element_type=jnp.float32) + bo_ref[...]

        def mha_self(xn):
            fused = (jnp.dot(xn.astype(jnp.bfloat16), wqkv_s_ref[...],
                             preferred_element_type=jnp.float32)
                     + bqkv_s_ref[...]).astype(jnp.bfloat16)
            return attention(fused[:, 0:d], fused[:, d:2 * d], fused[:, 2 * d:3 * d],
                             s_t, s_t, wo_s_ref, bo_s_ref)

        def mha_cross(xn):
            q16 = (jnp.dot(xn.astype(jnp.bfloat16), wqkv_c_ref[:, 0:d],
                           preferred_element_type=jnp.float32)
                   + bqkv_c_ref[:, 0:d]).astype(jnp.bfloat16)
            kv16 = (jnp.dot(enc16, wqkv_c_ref[:, d:3 * d],
                            preferred_element_type=jnp.float32)
                    + bqkv_c_ref[:, d:3 * d]).astype(jnp.bfloat16)
            return attention(q16, kv16[:, 0:d], kv16[:, d:2 * d],
                             s_t, s_s, wo_c_ref, bo_c_ref)

        def feed_forward(t):
            tb = t.astype(jnp.bfloat16)
            rows = t.shape[0]
            n_chunks = w1_ref.shape[0]          # d_ff pre-chunked in the wrapper

            def chunk(ci, acc):
                h1 = jnp.dot(tb, w1_ref[ci],
                             preferred_element_type=jnp.float32) + b1_ref[ci]
                h1 = jnp.maximum(h1, 0.0).astype(jnp.bfloat16)      # ReLU
                return acc + jnp.dot(h1, w2_ref[ci],
                                     preferred_element_type=jnp.float32)

            acc = jnp.zeros((rows, d), jnp.float32)
            if n_chunks <= 2:                   # short known trip count -> unroll
                for ci in range(n_chunks):
                    acc = chunk(ci, acc)
            else:                               # bound live ranges for large d_ff
                acc = lax.fori_loop(0, n_chunks, chunk, acc)
            return acc + b2_ref[...]

        # residual 0: self-attention on layer-normed x
        x = x + mha_self(layer_norm(x, 0))
        # residual 1: cross-attention; k/v use the RAW encoder output (per reference)
        x = x + mha_cross(layer_norm(x, 1))
        # residual 2: feed-forward
        x = x + feed_forward(layer_norm(x, 2))

        out_ref[...] = x.reshape(bt, s_t, d).astype(out_ref.dtype)

    return kernel


def _vmem_limit_bytes():
    """Per-generation VMEM request: ~70% of physical VMEM, capped at 100 MiB
    (v7x: ~45 MiB of 64 MiB; v5e/v6e: ~90 MiB of 128 MiB)."""
    try:
        cap = pltpu.get_tpu_info().vmem_capacity_bytes
        return int(min(cap * 0.7, 100 * 1024 * 1024))
    except Exception:
        return 48 * 1024 * 1024      # safe default on every generation


def _pick_batch_block(batch):
    """Largest divisor of `batch` giving >= 2 grid steps (pipelining + megacore
    sharding), capped at 8 batch elements per step."""
    if batch <= 1:
        return 1
    for cand in range(min(batch // 2, 8), 0, -1):
        if batch % cand == 0:
            return cand
    return 1


def decoder_block(x, encoder_output, kp, *, h, src_mask=None, target_mask=None,
                  batch_block=None):
    """Pallas decoder block.  `kp` = prepare_kernel_params(...) output."""
    del src_mask, target_mask  # no-ops in the reference implementation
    B, S_t, D = x.shape
    _, S_s, _ = encoder_output.shape
    assert D % h == 0, "d_model must be divisible by h"
    d_k = D // h
    n_ff, _, ff_chunk = kp["w1"].shape
    d_ff = n_ff * ff_chunk

    bt = _pick_batch_block(B) if batch_block is None else batch_block
    assert B % bt == 0, "batch must be divisible by batch_block"

    kernel = _make_kernel(h, d_k)

    # Rough MAC/byte counts so XLA can schedule surrounding ops around the call.
    macs = B * (4 * S_t * D * D                      # self-attn q,k,v,o projections
                + 2 * S_t * D * D + 2 * S_s * D * D  # cross-attn q,o + k,v projections
                + 2 * S_t * S_t * D                  # self-attn scores + p@v
                + 2 * S_t * S_s * D                  # cross-attn scores + p@v
                + 2 * S_t * D * d_ff)                # FFN
    transcendentals = B * h * S_t * (S_t + S_s)      # softmax exps

    args = (x, encoder_output,
            kp["wqkv_self"], kp["bqkv_self"], kp["wo_self"], kp["bo_self"],
            kp["wqkv_cross"], kp["bqkv_cross"], kp["wo_cross"], kp["bo_cross"],
            kp["w1"], kp["b1"], kp["w2"], kp["b2"], kp["ln"])
    bytes_accessed = (sum(int(a.size) * a.dtype.itemsize for a in args)
                      + int(x.size) * x.dtype.itemsize)
    cost = pl.CostEstimate(flops=int(2 * macs),
                           transcendentals=int(transcendentals),
                           bytes_accessed=int(bytes_accessed))

    def run(single_buffer_weights):
        def const_spec(shape):
            idx = lambda *_: (0,) * len(shape)
            if single_buffer_weights:
                # Grid-invariant block: single-buffer it (halves weight VMEM).
                return pl.BlockSpec(shape, idx, pipeline_mode=pl.Buffered(1))
            return pl.BlockSpec(shape, idx)

        in_specs = [
            pl.BlockSpec((bt, S_t, D), lambda g: (g, 0, 0)),       # x
            pl.BlockSpec((bt, S_s, D), lambda g: (g, 0, 0)),       # encoder output
            const_spec(kp["wqkv_self"].shape),                     # (D, 3D) bf16
            const_spec(kp["bqkv_self"].shape),                     # (1, 3D)
            const_spec(kp["wo_self"].shape),                       # (D, D) bf16
            const_spec(kp["bo_self"].shape),                       # (1, D)
            const_spec(kp["wqkv_cross"].shape),
            const_spec(kp["bqkv_cross"].shape),
            const_spec(kp["wo_cross"].shape),
            const_spec(kp["bo_cross"].shape),
            const_spec(kp["w1"].shape),                            # (n_ff, D, c) bf16
            const_spec(kp["b1"].shape),                            # (n_ff, 1, c)
            const_spec(kp["w2"].shape),                            # (n_ff, c, D) bf16
            const_spec(kp["b2"].shape),                            # (1, D)
            pl.BlockSpec(memory_space=pltpu.MemorySpace.SMEM),     # LN alpha/beta (3,2)
        ]
        out_spec = pl.BlockSpec((bt, S_t, D), lambda g: (g, 0, 0))

        return pl.pallas_call(
            kernel,
            out_shape=jax.ShapeDtypeStruct((B, S_t, D), x.dtype),
            grid_spec=pltpu.PrefetchScalarGridSpec(
                num_scalar_prefetch=0,
                grid=(B // bt,),
                in_specs=in_specs,
                out_specs=out_spec,
                scratch_shapes=[pltpu.VMEM((bt * S_t, D), jnp.bfloat16)],
            ),
            compiler_params=pltpu.CompilerParams(
                dimension_semantics=("parallel",),
                vmem_limit_bytes=_vmem_limit_bytes(),
            ),
            cost_estimate=cost,
        )(*args)

    try:
        return run(True)
    except Exception:
        # pl.Buffered(1) on grid-invariant inputs not supported by this jax
        # version -> fall back to default (double-buffered) weight blocks.
        return run(False)


def init_params(key, d_model, h, d_ff):
    """torch-Linear-style init; weights pre-transposed to (in, out), f32."""
    keys = jax.random.split(key, 10)

    def linear(k, fan_in, fan_out):
        bound = 1.0 / math.sqrt(fan_in)
        kw, kb = jax.random.split(k)
        w = jax.random.uniform(kw, (fan_out, fan_in), jnp.float32, -bound, bound)
        b = jax.random.uniform(kb, (fan_out,), jnp.float32, -bound, bound)
        return w.T, b                                   # (in, out), (out,)

    sa = [linear(keys[i], d_model, d_model) for i in range(4)]       # q,k,v,o
    ca = [linear(keys[4 + i], d_model, d_model) for i in range(4)]   # q,k,v,o
    w1, b1 = linear(keys[8], d_model, d_ff)
    w2, b2 = linear(keys[9], d_ff, d_model)

    return {
        "w_self": jnp.stack([w for (w, _) in sa]),      # (4, D, D) in->out
        "b_self": jnp.stack([b for (_, b) in sa]),      # (4, D)
        "w_cross": jnp.stack([w for (w, _) in ca]),
        "b_cross": jnp.stack([b for (_, b) in ca]),
        "w1": w1, "b1": b1,                             # (D, d_ff), (d_ff,)
        "w2": w2, "b2": b2,                             # (d_ff, D), (D,)
        # LayerNormalization params: alpha=1, beta=0, one pair per residual
        "ln": jnp.array([[1.0, 0.0], [1.0, 0.0], [1.0, 0.0]], jnp.float32),
    }


def prepare_kernel_params(params, h, *, ff_chunk=512):
    """One-time packing for the kernel: bf16 weights at rest, fused q/k/v,
    1/sqrt(d_k) folded into W_q/b_q, FFN weights pre-chunked over d_ff."""
    D = params["w_self"].shape[-1]
    d_k = D // h
    scale = 1.0 / math.sqrt(d_k)
    d_ff = params["w1"].shape[1]

    def pack_attn(W, B):
        w_qkv = jnp.concatenate([W[0] * scale, W[1], W[2]], axis=1)    # (D, 3D)
        b_qkv = jnp.concatenate([B[0] * scale, B[1], B[2]])[None, :]   # (1, 3D)
        return (w_qkv.astype(jnp.bfloat16), b_qkv.astype(jnp.float32),
                W[3].astype(jnp.bfloat16), B[3][None, :].astype(jnp.float32))

    wqkv_s, bqkv_s, wo_s, bo_s = pack_attn(params["w_self"], params["b_self"])
    wqkv_c, bqkv_c, wo_c, bo_c = pack_attn(params["w_cross"], params["b_cross"])

    if d_ff > ff_chunk and d_ff % ff_chunk == 0:
        n_ff = d_ff // ff_chunk
    else:
        n_ff, ff_chunk = 1, d_ff
    w1 = params["w1"].reshape(D, n_ff, ff_chunk).transpose(1, 0, 2)    # (n_ff, D, c)
    b1 = params["b1"].reshape(n_ff, 1, ff_chunk)
    w2 = params["w2"].reshape(n_ff, ff_chunk, D)                       # (n_ff, c, D)

    return {
        "wqkv_self": wqkv_s, "bqkv_self": bqkv_s, "wo_self": wo_s, "bo_self": bo_s,
        "wqkv_cross": wqkv_c, "bqkv_cross": bqkv_c, "wo_cross": wo_c, "bo_cross": bo_c,
        "w1": w1.astype(jnp.bfloat16), "b1": b1.astype(jnp.float32),
        "w2": w2.astype(jnp.bfloat16), "b2": params["b2"][None, :].astype(jnp.float32),
        "ln": params["ln"].astype(jnp.float32),
    }


def reference(x, enc, params, h):
    """Pure-JAX f32 reference mirroring the PyTorch forward (eval mode)."""
    D = x.shape[-1]
    d_k = D // h
    eps = 1e-6

    def ln(t, ab):
        a, b = ab[0], ab[1]
        mean = t.mean(-1, keepdims=True)
        std = jnp.sqrt(((t - mean) ** 2).sum(-1, keepdims=True) / (t.shape[-1] - 1))
        return a * (t - mean) / (std + eps) + b

    def mha(qi, kvi, W, B):
        q = qi @ W[0] + B[0]
        k = kvi @ W[1] + B[1]
        v = kvi @ W[2] + B[2]
        Bq, Sq, _ = q.shape
        Sk = k.shape[1]
        qh = q.reshape(Bq, Sq, h, d_k).transpose(0, 2, 1, 3)
        kh = k.reshape(Bq, Sk, h, d_k).transpose(0, 2, 1, 3)
        vh = v.reshape(Bq, Sk, h, d_k).transpose(0, 2, 1, 3)
        s = (qh @ kh.transpose(0, 1, 3, 2)) / math.sqrt(d_k)
        p = jax.nn.softmax(s, axis=-1)
        o = (p @ vh).transpose(0, 2, 1, 3).reshape(Bq, Sq, D)
        return o @ W[3] + B[3]

    xn = ln(x, params["ln"][0])
    x = x + mha(xn, xn, params["w_self"], params["b_self"])
    xn = ln(x, params["ln"][1])
    x = x + mha(xn, enc, params["w_cross"], params["b_cross"])
    xn = ln(x, params["ln"][2])
    x = x + (jnp.maximum(xn @ params["w1"] + params["b1"], 0.0) @ params["w2"]
             + params["b2"])
    return x


if __name__ == "__main__":
    # D=128 keeps the output store lane-dense; d_k=32 gives the MXU real tiles.
    B, S_TGT, S_SRC, D_MODEL, H, D_FF = 2, 8, 16, 128, 4, 256

    key = jax.random.PRNGKey(0)
    kx, ke, kparams_key = jax.random.split(key, 3)
    x = jax.random.normal(kx, (B, S_TGT, D_MODEL), jnp.float32)
    encoder_output = jax.random.normal(ke, (B, S_SRC, D_MODEL), jnp.float32)
    params = init_params(kparams_key, D_MODEL, H, D_FF)
    kparams = prepare_kernel_params(params, H)     # one-time bf16 packing / folding

    out = decoder_block(x, encoder_output, kparams, h=H,
                        src_mask=None, target_mask=None)
    out = jax.block_until_ready(out)

    ref = reference(x, encoder_output, params, H)
    assert out.shape == (B, S_TGT, D_MODEL)
    assert bool(jnp.all(jnp.isfinite(out)))
    # bf16 matmul operands + approx softmax reciprocal vs. f32 reference.
    max_err = float(jnp.max(jnp.abs(out - ref)))
    assert jnp.allclose(out, ref, atol=5e-2, rtol=5e-2), max_err
    print("KERNEL_OK")
</pallas_src>

<mosaic_0001>
module attributes {stable_mosaic.version = 11 : i64} {
  func.func @kernel(%arg0: i32, %arg1: memref<1x8x128xf32, #tpu.memory_space<vmem>>, %arg2: memref<1x16x128xf32, #tpu.memory_space<vmem>>, %arg3: memref<128x384xbf16, #tpu.memory_space<vmem>>, %arg4: memref<1x384xf32, #tpu.memory_space<vmem>>, %arg5: memref<128x128xbf16, #tpu.memory_space<vmem>>, %arg6: memref<1x128xf32, #tpu.memory_space<vmem>>, %arg7: memref<128x384xbf16, #tpu.memory_space<vmem>>, %arg8: memref<1x384xf32, #tpu.memory_space<vmem>>, %arg9: memref<128x128xbf16, #tpu.memory_space<vmem>>, %arg10: memref<1x128xf32, #tpu.memory_space<vmem>>, %arg11: memref<1x128x256xbf16, #tpu.memory_space<vmem>>, %arg12: memref<1x1x256xf32, #tpu.memory_space<vmem>>, %arg13: memref<1x256x128xbf16, #tpu.memory_space<vmem>>, %arg14: memref<1x128xf32, #tpu.memory_space<vmem>>, %arg15: memref<3x2xf32, #tpu.memory_space<smem>>, %arg16: memref<1x8x128xf32, #tpu.memory_space<vmem>>, %arg17: memref<8x128xbf16, #tpu.memory_space<vmem>>) attributes {dimension_semantics = [#tpu.dimension_semantics<parallel>], iteration_bounds = array<i64: 2>, scalar_prefetch = 0 : i64, scratch_operands = 1 : i64, tpu.core_type = #tpu.core_type<tc>, window_params = [{transform_indices = @transform_0, window_bounds = array<i64: 1, 8, 128>}, {transform_indices = @transform_1, window_bounds = array<i64: 1, 16, 128>}, {pipeline_mode = #tpu.pipeline_mode<synchronous>, transform_indices = @transform_2, window_bounds = array<i64: 128, 384>}, {pipeline_mode = #tpu.pipeline_mode<synchronous>, transform_indices = @transform_3, window_bounds = array<i64: 1, 384>}, {pipeline_mode = #tpu.pipeline_mode<synchronous>, transform_indices = @transform_4, window_bounds = array<i64: 128, 128>}, {pipeline_mode = #tpu.pipeline_mode<synchronous>, transform_indices = @transform_5, window_bounds = array<i64: 1, 128>}, {pipeline_mode = #tpu.pipeline_mode<synchronous>, transform_indices = @transform_6, window_bounds = array<i64: 128, 384>}, {pipeline_mode = #tpu.pipeline_mode<synchronous>, transform_indices = @transform_7, window_bounds = array<i64: 1, 384>}, {pipeline_mode = #tpu.pipeline_mode<synchronous>, transform_indices = @transform_8, window_bounds = array<i64: 128, 128>}, {pipeline_mode = #tpu.pipeline_mode<synchronous>, transform_indices = @transform_9, window_bounds = array<i64: 1, 128>}, {pipeline_mode = #tpu.pipeline_mode<synchronous>, transform_indices = @transform_10, window_bounds = array<i64: 1, 128, 256>}, {pipeline_mode = #tpu.pipeline_mode<synchronous>, transform_indices = @transform_11, window_bounds = array<i64: 1, 1, 256>}, {pipeline_mode = #tpu.pipeline_mode<synchronous>, transform_indices = @transform_12, window_bounds = array<i64: 1, 256, 128>}, {pipeline_mode = #tpu.pipeline_mode<synchronous>, transform_indices = @transform_13, window_bounds = array<i64: 1, 128>}, {transform_indices = @transform_14, window_bounds = array<i64: 3, 2>}, {transform_indices = @transform_15, window_bounds = array<i64: 1, 8, 128>}]} {
    %c0 = arith.constant 0 : index
    %c0_0 = arith.constant 0 : index
    %c0_1 = arith.constant 0 : index
    %0 = vector.load %arg1[%c0, %c0_0, %c0_1] : memref<1x8x128xf32, #tpu.memory_space<vmem>>, vector<1x8x128xf32>
    %1 = vector.shape_cast %0 : vector<1x8x128xf32> to vector<8x128xf32>
    %c0_2 = arith.constant 0 : index
    %c0_3 = arith.constant 0 : index
    %c0_4 = arith.constant 0 : index
    %2 = vector.load %arg2[%c0_2, %c0_3, %c0_4] : memref<1x16x128xf32, #tpu.memory_space<vmem>>, vector<1x16x128xf32>
    %3 = vector.shape_cast %2 : vector<1x16x128xf32> to vector<16x128xf32>
    %4 = arith.truncf %3 : vector<16x128xf32> to vector<16x128xbf16>
    %c0_5 = arith.constant 0 : index
    %c0_6 = arith.constant 0 : index
    %5 = memref.load %arg15[%c0_5, %c0_6] : memref<3x2xf32, #tpu.memory_space<smem>>
    %c0_7 = arith.constant 0 : index
    %c1 = arith.constant 1 : index
    %6 = memref.load %arg15[%c0_7, %c1] : memref<3x2xf32, #tpu.memory_space<smem>>
    %cst = arith.constant dense<0.000000e+00> : vector<8xf32>
    %7 = vector.multi_reduction <add>, %1, %cst [1] : vector<8x128xf32> to vector<8xf32>
    %8 = vector.shape_cast %7 : vector<8xf32> to vector<8x1xf32>
    %cst_8 = arith.constant 1.280000e+02 : f32
    %9 = vector.broadcast %cst_8 : f32 to vector<8x1xf32>
    %10 = arith.divf %8, %9 : vector<8x1xf32>
    %11 = vector.broadcast %10 : vector<8x1xf32> to vector<8x128xf32>
    %12 = arith.subf %1, %11 : vector<8x128xf32>
    %13 = arith.mulf %12, %12 : vector<8x128xf32>
    %cst_9 = arith.constant dense<0.000000e+00> : vector<8xf32>
    %14 = vector.multi_reduction <add>, %13, %cst_9 [1] : vector<8x128xf32> to vector<8xf32>
    %15 = vector.shape_cast %14 : vector<8xf32> to vector<8x1xf32>
    %cst_10 = arith.constant 0.00787401571 : f32
    %16 = vector.broadcast %cst_10 : f32 to vector<8x1xf32>
    %17 = arith.mulf %15, %16 : vector<8x1xf32>
    %18 = math.sqrt %17 : vector<8x1xf32>
    %cst_11 = arith.constant 9.99999997E-7 : f32
    %19 = vector.broadcast %cst_11 : f32 to vector<8x1xf32>
    %20 = arith.addf %18, %19 : vector<8x1xf32>
    %21 = tpu.reciprocal %20 : vector<8x1xf32> -> vector<8x1xf32>
    %22 = vector.broadcast %10 : vector<8x1xf32> to vector<8x128xf32>
    %23 = arith.subf %1, %22 : vector<8x128xf32>
    %24 = vector.broadcast %5 : f32 to vector<8x128xf32>
    %25 = arith.mulf %24, %23 : vector<8x128xf32>
    %26 = vector.broadcast %21 : vector<8x1xf32> to vector<8x128xf32>
    %27 = arith.mulf %25, %26 : vector<8x128xf32>
    %28 = vector.broadcast %6 : f32 to vector<8x128xf32>
    %29 = arith.addf %27, %28 : vector<8x128xf32>
    %30 = arith.truncf %29 : vector<8x128xf32> to vector<8x128xbf16>
    %c0_12 = arith.constant 0 : index
    %c0_13 = arith.constant 0 : index
    %31 = vector.load %arg3[%c0_12, %c0_13] : memref<128x384xbf16, #tpu.memory_space<vmem>>, vector<128x384xbf16>
    %cst_14 = arith.constant dense<0.000000e+00> : vector<8x384xf32>
    %32 = tpu.matmul %30, %31, %cst_14 {dimension_numbers = #tpu.dot_dimension_numbers<[1], [0], [0], [1], [0, 0, 1, 1], [], []>} : vector<8x128xbf16>, vector<128x384xbf16>, vector<8x384xf32> -> vector<8x384xf32>
    %c0_15 = arith.constant 0 : index
    %c0_16 = arith.constant 0 : index
    %33 = vector.load %arg4[%c0_15, %c0_16] : memref<1x384xf32, #tpu.memory_space<vmem>>, vector<1x384xf32>
    %34 = vector.broadcast %33 : vector<1x384xf32> to vector<8x384xf32>
    %35 = arith.addf %32, %34 : vector<8x384xf32>
    %36 = arith.truncf %35 : vector<8x384xf32> to vector<8x384xbf16>
    %37 = vector.extract_strided_slice %36 {offsets = [0, 0], sizes = [8, 128], strides = [1, 1]} : vector<8x384xbf16> to vector<8x128xbf16>
    %38 = vector.extract_strided_slice %36 {offsets = [0, 128], sizes = [8, 128], strides = [1, 1]} : vector<8x384xbf16> to vector<8x128xbf16>
    %39 = vector.extract_strided_slice %36 {offsets = [0, 256], sizes = [8, 128], strides = [1, 1]} : vector<8x384xbf16> to vector<8x128xbf16>
    %40 = vector.extract_strided_slice %37 {offsets = [0, 0], sizes = [8, 32], strides = [1, 1]} : vector<8x128xbf16> to vector<8x32xbf16>
    %41 = vector.extract_strided_slice %38 {offsets = [0, 0], sizes = [8, 32], strides = [1, 1]} : vector<8x128xbf16> to vector<8x32xbf16>
    %cst_17 = arith.constant dense<0.000000e+00> : vector<8x8xf32>
    %42 = tpu.matmul %40, %41, %cst_17 {dimension_numbers = #tpu.dot_dimension_numbers<[1], [1], [0], [0], [0, 0, 1, 0], [], []>} : vector<8x32xbf16>, vector<8x32xbf16>, vector<8x8xf32> -> vector<8x8xf32>
    %43 = vector.extract_strided_slice %37 {offsets = [0, 32], sizes = [8, 32], strides = [1, 1]} : vector<8x128xbf16> to vector<8x32xbf16>
    %44 = vector.extract_strided_slice %38 {offsets = [0, 32], sizes = [8, 32], strides = [1, 1]} : vector<8x128xbf16> to vector<8x32xbf16>
    %cst_18 = arith.constant dense<0.000000e+00> : vector<8x8xf32>
    %45 = tpu.matmul %43, %44, %cst_18 {dimension_numbers = #tpu.dot_dimension_numbers<[1], [1], [0], [0], [0, 0, 1, 0], [], []>} : vector<8x32xbf16>, vector<8x32xbf16>, vector<8x8xf32> -> vector<8x8xf32>
    %46 = vector.extract_strided_slice %37 {offsets = [0, 64], sizes = [8, 32], strides = [1, 1]} : vector<8x128xbf16> to vector<8x32xbf16>
    %47 = vector.extract_strided_slice %38 {offsets = [0, 64], sizes = [8, 32], strides = [1, 1]} : vector<8x128xbf16> to vector<8x32xbf16>
    %cst_19 = arith.constant dense<0.000000e+00> : vector<8x8xf32>
    %48 = tpu.matmul %46, %47, %cst_19 {dimension_numbers = #tpu.dot_dimension_numbers<[1], [1], [0], [0], [0, 0, 1, 0], [], []>} : vector<8x32xbf16>, vector<8x32xbf16>, vector<8x8xf32> -> vector<8x8xf32>
    %49 = vector.extract_strided_slice %37 {offsets = [0, 96], sizes = [8, 32], strides = [1, 1]} : vector<8x128xbf16> to vector<8x32xbf16>
    %50 = vector.extract_strided_slice %38 {offsets = [0, 96], sizes = [8, 32], strides = [1, 1]} : vector<8x128xbf16> to vector<8x32xbf16>
    %cst_20 = arith.constant dense<0.000000e+00> : vector<8x8xf32>
    %51 = tpu.matmul %49, %50, %cst_20 {dimension_numbers = #tpu.dot_dimension_numbers<[1], [1], [0], [0], [0, 0, 1, 0], [], []>} : vector<8x32xbf16>, vector<8x32xbf16>, vector<8x8xf32> -> vector<8x8xf32>
    %52 = tpu.concatenate %42, %45, %48, %51 in 0 : vector<8x8xf32>, vector<8x8xf32>, vector<8x8xf32>, vector<8x8xf32> -> vector<32x8xf32>
    %cst_21 = arith.constant dense<0xFF800000> : vector<32xf32>
    %53 = vector.multi_reduction <maximumf>, %52, %cst_21 [1] : vector<32x8xf32> to vector<32xf32>
    %54 = vector.shape_cast %53 : vector<32xf32> to vector<32x1xf32>
    %55 = vector.broadcast %54 : vector<32x1xf32> to vector<32x8xf32>
    %56 = arith.subf %52, %55 : vector<32x8xf32>
    %57 = math.exp %56 : vector<32x8xf32>
    %cst_22 = arith.constant dense<0.000000e+00> : vector<32xf32>
    %58 = vector.multi_reduction <add>, %57, %cst_22 [1] : vector<32x8xf32> to vector<32xf32>
    %59 = vector.shape_cast %58 : vector<32xf32> to vector<32x1xf32>
    %60 = tpu.reciprocal %59 {approx = true} : vector<32x1xf32> -> vector<32x1xf32>
    %61 = vector.broadcast %60 : vector<32x1xf32> to vector<32x8xf32>
    %62 = arith.mulf %57, %61 : vector<32x8xf32>
    %63 = arith.truncf %62 : vector<32x8xf32> to vector<32x8xbf16>
    %64 = vector.extract_strided_slice %63 {offsets = [0, 0], sizes = [8, 8], strides = [1, 1]} : vector<32x8xbf16> to vector<8x8xbf16>
    %65 = vector.extract_strided_slice %39 {offsets = [0, 0], sizes = [8, 32], strides = [1, 1]} : vector<8x128xbf16> to vector<8x32xbf16>
    %cst_23 = arith.constant dense<0.000000e+00> : vector<8x32xf32>
    %66 = tpu.matmul %64, %65, %cst_23 {dimension_numbers = #tpu.dot_dimension_numbers<[1], [0], [0], [1], [0, 0, 1, 1], [], []>} : vector<8x8xbf16>, vector<8x32xbf16>, vector<8x32xf32> -> vector<8x32xf32>
    %67 = vector.extract_strided_slice %63 {offsets = [8, 0], sizes = [8, 8], strides = [1, 1]} : vector<32x8xbf16> to vector<8x8xbf16>
    %68 = vector.extract_strided_slice %39 {offsets = [0, 32], sizes = [8, 32], strides = [1, 1]} : vector<8x128xbf16> to vector<8x32xbf16>
    %cst_24 = arith.constant dense<0.000000e+00> : vector<8x32xf32>
    %69 = tpu.matmul %67, %68, %cst_24 {dimension_numbers = #tpu.dot_dimension_numbers<[1], [0], [0], [1], [0, 0, 1, 1], [], []>} : vector<8x8xbf16>, vector<8x32xbf16>, vector<8x32xf32> -> vector<8x32xf32>
    %70 = vector.extract_strided_slice %63 {offsets = [16, 0], sizes = [8, 8], strides = [1, 1]} : vector<32x8xbf16> to vector<8x8xbf16>
    %71 = vector.extract_strided_slice %39 {offsets = [0, 64], sizes = [8, 32], strides = [1, 1]} : vector<8x128xbf16> to vector<8x32xbf16>
    %cst_25 = arith.constant dense<0.000000e+00> : vector<8x32xf32>
    %72 = tpu.matmul %70, %71, %cst_25 {dimension_numbers = #tpu.dot_dimension_numbers<[1], [0], [0], [1], [0, 0, 1, 1], [], []>} : vector<8x8xbf16>, vector<8x32xbf16>, vector<8x32xf32> -> vector<8x32xf32>
    %73 = vector.extract_strided_slice %63 {offsets = [24, 0], sizes = [8, 8], strides = [1, 1]} : vector<32x8xbf16> to vector<8x8xbf16>
    %74 = vector.extract_strided_slice %39 {offsets = [0, 96], sizes = [8, 32], strides = [1, 1]} : vector<8x128xbf16> to vector<8x32xbf16>
    %cst_26 = arith.constant dense<0.000000e+00> : vector<8x32xf32>
    %75 = tpu.matmul %73, %74, %cst_26 {dimension_numbers = #tpu.dot_dimension_numbers<[1], [0], [0], [1], [0, 0, 1, 1], [], []>} : vector<8x8xbf16>, vector<8x32xbf16>, vector<8x32xf32> -> vector<8x32xf32>
    %76 = tpu.concatenate %66, %69, %72, %75 in 1 : vector<8x32xf32>, vector<8x32xf32>, vector<8x32xf32>, vector<8x32xf32> -> vector<8x128xf32>
    %77 = arith.truncf %76 : vector<8x128xf32> to vector<8x128xbf16>
    %c0_27 = arith.constant 0 : index
    %c0_28 = arith.constant 0 : index
    %78 = vector.load %arg17[%c0_27, %c0_28] : memref<8x128xbf16, #tpu.memory_space<vmem>>, vector<8x128xbf16>
    tpu.vector_store %arg17[%c0_27, %c0_28], %77 {strides = array<i32>} : memref<8x128xbf16, #tpu.memory_space<vmem>>, vector<8x128xbf16>,
    %c0_29 = arith.constant 0 : index
    %c0_30 = arith.constant 0 : index
    %79 = vector.load %arg17[%c0_29, %c0_30] : memref<8x128xbf16, #tpu.memory_space<vmem>>, vector<8x128xbf16>
    %c0_31 = arith.constant 0 : index
    %c0_32 = arith.constant 0 : index
    %80 = vector.load %arg5[%c0_31, %c0_32] : memref<128x128xbf16, #tpu.memory_space<vmem>>, vector<128x128xbf16>
    %cst_33 = arith.constant dense<0.000000e+00> : vector<8x128xf32>
    %81 = tpu.matmul %79, %80, %cst_33 {dimension_numbers = #tpu.dot_dimension_numbers<[1], [0], [0], [1], [0, 0, 1, 1], [], []>} : vector<8x128xbf16>, vector<128x128xbf16>, vector<8x128xf32> -> vector<8x128xf32>
    %c0_34 = arith.constant 0 : index
    %c0_35 = arith.constant 0 : index
    %82 = vector.load %arg6[%c0_34, %c0_35] : memref<1x128xf32, #tpu.memory_space<vmem>>, vector<1x128xf32>
    %83 = vector.broadcast %82 : vector<1x128xf32> to vector<8x128xf32>
    %84 = arith.addf %81, %83 : vector<8x128xf32>
    %85 = arith.addf %1, %84 : vector<8x128xf32>
    %c1_36 = arith.constant 1 : index
    %c0_37 = arith.constant 0 : index
    %86 = memref.load %arg15[%c1_36, %c0_37] : memref<3x2xf32, #tpu.memory_space<smem>>
    %c1_38 = arith.constant 1 : index
    %c1_39 = arith.constant 1 : index
    %87 = memref.load %arg15[%c1_38, %c1_39] : memref<3x2xf32, #tpu.memory_space<smem>>
    %cst_40 = arith.constant dense<0.000000e+00> : vector<8xf32>
    %88 = vector.multi_reduction <add>, %85, %cst_40 [1] : vector<8x128xf32> to vector<8xf32>
    %89 = vector.shape_cast %88 : vector<8xf32> to vector<8x1xf32>
    %cst_41 = arith.constant 1.280000e+02 : f32
    %90 = vector.broadcast %cst_41 : f32 to vector<8x1xf32>
    %91 = arith.divf %89, %90 : vector<8x1xf32>
    %92 = vector.broadcast %91 : vector<8x1xf32> to vector<8x128xf32>
    %93 = arith.subf %85, %92 : vector<8x128xf32>
    %94 = arith.mulf %93, %93 : vector<8x128xf32>
    %cst_42 = arith.constant dense<0.000000e+00> : vector<8xf32>
    %95 = vector.multi_reduction <add>, %94, %cst_42 [1] : vector<8x128xf32> to vector<8xf32>
    %96 = vector.shape_cast %95 : vector<8xf32> to vector<8x1xf32>
    %cst_43 = arith.constant 0.00787401571 : f32
    %97 = vector.broadcast %cst_43 : f32 to vector<8x1xf32>
    %98 = arith.mulf %96, %97 : vector<8x1xf32>
    %99 = math.sqrt %98 : vector<8x1xf32>
    %cst_44 = arith.constant 9.99999997E-7 : f32
    %100 = vector.broadcast %cst_44 : f32 to vector<8x1xf32>
    %101 = arith.addf %99, %100 : vector<8x1xf32>
    %102 = tpu.reciprocal %101 : vector<8x1xf32> -> vector<8x1xf32>
    %103 = vector.broadcast %91 : vector<8x1xf32> to vector<8x128xf32>
    %104 = arith.subf %85, %103 : vector<8x128xf32>
    %105 = vector.broadcast %86 : f32 to vector<8x128xf32>
    %106 = arith.mulf %105, %104 : vector<8x128xf32>
    %107 = vector.broadcast %102 : vector<8x1xf32> to vector<8x128xf32>
    %108 = arith.mulf %106, %107 : vector<8x128xf32>
    %109 = vector.broadcast %87 : f32 to vector<8x128xf32>
    %110 = arith.addf %108, %109 : vector<8x128xf32>
    %111 = arith.truncf %110 : vector<8x128xf32> to vector<8x128xbf16>
    %c0_45 = arith.constant 0 : index
    %c0_46 = arith.constant 0 : index
    %112 = vector.load %arg7[%c0_45, %c0_46] : memref<128x384xbf16, #tpu.memory_space<vmem>>, vector<128x128xbf16>
    %cst_47 = arith.constant dense<0.000000e+00> : vector<8x128xf32>
    %113 = tpu.matmul %111, %112, %cst_47 {dimension_numbers = #tpu.dot_dimension_numbers<[1], [0], [0], [1], [0, 0, 1, 1], [], []>} : vector<8x128xbf16>, vector<128x128xbf16>, vector<8x128xf32> -> vector<8x128xf32>
    %c0_48 = arith.constant 0 : index
    %c0_49 = arith.constant 0 : index
    %114 = vector.load %arg8[%c0_48, %c0_49] : memref<1x384xf32, #tpu.memory_space<vmem>>, vector<1x128xf32>
    %115 = vector.broadcast %114 : vector<1x128xf32> to vector<8x128xf32>
    %116 = arith.addf %113, %115 : vector<8x128xf32>
    %117 = arith.truncf %116 : vector<8x128xf32> to vector<8x128xbf16>
    %c0_50 = arith.constant 0 : index
    %c128 = arith.constant 128 : index
    %118 = vector.load %arg7[%c0_50, %c128] : memref<128x384xbf16, #tpu.memory_space<vmem>>, vector<128x256xbf16>
    %cst_51 = arith.constant dense<0.000000e+00> : vector<16x256xf32>
    %119 = tpu.matmul %4, %118, %cst_51 {dimension_numbers = #tpu.dot_dimension_numbers<[1], [0], [0], [1], [0, 0, 1, 1], [], []>} : vector<16x128xbf16>, vector<128x256xbf16>, vector<16x256xf32> -> vector<16x256xf32>
    %c0_52 = arith.constant 0 : index
    %c128_53 = arith.constant 128 : index
    %120 = vector.load %arg8[%c0_52, %c128_53] : memref<1x384xf32, #tpu.memory_space<vmem>>, vector<1x256xf32>
    %121 = vector.broadcast %120 : vector<1x256xf32> to vector<16x256xf32>
    %122 = arith.addf %119, %121 : vector<16x256xf32>
    %123 = arith.truncf %122 : vector<16x256xf32> to vector<16x256xbf16>
    %124 = vector.extract_strided_slice %123 {offsets = [0, 0], sizes = [16, 128], strides = [1, 1]} : vector<16x256xbf16> to vector<16x128xbf16>
    %125 = vector.extract_strided_slice %123 {offsets = [0, 128], sizes = [16, 128], strides = [1, 1]} : vector<16x256xbf16> to vector<16x128xbf16>
    %126 = vector.extract_strided_slice %117 {offsets = [0, 0], sizes = [8, 32], strides = [1, 1]} : vector<8x128xbf16> to vector<8x32xbf16>
    %127 = vector.extract_strided_slice %124 {offsets = [0, 0], sizes = [16, 32], strides = [1, 1]} : vector<16x128xbf16> to vector<16x32xbf16>
    %cst_54 = arith.constant dense<0.000000e+00> : vector<8x16xf32>
    %128 = tpu.matmul %126, %127, %cst_54 {dimension_numbers = #tpu.dot_dimension_numbers<[1], [1], [0], [0], [0, 0, 1, 0], [], []>} : vector<8x32xbf16>, vector<16x32xbf16>, vector<8x16xf32> -> vector<8x16xf32>
    %129 = vector.extract_strided_slice %117 {offsets = [0, 32], sizes = [8, 32], strides = [1, 1]} : vector<8x128xbf16> to vector<8x32xbf16>
    %130 = vector.extract_strided_slice %124 {offsets = [0, 32], sizes = [16, 32], strides = [1, 1]} : vector<16x128xbf16> to vector<16x32xbf16>
    %cst_55 = arith.constant dense<0.000000e+00> : vector<8x16xf32>
    %131 = tpu.matmul %129, %130, %cst_55 {dimension_numbers = #tpu.dot_dimension_numbers<[1], [1], [0], [0], [0, 0, 1, 0], [], []>} : vector<8x32xbf16>, vector<16x32xbf16>, vector<8x16xf32> -> vector<8x16xf32>
    %132 = vector.extract_strided_slice %117 {offsets = [0, 64], sizes = [8, 32], strides = [1, 1]} : vector<8x128xbf16> to vector<8x32xbf16>
    %133 = vector.extract_strided_slice %124 {offsets = [0, 64], sizes = [16, 32], strides = [1, 1]} : vector<16x128xbf16> to vector<16x32xbf16>
    %cst_56 = arith.constant dense<0.000000e+00> : vector<8x16xf32>
    %134 = tpu.matmul %132, %133, %cst_56 {dimension_numbers = #tpu.dot_dimension_numbers<[1], [1], [0], [0], [0, 0, 1, 0], [], []>} : vector<8x32xbf16>, vector<16x32xbf16>, vector<8x16xf32> -> vector<8x16xf32>
    %135 = vector.extract_strided_slice %117 {offsets = [0, 96], sizes = [8, 32], strides = [1, 1]} : vector<8x128xbf16> to vector<8x32xbf16>
    %136 = vector.extract_strided_slice %124 {offsets = [0, 96], sizes = [16, 32], strides = [1, 1]} : vector<16x128xbf16> to vector<16x32xbf16>
    %cst_57 = arith.constant dense<0.000000e+00> : vector<8x16xf32>
    %137 = tpu.matmul %135, %136, %cst_57 {dimension_numbers = #tpu.dot_dimension_numbers<[1], [1], [0], [0], [0, 0, 1, 0], [], []>} : vector<8x32xbf16>, vector<16x32xbf16>, vector<8x16xf32> -> vector<8x16xf32>
    %138 = tpu.concatenate %128, %131, %134, %137 in 0 : vector<8x16xf32>, vector<8x16xf32>, vector<8x16xf32>, vector<8x16xf32> -> vector<32x16xf32>
    %cst_58 = arith.constant dense<0xFF800000> : vector<32xf32>
    %139 = vector.multi_reduction <maximumf>, %138, %cst_58 [1] : vector<32x16xf32> to vector<32xf32>
    %140 = vector.shape_cast %139 : vector<32xf32> to vector<32x1xf32>
    %141 = vector.broadcast %140 : vector<32x1xf32> to vector<32x16xf32>
    %142 = arith.subf %138, %141 : vector<32x16xf32>
    %143 = math.exp %142 : vector<32x16xf32>
    %cst_59 = arith.constant dense<0.000000e+00> : vector<32xf32>
    %144 = vector.multi_reduction <add>, %143, %cst_59 [1] : vector<32x16xf32> to vector<32xf32>
    %145 = vector.shape_cast %144 : vector<32xf32> to vector<32x1xf32>
    %146 = tpu.reciprocal %145 {approx = true} : vector<32x1xf32> -> vector<32x1xf32>
    %147 = vector.broadcast %146 : vector<32x1xf32> to vector<32x16xf32>
    %148 = arith.mulf %143, %147 : vector<32x16xf32>
    %149 = arith.truncf %148 : vector<32x16xf32> to vector<32x16xbf16>
    %150 = vector.extract_strided_slice %149 {offsets = [0, 0], sizes = [8, 16], strides = [1, 1]} : vector<32x16xbf16> to vector<8x16xbf16>
    %151 = vector.extract_strided_slice %125 {offsets = [0, 0], sizes = [16, 32], strides = [1, 1]} : vector<16x128xbf16> to vector<16x32xbf16>
    %cst_60 = arith.constant dense<0.000000e+00> : vector<8x32xf32>
    %152 = tpu.matmul %150, %151, %cst_60 {dimension_numbers = #tpu.dot_dimension_numbers<[1], [0], [0], [1], [0, 0, 1, 1], [], []>} : vector<8x16xbf16>, vector<16x32xbf16>, vector<8x32xf32> -> vector<8x32xf32>
    %153 = vector.extract_strided_slice %149 {offsets = [8, 0], sizes = [8, 16], strides = [1, 1]} : vector<32x16xbf16> to vector<8x16xbf16>
    %154 = vector.extract_strided_slice %125 {offsets = [0, 32], sizes = [16, 32], strides = [1, 1]} : vector<16x128xbf16> to vector<16x32xbf16>
    %cst_61 = arith.constant dense<0.000000e+00> : vector<8x32xf32>
    %155 = tpu.matmul %153, %154, %cst_61 {dimension_numbers = #tpu.dot_dimension_numbers<[1], [0], [0], [1], [0, 0, 1, 1], [], []>} : vector<8x16xbf16>, vector<16x32xbf16>, vector<8x32xf32> -> vector<8x32xf32>
    %156 = vector.extract_strided_slice %149 {offsets = [16, 0], sizes = [8, 16], strides = [1, 1]} : vector<32x16xbf16> to vector<8x16xbf16>
    %157 = vector.extract_strided_slice %125 {offsets = [0, 64], sizes = [16, 32], strides = [1, 1]} : vector<16x128xbf16> to vector<16x32xbf16>
    %cst_62 = arith.constant dense<0.000000e+00> : vector<8x32xf32>
    %158 = tpu.matmul %156, %157, %cst_62 {dimension_numbers = #tpu.dot_dimension_numbers<[1], [0], [0], [1], [0, 0, 1, 1], [], []>} : vector<8x16xbf16>, vector<16x32xbf16>, vector<8x32xf32> -> vector<8x32xf32>
    %159 = vector.extract_strided_slice %149 {offsets = [24, 0], sizes = [8, 16], strides = [1, 1]} : vector<32x16xbf16> to vector<8x16xbf16>
    %160 = vector.extract_strided_slice %125 {offsets = [0, 96], sizes = [16, 32], strides = [1, 1]} : vector<16x128xbf16> to vector<16x32xbf16>
    %cst_63 = arith.constant dense<0.000000e+00> : vector<8x32xf32>
    %161 = tpu.matmul %159, %160, %cst_63 {dimension_numbers = #tpu.dot_dimension_numbers<[1], [0], [0], [1], [0, 0, 1, 1], [], []>} : vector<8x16xbf16>, vector<16x32xbf16>, vector<8x32xf32> -> vector<8x32xf32>
    %162 = tpu.concatenate %152, %155, %158, %161 in 1 : vector<8x32xf32>, vector<8x32xf32>, vector<8x32xf32>, vector<8x32xf32> -> vector<8x128xf32>
    %163 = arith.truncf %162 : vector<8x128xf32> to vector<8x128xbf16>
    %c0_64 = arith.constant 0 : index
    %c0_65 = arith.constant 0 : index
    %164 = vector.load %arg17[%c0_64, %c0_65] : memref<8x128xbf16, #tpu.memory_space<vmem>>, vector<8x128xbf16>
    tpu.vector_store %arg17[%c0_64, %c0_65], %163 {strides = array<i32>} : memref<8x128xbf16, #tpu.memory_space<vmem>>, vector<8x128xbf16>,
    %c0_66 = arith.constant 0 : index
    %c0_67 = arith.constant 0 : index
    %165 = vector.load %arg17[%c0_66, %c0_67] : memref<8x128xbf16, #tpu.memory_space<vmem>>, vector<8x128xbf16>
    %c0_68 = arith.constant 0 : index
    %c0_69 = arith.constant 0 : index
    %166 = vector.load %arg9[%c0_68, %c0_69] : memref<128x128xbf16, #tpu.memory_space<vmem>>, vector<128x128xbf16>
    %cst_70 = arith.constant dense<0.000000e+00> : vector<8x128xf32>
    %167 = tpu.matmul %165, %166, %cst_70 {dimension_numbers = #tpu.dot_dimension_numbers<[1], [0], [0], [1], [0, 0, 1, 1], [], []>} : vector<8x128xbf16>, vector<128x128xbf16>, vector<8x128xf32> -> vector<8x128xf32>
    %c0_71 = arith.constant 0 : index
    %c0_72 = arith.constant 0 : index
    %168 = vector.load %arg10[%c0_71, %c0_72] : memref<1x128xf32, #tpu.memory_space<vmem>>, vector<1x128xf32>
    %169 = vector.broadcast %168 : vector<1x128xf32> to vector<8x128xf32>
    %170 = arith.addf %167, %169 : vector<8x128xf32>
    %171 = arith.addf %85, %170 : vector<8x128xf32>
    %c2 = arith.constant 2 : index
    %c0_73 = arith.constant 0 : index
    %172 = memref.load %arg15[%c2, %c0_73] : memref<3x2xf32, #tpu.memory_space<smem>>
    %c2_74 = arith.constant 2 : index
    %c1_75 = arith.constant 1 : index
    %173 = memref.load %arg15[%c2_74, %c1_75] : memref<3x2xf32, #tpu.memory_space<smem>>
    %cst_76 = arith.constant dense<0.000000e+00> : vector<8xf32>
    %174 = vector.multi_reduction <add>, %171, %cst_76 [1] : vector<8x128xf32> to vector<8xf32>
    %175 = vector.shape_cast %174 : vector<8xf32> to vector<8x1xf32>
    %cst_77 = arith.constant 1.280000e+02 : f32
    %176 = vector.broadcast %cst_77 : f32 to vector<8x1xf32>
    %177 = arith.divf %175, %176 : vector<8x1xf32>
    %178 = vector.broadcast %177 : vector<8x1xf32> to vector<8x128xf32>
    %179 = arith.subf %171, %178 : vector<8x128xf32>
    %180 = arith.mulf %179, %179 : vector<8x128xf32>
    %cst_78 = arith.constant dense<0.000000e+00> : vector<8xf32>
    %181 = vector.multi_reduction <add>, %180, %cst_78 [1] : vector<8x128xf32> to vector<8xf32>
    %182 = vector.shape_cast %181 : vector<8xf32> to vector<8x1xf32>
    %cst_79 = arith.constant 0.00787401571 : f32
    %183 = vector.broadcast %cst_79 : f32 to vector<8x1xf32>
    %184 = arith.mulf %182, %183 : vector<8x1xf32>
    %185 = math.sqrt %184 : vector<8x1xf32>
    %cst_80 = arith.constant 9.99999997E-7 : f32
    %186 = vector.broadcast %cst_80 : f32 to vector<8x1xf32>
    %187 = arith.addf %185, %186 : vector<8x1xf32>
    %188 = tpu.reciprocal %187 : vector<8x1xf32> -> vector<8x1xf32>
    %189 = vector.broadcast %177 : vector<8x1xf32> to vector<8x128xf32>
    %190 = arith.subf %171, %189 : vector<8x128xf32>
    %191 = vector.broadcast %172 : f32 to vector<8x128xf32>
    %192 = arith.mulf %191, %190 : vector<8x128xf32>
    %193 = vector.broadcast %188 : vector<8x1xf32> to vector<8x128xf32>
    %194 = arith.mulf %192, %193 : vector<8x128xf32>
    %195 = vector.broadcast %173 : f32 to vector<8x128xf32>
    %196 = arith.addf %194, %195 : vector<8x128xf32>
    %197 = arith.truncf %196 : vector<8x128xf32> to vector<8x128xbf16>
    %cst_81 = arith.constant 0.000000e+00 : f32
    %198 = vector.broadcast %cst_81 : f32 to vector<8x128xf32>
    %c0_82 = arith.constant 0 : index
    %c0_83 = arith.constant 0 : index
    %c0_84 = arith.constant 0 : index
    %199 = vector.load %arg11[%c0_82, %c0_83, %c0_84] : memref<1x128x256xbf16, #tpu.memory_space<vmem>>, vector<1x128x256xbf16>
    %200 = vector.shape_cast %199 : vector<1x128x256xbf16> to vector<128x256xbf16>
    %cst_85 = arith.constant dense<0.000000e+00> : vector<8x256xf32>
    %201 = tpu.matmul %197, %200, %cst_85 {dimension_numbers = #tpu.dot_dimension_numbers<[1], [0], [0], [1], [0, 0, 1, 1], [], []>} : vector<8x128xbf16>, vector<128x256xbf16>, vector<8x256xf32> -> vector<8x256xf32>
    %c0_86 = arith.constant 0 : index
    %c0_87 = arith.constant 0 : index
    %c0_88 = arith.constant 0 : index
    %202 = vector.load %arg12[%c0_86, %c0_87, %c0_88] : memref<1x1x256xf32, #tpu.memory_space<vmem>>, vector<1x1x256xf32>
    %203 = vector.shape_cast %202 : vector<1x1x256xf32> to vector<1x256xf32>
    %204 = vector.broadcast %203 : vector<1x256xf32> to vector<8x256xf32>
    %205 = arith.addf %201, %204 : vector<8x256xf32>
    %cst_89 = arith.constant 0.000000e+00 : f32
    %206 = vector.broadcast %cst_89 : f32 to vector<8x256xf32>
    %207 = arith.maximumf %205, %206 : vector<8x256xf32>
    %208 = arith.truncf %207 : vector<8x256xf32> to vector<8x256xbf16>
    %c0_90 = arith.constant 0 : index
    %c0_91 = arith.constant 0 : index
    %c0_92 = arith.constant 0 : index
    %209 = vector.load %arg13[%c0_90, %c0_91, %c0_92] : memref<1x256x128xbf16, #tpu.memory_space<vmem>>, vector<1x256x128xbf16>
    %210 = vector.shape_cast %209 : vector<1x256x128xbf16> to vector<256x128xbf16>
    %cst_93 = arith.constant dense<0.000000e+00> : vector<8x128xf32>
    %211 = tpu.matmul %208, %210, %cst_93 {dimension_numbers = #tpu.dot_dimension_numbers<[1], [0], [0], [1], [0, 0, 1, 1], [], []>} : vector<8x256xbf16>, vector<256x128xbf16>, vector<8x128xf32> -> vector<8x128xf32>
    %212 = arith.addf %198, %211 : vector<8x128xf32>
    %c0_94 = arith.constant 0 : index
    %c0_95 = arith.constant 0 : index
    %213 = vector.load %arg14[%c0_94, %c0_95] : memref<1x128xf32, #tpu.memory_space<vmem>>, vector<1x128xf32>
    %214 = vector.broadcast %213 : vector<1x128xf32> to vector<8x128xf32>
    %215 = arith.addf %212, %214 : vector<8x128xf32>
    %216 = arith.addf %171, %215 : vector<8x128xf32>
    %217 = vector.shape_cast %216 : vector<8x128xf32> to vector<1x8x128xf32>
    %c0_96 = arith.constant 0 : index
    %c0_97 = arith.constant 0 : index
    %c0_98 = arith.constant 0 : index
    %218 = vector.load %arg16[%c0_96, %c0_97, %c0_98] : memref<1x8x128xf32, #tpu.memory_space<vmem>>, vector<1x8x128xf32>
    tpu.vector_store %arg16[%c0_96, %c0_97, %c0_98], %217 {strides = array<i32>} : memref<1x8x128xf32, #tpu.memory_space<vmem>>, vector<1x8x128xf32>,
    return
  }
  func.func @transform_0(%arg0: i32) -> (i32, i32, i32) {
    %c0_i32 = arith.constant 0 : i32
    %c0_i32_0 = arith.constant 0 : i32
    %c0_i32_1 = arith.constant 0 : i32
    return %arg0, %c0_i32, %c0_i32_0 : i32, i32, i32
  }
  func.func @transform_1(%arg0: i32) -> (i32, i32, i32) {
    %c0_i32 = arith.constant 0 : i32
    %c0_i32_0 = arith.constant 0 : i32
    %c0_i32_1 = arith.constant 0 : i32
    return %arg0, %c0_i32, %c0_i32_0 : i32, i32, i32
  }
  func.func @transform_2(%arg0: i32) -> (i32, i32) {
    %c0_i32 = arith.constant 0 : i32
    %c0_i32_0 = arith.constant 0 : i32
    %c0_i32_1 = arith.constant 0 : i32
    return %c0_i32, %c0_i32_0 : i32, i32
  }
  func.func @transform_3(%arg0: i32) -> (i32, i32) {
    %c0_i32 = arith.constant 0 : i32
    %c0_i32_0 = arith.constant 0 : i32
    %c0_i32_1 = arith.constant 0 : i32
    return %c0_i32, %c0_i32_0 : i32, i32
  }
  func.func @transform_4(%arg0: i32) -> (i32, i32) {
    %c0_i32 = arith.constant 0 : i32
    %c0_i32_0 = arith.constant 0 : i32
    %c0_i32_1 = arith.constant 0 : i32
    return %c0_i32, %c0_i32_0 : i32, i32
  }
  func.func @transform_5(%arg0: i32) -> (i32, i32) {
    %c0_i32 = arith.constant 0 : i32
    %c0_i32_0 = arith.constant 0 : i32
    %c0_i32_1 = arith.constant 0 : i32
    return %c0_i32, %c0_i32_0 : i32, i32
  }
  func.func @transform_6(%arg0: i32) -> (i32, i32) {
    %c0_i32 = arith.constant 0 : i32
    %c0_i32_0 = arith.constant 0 : i32
    %c0_i32_1 = arith.constant 0 : i32
    return %c0_i32, %c0_i32_0 : i32, i32
  }
  func.func @transform_7(%arg0: i32) -> (i32, i32) {
    %c0_i32 = arith.constant 0 : i32
    %c0_i32_0 = arith.constant 0 : i32
    %c0_i32_1 = arith.constant 0 : i32
    return %c0_i32, %c0_i32_0 : i32, i32
  }
  func.func @transform_8(%arg0: i32) -> (i32, i32) {
    %c0_i32 = arith.constant 0 : i32
    %c0_i32_0 = arith.constant 0 : i32
    %c0_i32_1 = arith.constant 0 : i32
    return %c0_i32, %c0_i32_0 : i32, i32
  }
  func.func @transform_9(%arg0: i32) -> (i32, i32) {
    %c0_i32 = arith.constant 0 : i32
    %c0_i32_0 = arith.constant 0 : i32
    %c0_i32_1 = arith.constant 0 : i32
    return %c0_i32, %c0_i32_0 : i32, i32
  }
  func.func @transform_10(%arg0: i32) -> (i32, i32, i32) {
    %c0_i32 = arith.constant 0 : i32
    %c0_i32_0 = arith.constant 0 : i32
    %c0_i32_1 = arith.constant 0 : i32
    %c0_i32_2 = arith.constant 0 : i32
    return %c0_i32, %c0_i32_0, %c0_i32_1 : i32, i32, i32
  }
  func.func @transform_11(%arg0: i32) -> (i32, i32, i32) {
    %c0_i32 = arith.constant 0 : i32
    %c0_i32_0 = arith.constant 0 : i32
    %c0_i32_1 = arith.constant 0 : i32
    %c0_i32_2 = arith.constant 0 : i32
    return %c0_i32, %c0_i32_0, %c0_i32_1 : i32, i32, i32
  }
  func.func @transform_12(%arg0: i32) -> (i32, i32, i32) {
    %c0_i32 = arith.constant 0 : i32
    %c0_i32_0 = arith.constant 0 : i32
    %c0_i32_1 = arith.constant 0 : i32
    %c0_i32_2 = arith.constant 0 : i32
    return %c0_i32, %c0_i32_0, %c0_i32_1 : i32, i32, i32
  }
  func.func @transform_13(%arg0: i32) -> (i32, i32) {
    %c0_i32 = arith.constant 0 : i32
    %c0_i32_0 = arith.constant 0 : i32
    %c0_i32_1 = arith.constant 0 : i32
    return %c0_i32, %c0_i32_0 : i32, i32
  }
  func.func @transform_14(%arg0: i32) -> (i32, i32) {
    %c0_i32 = arith.constant 0 : i32
    %c0_i32_0 = arith.constant 0 : i32
    %c0_i32_1 = arith.constant 0 : i32
    return %c0_i32, %c0_i32_0 : i32, i32
  }
  func.func @transform_15(%arg0: i32) -> (i32, i32, i32) {
    %c0_i32 = arith.constant 0 : i32
    %c0_i32_0 = arith.constant 0 : i32
    %c0_i32_1 = arith.constant 0 : i32
    return %arg0, %c0_i32, %c0_i32_0 : i32, i32, i32
  }
}

module attributes {stable_mosaic.version = 11 : i64} {
  func.func @kernel(%arg0: i32, %arg1: memref<1x8x128xf32, #tpu.memory_space<vmem>>, %arg2: memref<1x16x128xf32, #tpu.memory_space<vmem>>, %arg3: memref<128x384xbf16, #tpu.memory_space<vmem>>, %arg4: memref<1x384xf32, #tpu.memory_space<vmem>>, %arg5: memref<128x128xbf16, #tpu.memory_space<vmem>>, %arg6: memref<1x128xf32, #tpu.memory_space<vmem>>, %arg7: memref<128x384xbf16, #tpu.memory_space<vmem>>, %arg8: memref<1x384xf32, #tpu.memory_space<vmem>>, %arg9: memref<128x128xbf16, #tpu.memory_space<vmem>>, %arg10: memref<1x128xf32, #tpu.memory_space<vmem>>, %arg11: memref<1x128x256xbf16, #tpu.memory_space<vmem>>, %arg12: memref<1x1x256xf32, #tpu.memory_space<vmem>>, %arg13: memref<1x256x128xbf16, #tpu.memory_space<vmem>>, %arg14: memref<1x128xf32, #tpu.memory_space<vmem>>, %arg15: memref<3x2xf32, #tpu.memory_space<smem>>, %arg16: memref<1x8x128xf32, #tpu.memory_space<vmem>>, %arg17: memref<8x128xbf16, #tpu.memory_space<vmem>>) attributes {dimension_semantics = [#tpu.dimension_semantics<parallel>], iteration_bounds = array<i64: 2>, scalar_prefetch = 0 : i64, scratch_operands = 1 : i64, tpu.core_type = #tpu.core_type<tc>, window_params = [{transform_indices = @transform_0, window_bounds = array<i64: 1, 8, 128>}, {transform_indices = @transform_1, window_bounds = array<i64: 1, 16, 128>}, {pipeline_mode = #tpu.pipeline_mode<synchronous>, transform_indices = @transform_2, window_bounds = array<i64: 128, 384>}, {pipeline_mode = #tpu.pipeline_mode<synchronous>, transform_indices = @transform_3, window_bounds = array<i64: 1, 384>}, {pipeline_mode = #tpu.pipeline_mode<synchronous>, transform_indices = @transform_4, window_bounds = array<i64: 128, 128>}, {pipeline_mode = #tpu.pipeline_mode<synchronous>, transform_indices = @transform_5, window_bounds = array<i64: 1, 128>}, {pipeline_mode = #tpu.pipeline_mode<synchronous>, transform_indices = @transform_6, window_bounds = array<i64: 128, 384>}, {pipeline_mode = #tpu.pipeline_mode<synchronous>, transform_indices = @transform_7, window_bounds = array<i64: 1, 384>}, {pipeline_mode = #tpu.pipeline_mode<synchronous>, transform_indices = @transform_8, window_bounds = array<i64: 128, 128>}, {pipeline_mode = #tpu.pipeline_mode<synchronous>, transform_indices = @transform_9, window_bounds = array<i64: 1, 128>}, {pipeline_mode = #tpu.pipeline_mode<synchronous>, transform_indices = @transform_10, window_bounds = array<i64: 1, 128, 256>}, {pipeline_mode = #tpu.pipeline_mode<synchronous>, transform_indices = @transform_11, window_bounds = array<i64: 1, 1, 256>}, {pipeline_mode = #tpu.pipeline_mode<synchronous>, transform_indices = @transform_12, window_bounds = array<i64: 1, 256, 128>}, {pipeline_mode = #tpu.pipeline_mode<synchronous>, transform_indices = @transform_13, window_bounds = array<i64: 1, 128>}, {transform_indices = @transform_14, window_bounds = array<i64: 3, 2>}, {transform_indices = @transform_15, window_bounds = array<i64: 1, 8, 128>}]} {
    %c0 = arith.constant 0 : index
    %c0_0 = arith.constant 0 : index
    %c0_1 = arith.constant 0 : index
    %0 = vector.load %arg1[%c0, %c0_0, %c0_1] : memref<1x8x128xf32, #tpu.memory_space<vmem>>, vector<1x8x128xf32>
    %1 = vector.shape_cast %0 : vector<1x8x128xf32> to vector<8x128xf32>
    %c0_2 = arith.constant 0 : index
    %c0_3 = arith.constant 0 : index
    %c0_4 = arith.constant 0 : index
    %2 = vector.load %arg2[%c0_2, %c0_3, %c0_4] : memref<1x16x128xf32, #tpu.memory_space<vmem>>, vector<1x16x128xf32>
    %3 = vector.shape_cast %2 : vector<1x16x128xf32> to vector<16x128xf32>
    %4 = arith.truncf %3 : vector<16x128xf32> to vector<16x128xbf16>
    %c0_5 = arith.constant 0 : index
    %c0_6 = arith.constant 0 : index
    %5 = memref.load %arg15[%c0_5, %c0_6] : memref<3x2xf32, #tpu.memory_space<smem>>
    %c0_7 = arith.constant 0 : index
    %c1 = arith.constant 1 : index
    %6 = memref.load %arg15[%c0_7, %c1] : memref<3x2xf32, #tpu.memory_space<smem>>
    %cst = arith.constant dense<0.000000e+00> : vector<8xf32>
    %7 = vector.multi_reduction <add>, %1, %cst [1] : vector<8x128xf32> to vector<8xf32>
    %8 = vector.shape_cast %7 : vector<8xf32> to vector<8x1xf32>
    %cst_8 = arith.constant 1.280000e+02 : f32
    %9 = vector.broadcast %cst_8 : f32 to vector<8x1xf32>
    %10 = arith.divf %8, %9 : vector<8x1xf32>
    %11 = vector.broadcast %10 : vector<8x1xf32> to vector<8x128xf32>
    %12 = arith.subf %1, %11 : vector<8x128xf32>
    %13 = arith.mulf %12, %12 : vector<8x128xf32>
    %cst_9 = arith.constant dense<0.000000e+00> : vector<8xf32>
    %14 = vector.multi_reduction <add>, %13, %cst_9 [1] : vector<8x128xf32> to vector<8xf32>
    %15 = vector.shape_cast %14 : vector<8xf32> to vector<8x1xf32>
    %cst_10 = arith.constant 0.00787401571 : f32
    %16 = vector.broadcast %cst_10 : f32 to vector<8x1xf32>
    %17 = arith.mulf %15, %16 : vector<8x1xf32>
    %18 = math.sqrt %17 : vector<8x1xf32>
    %cst_11 = arith.constant 9.99999997E-7 : f32
    %19 = vector.broadcast %cst_11 : f32 to vector<8x1xf32>
    %20 = arith.addf %18, %19 : vector<8x1xf32>
    %21 = tpu.reciprocal %20 : vector<8x1xf32> -> vector<8x1xf32>
    %22 = vector.broadcast %10 : vector<8x1xf32> to vector<8x128xf32>
    %23 = arith.subf %1, %22 : vector<8x128xf32>
    %24 = vector.broadcast %5 : f32 to vector<8x128xf32>
    %25 = arith.mulf %24, %23 : vector<8x128xf32>
    %26 = vector.broadcast %21 : vector<8x1xf32> to vector<8x128xf32>
    %27 = arith.mulf %25, %26 : vector<8x128xf32>
    %28 = vector.broadcast %6 : f32 to vector<8x128xf32>
    %29 = arith.addf %27, %28 : vector<8x128xf32>
    %30 = arith.truncf %29 : vector<8x128xf32> to vector<8x128xbf16>
    %c0_12 = arith.constant 0 : index
    %c0_13 = arith.constant 0 : index
    %31 = vector.load %arg3[%c0_12, %c0_13] : memref<128x384xbf16, #tpu.memory_space<vmem>>, vector<128x384xbf16>
    %cst_14 = arith.constant dense<0.000000e+00> : vector<8x384xf32>
    %32 = tpu.matmul %30, %31, %cst_14 {dimension_numbers = #tpu.dot_dimension_numbers<[1], [0], [0], [1], [0, 0, 1, 1], [], []>} : vector<8x128xbf16>, vector<128x384xbf16>, vector<8x384xf32> -> vector<8x384xf32>
    %c0_15 = arith.constant 0 : index
    %c0_16 = arith.constant 0 : index
    %33 = vector.load %arg4[%c0_15, %c0_16] : memref<1x384xf32, #tpu.memory_space<vmem>>, vector<1x384xf32>
    %34 = vector.broadcast %33 : vector<1x384xf32> to vector<8x384xf32>
    %35 = arith.addf %32, %34 : vector<8x384xf32>
    %36 = arith.truncf %35 : vector<8x384xf32> to vector<8x384xbf16>
    %37 = vector.extract_strided_slice %36 {offsets = [0, 0], sizes = [8, 128], strides = [1, 1]} : vector<8x384xbf16> to vector<8x128xbf16>
    %38 = vector.extract_strided_slice %36 {offsets = [0, 128], sizes = [8, 128], strides = [1, 1]} : vector<8x384xbf16> to vector<8x128xbf16>
    %39 = vector.extract_strided_slice %36 {offsets = [0, 256], sizes = [8, 128], strides = [1, 1]} : vector<8x384xbf16> to vector<8x128xbf16>
    %40 = vector.extract_strided_slice %37 {offsets = [0, 0], sizes = [8, 32], strides = [1, 1]} : vector<8x128xbf16> to vector<8x32xbf16>
    %41 = vector.extract_strided_slice %38 {offsets = [0, 0], sizes = [8, 32], strides = [1, 1]} : vector<8x128xbf16> to vector<8x32xbf16>
    %cst_17 = arith.constant dense<0.000000e+00> : vector<8x8xf32>
    %42 = tpu.matmul %40, %41, %cst_17 {dimension_numbers = #tpu.dot_dimension_numbers<[1], [1], [0], [0], [0, 0, 1, 0], [], []>} : vector<8x32xbf16>, vector<8x32xbf16>, vector<8x8xf32> -> vector<8x8xf32>
    %43 = vector.extract_strided_slice %37 {offsets = [0, 32], sizes = [8, 32], strides = [1, 1]} : vector<8x128xbf16> to vector<8x32xbf16>
    %44 = vector.extract_strided_slice %38 {offsets = [0, 32], sizes = [8, 32], strides = [1, 1]} : vector<8x128xbf16> to vector<8x32xbf16>
    %cst_18 = arith.constant dense<0.000000e+00> : vector<8x8xf32>
    %45 = tpu.matmul %43, %44, %cst_18 {dimension_numbers = #tpu.dot_dimension_numbers<[1], [1], [0], [0], [0, 0, 1, 0], [], []>} : vector<8x32xbf16>, vector<8x32xbf16>, vector<8x8xf32> -> vector<8x8xf32>
    %46 = vector.extract_strided_slice %37 {offsets = [0, 64], sizes = [8, 32], strides = [1, 1]} : vector<8x128xbf16> to vector<8x32xbf16>
    %47 = vector.extract_strided_slice %38 {offsets = [0, 64], sizes = [8, 32], strides = [1, 1]} : vector<8x128xbf16> to vector<8x32xbf16>
    %cst_19 = arith.constant dense<0.000000e+00> : vector<8x8xf32>
    %48 = tpu.matmul %46, %47, %cst_19 {dimension_numbers = #tpu.dot_dimension_numbers<[1], [1], [0], [0], [0, 0, 1, 0], [], []>} : vector<8x32xbf16>, vector<8x32xbf16>, vector<8x8xf32> -> vector<8x8xf32>
    %49 = vector.extract_strided_slice %37 {offsets = [0, 96], sizes = [8, 32], strides = [1, 1]} : vector<8x128xbf16> to vector<8x32xbf16>
    %50 = vector.extract_strided_slice %38 {offsets = [0, 96], sizes = [8, 32], strides = [1, 1]} : vector<8x128xbf16> to vector<8x32xbf16>
    %cst_20 = arith.constant dense<0.000000e+00> : vector<8x8xf32>
    %51 = tpu.matmul %49, %50, %cst_20 {dimension_numbers = #tpu.dot_dimension_numbers<[1], [1], [0], [0], [0, 0, 1, 0], [], []>} : vector<8x32xbf16>, vector<8x32xbf16>, vector<8x8xf32> -> vector<8x8xf32>
    %52 = tpu.concatenate %42, %45, %48, %51 in 0 : vector<8x8xf32>, vector<8x8xf32>, vector<8x8xf32>, vector<8x8xf32> -> vector<32x8xf32>
    %cst_21 = arith.constant dense<0xFF800000> : vector<32xf32>
    %53 = vector.multi_reduction <maximumf>, %52, %cst_21 [1] : vector<32x8xf32> to vector<32xf32>
    %54 = vector.shape_cast %53 : vector<32xf32> to vector<32x1xf32>
    %55 = vector.broadcast %54 : vector<32x1xf32> to vector<32x8xf32>
    %56 = arith.subf %52, %55 : vector<32x8xf32>
    %57 = math.exp %56 : vector<32x8xf32>
    %cst_22 = arith.constant dense<0.000000e+00> : vector<32xf32>
    %58 = vector.multi_reduction <add>, %57, %cst_22 [1] : vector<32x8xf32> to vector<32xf32>
    %59 = vector.shape_cast %58 : vector<32xf32> to vector<32x1xf32>
    %60 = tpu.reciprocal %59 {approx = true} : vector<32x1xf32> -> vector<32x1xf32>
    %61 = vector.broadcast %60 : vector<32x1xf32> to vector<32x8xf32>
    %62 = arith.mulf %57, %61 : vector<32x8xf32>
    %63 = arith.truncf %62 : vector<32x8xf32> to vector<32x8xbf16>
    %64 = vector.extract_strided_slice %63 {offsets = [0, 0], sizes = [8, 8], strides = [1, 1]} : vector<32x8xbf16> to vector<8x8xbf16>
    %65 = vector.extract_strided_slice %39 {offsets = [0, 0], sizes = [8, 32], strides = [1, 1]} : vector<8x128xbf16> to vector<8x32xbf16>
    %cst_23 = arith.constant dense<0.000000e+00> : vector<8x32xf32>
    %66 = tpu.matmul %64, %65, %cst_23 {dimension_numbers = #tpu.dot_dimension_numbers<[1], [0], [0], [1], [0, 0, 1, 1], [], []>} : vector<8x8xbf16>, vector<8x32xbf16>, vector<8x32xf32> -> vector<8x32xf32>
    %67 = vector.extract_strided_slice %63 {offsets = [8, 0], sizes = [8, 8], strides = [1, 1]} : vector<32x8xbf16> to vector<8x8xbf16>
    %68 = vector.extract_strided_slice %39 {offsets = [0, 32], sizes = [8, 32], strides = [1, 1]} : vector<8x128xbf16> to vector<8x32xbf16>
    %cst_24 = arith.constant dense<0.000000e+00> : vector<8x32xf32>
    %69 = tpu.matmul %67, %68, %cst_24 {dimension_numbers = #tpu.dot_dimension_numbers<[1], [0], [0], [1], [0, 0, 1, 1], [], []>} : vector<8x8xbf16>, vector<8x32xbf16>, vector<8x32xf32> -> vector<8x32xf32>
    %70 = vector.extract_strided_slice %63 {offsets = [16, 0], sizes = [8, 8], strides = [1, 1]} : vector<32x8xbf16> to vector<8x8xbf16>
    %71 = vector.extract_strided_slice %39 {offsets = [0, 64], sizes = [8, 32], strides = [1, 1]} : vector<8x128xbf16> to vector<8x32xbf16>
    %cst_25 = arith.constant dense<0.000000e+00> : vector<8x32xf32>
    %72 = tpu.matmul %70, %71, %cst_25 {dimension_numbers = #tpu.dot_dimension_numbers<[1], [0], [0], [1], [0, 0, 1, 1], [], []>} : vector<8x8xbf16>, vector<8x32xbf16>, vector<8x32xf32> -> vector<8x32xf32>
    %73 = vector.extract_strided_slice %63 {offsets = [24, 0], sizes = [8, 8], strides = [1, 1]} : vector<32x8xbf16> to vector<8x8xbf16>
    %74 = vector.extract_strided_slice %39 {offsets = [0, 96], sizes = [8, 32], strides = [1, 1]} : vector<8x128xbf16> to vector<8x32xbf16>
    %cst_26 = arith.constant dense<0.000000e+00> : vector<8x32xf32>
    %75 = tpu.matmul %73, %74, %cst_26 {dimension_numbers = #tpu.dot_dimension_numbers<[1], [0], [0], [1], [0, 0, 1, 1], [], []>} : vector<8x8xbf16>, vector<8x32xbf16>, vector<8x32xf32> -> vector<8x32xf32>
    %76 = tpu.concatenate %66, %69, %72, %75 in 1 : vector<8x32xf32>, vector<8x32xf32>, vector<8x32xf32>, vector<8x32xf32> -> vector<8x128xf32>
    %77 = arith.truncf %76 : vector<8x128xf32> to vector<8x128xbf16>
    %c0_27 = arith.constant 0 : index
    %c0_28 = arith.constant 0 : index
    %78 = vector.load %arg17[%c0_27, %c0_28] : memref<8x128xbf16, #tpu.memory_space<vmem>>, vector<8x128xbf16>
    tpu.vector_store %arg17[%c0_27, %c0_28], %77 {strides = array<i32>} : memref<8x128xbf16, #tpu.memory_space<vmem>>, vector<8x128xbf16>,
    %c0_29 = arith.constant 0 : index
    %c0_30 = arith.constant 0 : index
    %79 = vector.load %arg17[%c0_29, %c0_30] : memref<8x128xbf16, #tpu.memory_space<vmem>>, vector<8x128xbf16>
    %c0_31 = arith.constant 0 : index
    %c0_32 = arith.constant 0 : index
    %80 = vector.load %arg5[%c0_31, %c0_32] : memref<128x128xbf16, #tpu.memory_space<vmem>>, vector<128x128xbf16>
    %cst_33 = arith.constant dense<0.000000e+00> : vector<8x128xf32>
    %81 = tpu.matmul %79, %80, %cst_33 {dimension_numbers = #tpu.dot_dimension_numbers<[1], [0], [0], [1], [0, 0, 1, 1], [], []>} : vector<8x128xbf16>, vector<128x128xbf16>, vector<8x128xf32> -> vector<8x128xf32>
    %c0_34 = arith.constant 0 : index
    %c0_35 = arith.constant 0 : index
    %82 = vector.load %arg6[%c0_34, %c0_35] : memref<1x128xf32, #tpu.memory_space<vmem>>, vector<1x128xf32>
    %83 = vector.broadcast %82 : vector<1x128xf32> to vector<8x128xf32>
    %84 = arith.addf %81, %83 : vector<8x128xf32>
    %85 = arith.addf %1, %84 : vector<8x128xf32>
    %c1_36 = arith.constant 1 : index
    %c0_37 = arith.constant 0 : index
    %86 = memref.load %arg15[%c1_36, %c0_37] : memref<3x2xf32, #tpu.memory_space<smem>>
    %c1_38 = arith.constant 1 : index
    %c1_39 = arith.constant 1 : index
    %87 = memref.load %arg15[%c1_38, %c1_39] : memref<3x2xf32, #tpu.memory_space<smem>>
    %cst_40 = arith.constant dense<0.000000e+00> : vector<8xf32>
    %88 = vector.multi_reduction <add>, %85, %cst_40 [1] : vector<8x128xf32> to vector<8xf32>
    %89 = vector.shape_cast %88 : vector<8xf32> to vector<8x1xf32>
    %cst_41 = arith.constant 1.280000e+02 : f32
    %90 = vector.broadcast %cst_41 : f32 to vector<8x1xf32>
    %91 = arith.divf %89, %90 : vector<8x1xf32>
    %92 = vector.broadcast %91 : vector<8x1xf32> to vector<8x128xf32>
    %93 = arith.subf %85, %92 : vector<8x128xf32>
    %94 = arith.mulf %93, %93 : vector<8x128xf32>
    %cst_42 = arith.constant dense<0.000000e+00> : vector<8xf32>
    %95 = vector.multi_reduction <add>, %94, %cst_42 [1] : vector<8x128xf32> to vector<8xf32>
    %96 = vector.shape_cast %95 : vector<8xf32> to vector<8x1xf32>
    %cst_43 = arith.constant 0.00787401571 : f32
    %97 = vector.broadcast %cst_43 : f32 to vector<8x1xf32>
    %98 = arith.mulf %96, %97 : vector<8x1xf32>
    %99 = math.sqrt %98 : vector<8x1xf32>
    %cst_44 = arith.constant 9.99999997E-7 : f32
    %100 = vector.broadcast %cst_44 : f32 to vector<8x1xf32>
    %101 = arith.addf %99, %100 : vector<8x1xf32>
    %102 = tpu.reciprocal %101 : vector<8x1xf32> -> vector<8x1xf32>
    %103 = vector.broadcast %91 : vector<8x1xf32> to vector<8x128xf32>
    %104 = arith.subf %85, %103 : vector<8x128xf32>
    %105 = vector.broadcast %86 : f32 to vector<8x128xf32>
    %106 = arith.mulf %105, %104 : vector<8x128xf32>
    %107 = vector.broadcast %102 : vector<8x1xf32> to vector<8x128xf32>
    %108 = arith.mulf %106, %107 : vector<8x128xf32>
    %109 = vector.broadcast %87 : f32 to vector<8x128xf32>
    %110 = arith.addf %108, %109 : vector<8x128xf32>
    %111 = arith.truncf %110 : vector<8x128xf32> to vector<8x128xbf16>
    %c0_45 = arith.constant 0 : index
    %c0_46 = arith.constant 0 : index
    %112 = vector.load %arg7[%c0_45, %c0_46] : memref<128x384xbf16, #tpu.memory_space<vmem>>, vector<128x128xbf16>
    %cst_47 = arith.constant dense<0.000000e+00> : vector<8x128xf32>
    %113 = tpu.matmul %111, %112, %cst_47 {dimension_numbers = #tpu.dot_dimension_numbers<[1], [0], [0], [1], [0, 0, 1, 1], [], []>} : vector<8x128xbf16>, vector<128x128xbf16>, vector<8x128xf32> -> vector<8x128xf32>
    %c0_48 = arith.constant 0 : index
    %c0_49 = arith.constant 0 : index
    %114 = vector.load %arg8[%c0_48, %c0_49] : memref<1x384xf32, #tpu.memory_space<vmem>>, vector<1x128xf32>
    %115 = vector.broadcast %114 : vector<1x128xf32> to vector<8x128xf32>
    %116 = arith.addf %113, %115 : vector<8x128xf32>
    %117 = arith.truncf %116 : vector<8x128xf32> to vector<8x128xbf16>
    %c0_50 = arith.constant 0 : index
    %c128 = arith.constant 128 : index
    %118 = vector.load %arg7[%c0_50, %c128] : memref<128x384xbf16, #tpu.memory_space<vmem>>, vector<128x256xbf16>
    %cst_51 = arith.constant dense<0.000000e+00> : vector<16x256xf32>
    %119 = tpu.matmul %4, %118, %cst_51 {dimension_numbers = #tpu.dot_dimension_numbers<[1], [0], [0], [1], [0, 0, 1, 1], [], []>} : vector<16x128xbf16>, vector<128x256xbf16>, vector<16x256xf32> -> vector<16x256xf32>
    %c0_52 = arith.constant 0 : index
    %c128_53 = arith.constant 128 : index
    %120 = vector.load %arg8[%c0_52, %c128_53] : memref<1x384xf32, #tpu.memory_space<vmem>>, vector<1x256xf32>
    %121 = vector.broadcast %120 : vector<1x256xf32> to vector<16x256xf32>
    %122 = arith.addf %119, %121 : vector<16x256xf32>
    %123 = arith.truncf %122 : vector<16x256xf32> to vector<16x256xbf16>
    %124 = vector.extract_strided_slice %123 {offsets = [0, 0], sizes = [16, 128], strides = [1, 1]} : vector<16x256xbf16> to vector<16x128xbf16>
    %125 = vector.extract_strided_slice %123 {offsets = [0, 128], sizes = [16, 128], strides = [1, 1]} : vector<16x256xbf16> to vector<16x128xbf16>
    %126 = vector.extract_strided_slice %117 {offsets = [0, 0], sizes = [8, 32], strides = [1, 1]} : vector<8x128xbf16> to vector<8x32xbf16>
    %127 = vector.extract_strided_slice %124 {offsets = [0, 0], sizes = [16, 32], strides = [1, 1]} : vector<16x128xbf16> to vector<16x32xbf16>
    %cst_54 = arith.constant dense<0.000000e+00> : vector<8x16xf32>
    %128 = tpu.matmul %126, %127, %cst_54 {dimension_numbers = #tpu.dot_dimension_numbers<[1], [1], [0], [0], [0, 0, 1, 0], [], []>} : vector<8x32xbf16>, vector<16x32xbf16>, vector<8x16xf32> -> vector<8x16xf32>
    %129 = vector.extract_strided_slice %117 {offsets = [0, 32], sizes = [8, 32], strides = [1, 1]} : vector<8x128xbf16> to vector<8x32xbf16>
    %130 = vector.extract_strided_slice %124 {offsets = [0, 32], sizes = [16, 32], strides = [1, 1]} : vector<16x128xbf16> to vector<16x32xbf16>
    %cst_55 = arith.constant dense<0.000000e+00> : vector<8x16xf32>
    %131 = tpu.matmul %129, %130, %cst_55 {dimension_numbers = #tpu.dot_dimension_numbers<[1], [1], [0], [0], [0, 0, 1, 0], [], []>} : vector<8x32xbf16>, vector<16x32xbf16>, vector<8x16xf32> -> vector<8x16xf32>
    %132 = vector.extract_strided_slice %117 {offsets = [0, 64], sizes = [8, 32], strides = [1, 1]} : vector<8x128xbf16> to vector<8x32xbf16>
    %133 = vector.extract_strided_slice %124 {offsets = [0, 64], sizes = [16, 32], strides = [1, 1]} : vector<16x128xbf16> to vector<16x32xbf16>
    %cst_56 = arith.constant dense<0.000000e+00> : vector<8x16xf32>
    %134 = tpu.matmul %132, %133, %cst_56 {dimension_numbers = #tpu.dot_dimension_numbers<[1], [1], [0], [0], [0, 0, 1, 0], [], []>} : vector<8x32xbf16>, vector<16x32xbf16>, vector<8x16xf32> -> vector<8x16xf32>
    %135 = vector.extract_strided_slice %117 {offsets = [0, 96], sizes = [8, 32], strides = [1, 1]} : vector<8x128xbf16> to vector<8x32xbf16>
    %136 = vector.extract_strided_slice %124 {offsets = [0, 96], sizes = [16, 32], strides = [1, 1]} : vector<16x128xbf16> to vector<16x32xbf16>
    %cst_57 = arith.constant dense<0.000000e+00> : vector<8x16xf32>
    %137 = tpu.matmul %135, %136, %cst_57 {dimension_numbers = #tpu.dot_dimension_numbers<[1], [1], [0], [0], [0, 0, 1, 0], [], []>} : vector<8x32xbf16>, vector<16x32xbf16>, vector<8x16xf32> -> vector<8x16xf32>
    %138 = tpu.concatenate %128, %131, %134, %137 in 0 : vector<8x16xf32>, vector<8x16xf32>, vector<8x16xf32>, vector<8x16xf32> -> vector<32x16xf32>
    %cst_58 = arith.constant dense<0xFF800000> : vector<32xf32>
    %139 = vector.multi_reduction <maximumf>, %138, %cst_58 [1] : vector<32x16xf32> to vector<32xf32>
    %140 = vector.shape_cast %139 : vector<32xf32> to vector<32x1xf32>
    %141 = vector.broadcast %140 : vector<32x1xf32> to vector<32x16xf32>
    %142 = arith.subf %138, %141 : vector<32x16xf32>
    %143 = math.exp %142 : vector<32x16xf32>
    %cst_59 = arith.constant dense<0.000000e+00> : vector<32xf32>
    %144 = vector.multi_reduction <add>, %143, %cst_59 [1] : vector<32x16xf32> to vector<32xf32>
    %145 = vector.shape_cast %144 : vector<32xf32> to vector<32x1xf32>
    %146 = tpu.reciprocal %145 {approx = true} : vector<32x1xf32> -> vector<32x1xf32>
    %147 = vector.broadcast %146 : vector<32x1xf32> to vector<32x16xf32>
    %148 = arith.mulf %143, %147 : vector<32x16xf32>
    %149 = arith.truncf %148 : vector<32x16xf32> to vector<32x16xbf16>
    %150 = vector.extract_strided_slice %149 {offsets = [0, 0], sizes = [8, 16], strides = [1, 1]} : vector<32x16xbf16> to vector<8x16xbf16>
    %151 = vector.extract_strided_slice %125 {offsets = [0, 0], sizes = [16, 32], strides = [1, 1]} : vector<16x128xbf16> to vector<16x32xbf16>
    %cst_60 = arith.constant dense<0.000000e+00> : vector<8x32xf32>
    %152 = tpu.matmul %150, %151, %cst_60 {dimension_numbers = #tpu.dot_dimension_numbers<[1], [0], [0], [1], [0, 0, 1, 1], [], []>} : vector<8x16xbf16>, vector<16x32xbf16>, vector<8x32xf32> -> vector<8x32xf32>
    %153 = vector.extract_strided_slice %149 {offsets = [8, 0], sizes = [8, 16], strides = [1, 1]} : vector<32x16xbf16> to vector<8x16xbf16>
    %154 = vector.extract_strided_slice %125 {offsets = [0, 32], sizes = [16, 32], strides = [1, 1]} : vector<16x128xbf16> to vector<16x32xbf16>
    %cst_61 = arith.constant dense<0.000000e+00> : vector<8x32xf32>
    %155 = tpu.matmul %153, %154, %cst_61 {dimension_numbers = #tpu.dot_dimension_numbers<[1], [0], [0], [1], [0, 0, 1, 1], [], []>} : vector<8x16xbf16>, vector<16x32xbf16>, vector<8x32xf32> -> vector<8x32xf32>
    %156 = vector.extract_strided_slice %149 {offsets = [16, 0], sizes = [8, 16], strides = [1, 1]} : vector<32x16xbf16> to vector<8x16xbf16>
    %157 = vector.extract_strided_slice %125 {offsets = [0, 64], sizes = [16, 32], strides = [1, 1]} : vector<16x128xbf16> to vector<16x32xbf16>
    %cst_62 = arith.constant dense<0.000000e+00> : vector<8x32xf32>
    %158 = tpu.matmul %156, %157, %cst_62 {dimension_numbers = #tpu.dot_dimension_numbers<[1], [0], [0], [1], [0, 0, 1, 1], [], []>} : vector<8x16xbf16>, vector<16x32xbf16>, vector<8x32xf32> -> vector<8x32xf32>
    %159 = vector.extract_strided_slice %149 {offsets = [24, 0], sizes = [8, 16], strides = [1, 1]} : vector<32x16xbf16> to vector<8x16xbf16>
    %160 = vector.extract_strided_slice %125 {offsets = [0, 96], sizes = [16, 32], strides = [1, 1]} : vector<16x128xbf16> to vector<16x32xbf16>
    %cst_63 = arith.constant dense<0.000000e+00> : vector<8x32xf32>
    %161 = tpu.matmul %159, %160, %cst_63 {dimension_numbers = #tpu.dot_dimension_numbers<[1], [0], [0], [1], [0, 0, 1, 1], [], []>} : vector<8x16xbf16>, vector<16x32xbf16>, vector<8x32xf32> -> vector<8x32xf32>
    %162 = tpu.concatenate %152, %155, %158, %161 in 1 : vector<8x32xf32>, vector<8x32xf32>, vector<8x32xf32>, vector<8x32xf32> -> vector<8x128xf32>
    %163 = arith.truncf %162 : vector<8x128xf32> to vector<8x128xbf16>
    %c0_64 = arith.constant 0 : index
    %c0_65 = arith.constant 0 : index
    %164 = vector.load %arg17[%c0_64, %c0_65] : memref<8x128xbf16, #tpu.memory_space<vmem>>, vector<8x128xbf16>
    tpu.vector_store %arg17[%c0_64, %c0_65], %163 {strides = array<i32>} : memref<8x128xbf16, #tpu.memory_space<vmem>>, vector<8x128xbf16>,
    %c0_66 = arith.constant 0 : index
    %c0_67 = arith.constant 0 : index
    %165 = vector.load %arg17[%c0_66, %c0_67] : memref<8x128xbf16, #tpu.memory_space<vmem>>, vector<8x128xbf16>
    %c0_68 = arith.constant 0 : index
    %c0_69 = arith.constant 0 : index
    %166 = vector.load %arg9[%c0_68, %c0_69] : memref<128x128xbf16, #tpu.memory_space<vmem>>, vector<128x128xbf16>
    %cst_70 = arith.constant dense<0.000000e+00> : vector<8x128xf32>
    %167 = tpu.matmul %165, %166, %cst_70 {dimension_numbers = #tpu.dot_dimension_numbers<[1], [0], [0], [1], [0, 0, 1, 1], [], []>} : vector<8x128xbf16>, vector<128x128xbf16>, vector<8x128xf32> -> vector<8x128xf32>
    %c0_71 = arith.constant 0 : index
    %c0_72 = arith.constant 0 : index
    %168 = vector.load %arg10[%c0_71, %c0_72] : memref<1x128xf32, #tpu.memory_space<vmem>>, vector<1x128xf32>
    %169 = vector.broadcast %168 : vector<1x128xf32> to vector<8x128xf32>
    %170 = arith.addf %167, %169 : vector<8x128xf32>
    %171 = arith.addf %85, %170 : vector<8x128xf32>
    %c2 = arith.constant 2 : index
    %c0_73 = arith.constant 0 : index
    %172 = memref.load %arg15[%c2, %c0_73] : memref<3x2xf32, #tpu.memory_space<smem>>
    %c2_74 = arith.constant 2 : index
    %c1_75 = arith.constant 1 : index
    %173 = memref.load %arg15[%c2_74, %c1_75] : memref<3x2xf32, #tpu.memory_space<smem>>
    %cst_76 = arith.constant dense<0.000000e+00> : vector<8xf32>
    %174 = vector.multi_reduction <add>, %171, %cst_76 [1] : vector<8x128xf32> to vector<8xf32>
    %175 = vector.shape_cast %174 : vector<8xf32> to vector<8x1xf32>
    %cst_77 = arith.constant 1.280000e+02 : f32
    %176 = vector.broadcast %cst_77 : f32 to vector<8x1xf32>
    %177 = arith.divf %175, %176 : vector<8x1xf32>
    %178 = vector.broadcast %177 : vector<8x1xf32> to vector<8x128xf32>
    %179 = arith.subf %171, %178 : vector<8x128xf32>
    %180 = arith.mulf %179, %179 : vector<8x128xf32>
    %cst_78 = arith.constant dense<0.000000e+00> : vector<8xf32>
    %181 = vector.multi_reduction <add>, %180, %cst_78 [1] : vector<8x128xf32> to vector<8xf32>
    %182 = vector.shape_cast %181 : vector<8xf32> to vector<8x1xf32>
    %cst_79 = arith.constant 0.00787401571 : f32
    %183 = vector.broadcast %cst_79 : f32 to vector<8x1xf32>
    %184 = arith.mulf %182, %183 : vector<8x1xf32>
    %185 = math.sqrt %184 : vector<8x1xf32>
    %cst_80 = arith.constant 9.99999997E-7 : f32
    %186 = vector.broadcast %cst_80 : f32 to vector<8x1xf32>
    %187 = arith.addf %185, %186 : vector<8x1xf32>
    %188 = tpu.reciprocal %187 : vector<8x1xf32> -> vector<8x1xf32>
    %189 = vector.broadcast %177 : vector<8x1xf32> to vector<8x128xf32>
    %190 = arith.subf %171, %189 : vector<8x128xf32>
    %191 = vector.broadcast %172 : f32 to vector<8x128xf32>
    %192 = arith.mulf %191, %190 : vector<8x128xf32>
    %193 = vector.broadcast %188 : vector<8x1xf32> to vector<8x128xf32>
    %194 = arith.mulf %192, %193 : vector<8x128xf32>
    %195 = vector.broadcast %173 : f32 to vector<8x128xf32>
    %196 = arith.addf %194, %195 : vector<8x128xf32>
    %197 = arith.truncf %196 : vector<8x128xf32> to vector<8x128xbf16>
    %cst_81 = arith.constant 0.000000e+00 : f32
    %198 = vector.broadcast %cst_81 : f32 to vector<8x128xf32>
    %c0_82 = arith.constant 0 : index
    %c0_83 = arith.constant 0 : index
    %c0_84 = arith.constant 0 : index
    %199 = vector.load %arg11[%c0_82, %c0_83, %c0_84] : memref<1x128x256xbf16, #tpu.memory_space<vmem>>, vector<1x128x256xbf16>
    %200 = vector.shape_cast %199 : vector<1x128x256xbf16> to vector<128x256xbf16>
    %cst_85 = arith.constant dense<0.000000e+00> : vector<8x256xf32>
    %201 = tpu.matmul %197, %200, %cst_85 {dimension_numbers = #tpu.dot_dimension_numbers<[1], [0], [0], [1], [0, 0, 1, 1], [], []>} : vector<8x128xbf16>, vector<128x256xbf16>, vector<8x256xf32> -> vector<8x256xf32>
    %c0_86 = arith.constant 0 : index
    %c0_87 = arith.constant 0 : index
    %c0_88 = arith.constant 0 : index
    %202 = vector.load %arg12[%c0_86, %c0_87, %c0_88] : memref<1x1x256xf32, #tpu.memory_space<vmem>>, vector<1x1x256xf32>
    %203 = vector.shape_cast %202 : vector<1x1x256xf32> to vector<1x256xf32>
    %204 = vector.broadcast %203 : vector<1x256xf32> to vector<8x256xf32>
    %205 = arith.addf %201, %204 : vector<8x256xf32>
    %cst_89 = arith.constant 0.000000e+00 : f32
    %206 = vector.broadcast %cst_89 : f32 to vector<8x256xf32>
    %207 = arith.maximumf %205, %206 : vector<8x256xf32>
    %208 = arith.truncf %207 : vector<8x256xf32> to vector<8x256xbf16>
    %c0_90 = arith.constant 0 : index
    %c0_91 = arith.constant 0 : index
    %c0_92 = arith.constant 0 : index
    %209 = vector.load %arg13[%c0_90, %c0_91, %c0_92] : memref<1x256x128xbf16, #tpu.memory_space<vmem>>, vector<1x256x128xbf16>
    %210 = vector.shape_cast %209 : vector<1x256x128xbf16> to vector<256x128xbf16>
    %cst_93 = arith.constant dense<0.000000e+00> : vector<8x128xf32>
    %211 = tpu.matmul %208, %210, %cst_93 {dimension_numbers = #tpu.dot_dimension_numbers<[1], [0], [0], [1], [0, 0, 1, 1], [], []>} : vector<8x256xbf16>, vector<256x128xbf16>, vector<8x128xf32> -> vector<8x128xf32>
    %212 = arith.addf %198, %211 : vector<8x128xf32>
    %c0_94 = arith.constant 0 : index
    %c0_95 = arith.constant 0 : index
    %213 = vector.load %arg14[%c0_94, %c0_95] : memref<1x128xf32, #tpu.memory_space<vmem>>, vector<1x128xf32>
    %214 = vector.broadcast %213 : vector<1x128xf32> to vector<8x128xf32>
    %215 = arith.addf %212, %214 : vector<8x128xf32>
    %216 = arith.addf %171, %215 : vector<8x128xf32>
    %217 = vector.shape_cast %216 : vector<8x128xf32> to vector<1x8x128xf32>
    %c0_96 = arith.constant 0 : index
    %c0_97 = arith.constant 0 : index
    %c0_98 = arith.constant 0 : index
    %218 = vector.load %arg16[%c0_96, %c0_97, %c0_98] : memref<1x8x128xf32, #tpu.memory_space<vmem>>, vector<1x8x128xf32>
    tpu.vector_store %arg16[%c0_96, %c0_97, %c0_98], %217 {strides = array<i32>} : memref<1x8x128xf32, #tpu.memory_space<vmem>>, vector<1x8x128xf32>,
    return
  }
  func.func @transform_0(%arg0: i32) -> (i32, i32, i32) {
    %c0_i32 = arith.constant 0 : i32
    %c0_i32_0 = arith.constant 0 : i32
    %c0_i32_1 = arith.constant 0 : i32
    return %arg0, %c0_i32, %c0_i32_0 : i32, i32, i32
  }
  func.func @transform_1(%arg0: i32) -> (i32, i32, i32) {
    %c0_i32 = arith.constant 0 : i32
    %c0_i32_0 = arith.constant 0 : i32
    %c0_i32_1 = arith.constant 0 : i32
    return %arg0, %c0_i32, %c0_i32_0 : i32, i32, i32
  }
  func.func @transform_2(%arg0: i32) -> (i32, i32) {
    %c0_i32 = arith.constant 0 : i32
    %c0_i32_0 = arith.constant 0 : i32
    %c0_i32_1 = arith.constant 0 : i32
    return %c0_i32, %c0_i32_0 : i32, i32
  }
  func.func @transform_3(%arg0: i32) -> (i32, i32) {
    %c0_i32 = arith.constant 0 : i32
    %c0_i32_0 = arith.constant 0 : i32
    %c0_i32_1 = arith.constant 0 : i32
    return %c0_i32, %c0_i32_0 : i32, i32
  }
  func.func @transform_4(%arg0: i32) -> (i32, i32) {
    %c0_i32 = arith.constant 0 : i32
    %c0_i32_0 = arith.constant 0 : i32
    %c0_i32_1 = arith.constant 0 : i32
    return %c0_i32, %c0_i32_0 : i32, i32
  }
  func.func @transform_5(%arg0: i32) -> (i32, i32) {
    %c0_i32 = arith.constant 0 : i32
    %c0_i32_0 = arith.constant 0 : i32
    %c0_i32_1 = arith.constant 0 : i32
    return %c0_i32, %c0_i32_0 : i32, i32
  }
  func.func @transform_6(%arg0: i32) -> (i32, i32) {
    %c0_i32 = arith.constant 0 : i32
    %c0_i32_0 = arith.constant 0 : i32
    %c0_i32_1 = arith.constant 0 : i32
    return %c0_i32, %c0_i32_0 : i32, i32
  }
  func.func @transform_7(%arg0: i32) -> (i32, i32) {
    %c0_i32 = arith.constant 0 : i32
    %c0_i32_0 = arith.constant 0 : i32
    %c0_i32_1 = arith.constant 0 : i32
    return %c0_i32, %c0_i32_0 : i32, i32
  }
  func.func @transform_8(%arg0: i32) -> (i32, i32) {
    %c0_i32 = arith.constant 0 : i32
    %c0_i32_0 = arith.constant 0 : i32
    %c0_i32_1 = arith.constant 0 : i32
    return %c0_i32, %c0_i32_0 : i32, i32
  }
  func.func @transform_9(%arg0: i32) -> (i32, i32) {
    %c0_i32 = arith.constant 0 : i32
    %c0_i32_0 = arith.constant 0 : i32
    %c0_i32_1 = arith.constant 0 : i32
    return %c0_i32, %c0_i32_0 : i32, i32
  }
  func.func @transform_10(%arg0: i32) -> (i32, i32, i32) {
    %c0_i32 = arith.constant 0 : i32
    %c0_i32_0 = arith.constant 0 : i32
    %c0_i32_1 = arith.constant 0 : i32
    %c0_i32_2 = arith.constant 0 : i32
    return %c0_i32, %c0_i32_0, %c0_i32_1 : i32, i32, i32
  }
  func.func @transform_11(%arg0: i32) -> (i32, i32, i32) {
    %c0_i32 = arith.constant 0 : i32
    %c0_i32_0 = arith.constant 0 : i32
    %c0_i32_1 = arith.constant 0 : i32
    %c0_i32_2 = arith.constant 0 : i32
    return %c0_i32, %c0_i32_0, %c0_i32_1 : i32, i32, i32
  }
  func.func @transform_12(%arg0: i32) -> (i32, i32, i32) {
    %c0_i32 = arith.constant 0 : i32
    %c0_i32_0 = arith.constant 0 : i32
    %c0_i32_1 = arith.constant 0 : i32
    %c0_i32_2 = arith.constant 0 : i32
    return %c0_i32, %c0_i32_0, %c0_i32_1 : i32, i32, i32
  }
  func.func @transform_13(%arg0: i32) -> (i32, i32) {
    %c0_i32 = arith.constant 0 : i32
    %c0_i32_0 = arith.constant 0 : i32
    %c0_i32_1 = arith.constant 0 : i32
    return %c0_i32, %c0_i32_0 : i32, i32
  }
  func.func @transform_14(%arg0: i32) -> (i32, i32) {
    %c0_i32 = arith.constant 0 : i32
    %c0_i32_0 = arith.constant 0 : i32
    %c0_i32_1 = arith.constant 0 : i32
    return %c0_i32, %c0_i32_0 : i32, i32
  }
  func.func @transform_15(%arg0: i32) -> (i32, i32, i32) {
    %c0_i32 = arith.constant 0 : i32
    %c0_i32_0 = arith.constant 0 : i32
    %c0_i32_1 = arith.constant 0 : i32
    return %arg0, %c0_i32, %c0_i32_0 : i32, i32, i32
  }
}

</mosaic_0001>

<bundles_post_ra>
// kernel: tpu_custom_call.1
= control target key start
LH: loop header
LB: loop body
LE: loop exit
PB: predicated region body
PF: predicated region fallthrough
CT: control target
= control target key end

     0   :  { %s3963_s0 = inlined_call_operand.hbm [shape: f32[2,8,128], index: 0, kind: input, shape index: {}]   ;;  %s3964_s1 = inlined_call_operand.hbm [shape: f32[2,16,128], index: 1, kind: input, shape index: {}]   ;;  %s3965_s2 = inlined_call_operand.hbm [shape: bf16[128,384], index: 2, kind: input, shape index: {}]   ;;  %s3966_s3 = inlined_call_operand.vmem [shape: f32[1,384], index: 3, kind: input, shape index: {}]   ;;  %s3967_s4 = inlined_call_operand.hbm [shape: bf16[128,128], index: 4, kind: input, shape index: {}]   ;;  %s3968_s5 = inlined_call_operand.hbm [shape: f32[1,128], index: 5, kind: input, shape index: {}]   ;;  %s3969_s6 = inlined_call_operand.hbm [shape: bf16[128,384], index: 6, kind: input, shape index: {}]   ;;  %s3970_s7 = inlined_call_operand.vmem [shape: f32[1,384], index: 7, kind: input, shape index: {}]   ;;  %s3971_s8 = inlined_call_operand.hbm [shape: bf16[128,128], index: 8, kind: input, shape index: {}]   ;;  %s3972_s9 = inlined_call_operand.vmem [shape: f32[1,128], index: 9, kind: input, shape index: {}]   ;;  %s3973_s10 = inlined_call_operand.hbm [shape: bf16[1,128,256], index: 10, kind: input, shape index: {}]   ;;  %s3974_s11 = inlined_call_operand.vmem [shape: f32[1,1,256], index: 11, kind: input, shape index: {}]   ;;  %s3975_s12 = inlined_call_operand.hbm [shape: bf16[1,256,128], index: 12, kind: input, shape index: {}]   ;;  %s3976_s13 = inlined_call_operand.vmem [shape: f32[1,128], index: 13, kind: input, shape index: {}]   ;;  %s3977_s14 = inlined_call_operand.vmem [shape: f32[3,2], index: 14, kind: input, shape index: {}]   ;;  %s3978_s15 = inlined_call_operand.hbm [shape: f32[2,8,128], index: 15, kind: output, shape index: {}]  }
   0x1   :  { %3983 = sst [smem:[#allocation29_spill]] %s3965_s2 }
   0x2   :  { %3984 = sst [smem:[#allocation30_spill]] %s3966_s3 }
   0x3   :  { %3985 = sst [smem:[#allocation31_spill]] %s3967_s4 }
   0x4   :  { %3986 = sst [smem:[#allocation32_spill]] %s3968_s5 }
   0x5   :  { %3987 = sst [smem:[#allocation33_spill]] %s3969_s6 }
   0x6   :  { %3988 = sst [smem:[#allocation34_spill]] %s3970_s7 }
   0x7   :  { %3989 = sst [smem:[#allocation35_spill]] %s3971_s8 }
   0x8   :  { %3990 = sst [smem:[#allocation36_spill]] %s3972_s9 }
   0x9   :  { %3991 = sst [smem:[#allocation37_spill]] %s3973_s10 }
   0xa   :  { %3992 = sst [smem:[#allocation38_spill]] %s3974_s11 }
   0xb   :  { %3993 = sst [smem:[#allocation39_spill]] %s3975_s12 }
   0xc   :  { %3994 = sst [smem:[#allocation40_spill]] %s3976_s13 }
   0xd   :  { %3995 = sst [smem:[#allocation41_spill]] %s3977_s14 }
   0xe   :  { %3996 = sst [smem:[#allocation42_spill]] %s3978_s15 }
   0xf   :  { %20 = vsyncpa [#allocation4], 0 }
  0x10   :  { %22 = vsyncpa [#allocation4 + $0x1], 0 }
  0x11   :  { %23 = vsyncpa [#allocation8], 0 }
  0x12   :  { %25 = vsyncpa [#allocation8 + $0x1], 0 }
  0x13   :  { %26 = vsyncpa [#allocation11], 0 }
  0x14   :  { %27 = vsyncpa [#allocation14], 0 }
  0x15   :  { %28 = vsyncpa [#allocation17], 0 }
  0x16   :  { %29 = vsyncpa [#allocation6], 0 }
  0x17   :  { %30 = vsyncpa [#allocation5], 0 }
  0x18   :  { %32 = vsyncpa [#allocation5 + $0x1], 0  ;;  %s3578_s18 = smov 0   ;;  %s3580_s19 = smov 0  }
  0x19   :  { %s3582_s20 = smov 0   ;;  %s3584_s21 = smov 0  }
  0x1a LB: > { %s3997_s2 = sld [smem:[#allocation29_spill]]  ;;  %s3602_s25 = sadd.s32 4294967295, %s3478_s21   ;;  %s3478_s21 = sphi %s3584_s21, %s4024_s21   ;;  %s3474_s20 = sphi %s3582_s20, %s4023_s20   ;;  %s3470_s19 = sphi %s3580_s19, %s4022_s19   ;;  %s3466_s18 = sphi %s3578_s18, %s4021_s18  }
  0x1b   : > { %p2378_p0 = scmp.ge.s32.totalorder %s3478_s21, 1  ;;  %p59_p1 = scmp.eq.s32.totalorder %s3602_s25, 0 }
  0x1c   : > { %p394_p2 = scmp.lt.s32.totalorder %s3478_s21, 3  ;;  %s3480_s27 = smov [#allocation9]  }
  0x1d   : > { %s407_s28 = sshll.u32 %s3480_s27, 4  ;;  %s3999_s4 = sld [smem:[#allocation31_spill]]  ;;  %s408_s28 = int_to_ptr.vmem [resolvable:$true] %s407_s28 }
  0x1e   : > { %p3607_p3 = pnand %p2378_p0, %p394_p2  ;;  %s3481_s22 = smov [#allocation10]  }
  0x1f   : > { %s424_s23 = sshll.u32 %s3481_s22, 4  ;;  %s3482_s27 = smov 192   ;;  %s425_s23 = int_to_ptr.vmem [resolvable:$true] %s424_s23 }
  0x20   : > { %s405_s24 = sshll.u32 %s3997_s2, 4  ;;  %p2949_p4 = pneg %p3607_p3  ;;  %s406_s24 = int_to_ptr.hbm [resolvable:$true] %s405_s24 }
  0x21   : > { %s3483_s2 = smov 12   ;;  %s3484_s15 = smov 64  }
  0x22   : > { %p3619_p6 = pnand %p2949_p4, %p59_p1  ;;  %s3485_s29 = smov 4  }
  0x23   : > { %s422_s16 = sshll.u32 %s3999_s4, 4  ;;  %s4001_s6 = sld [smem:[#allocation33_spill]]  ;;  %s423_s16 = int_to_ptr.hbm [resolvable:$true] %s422_s16 }
  0x24   : > { %2952 = dma.hbm_to_vmem [thread:$0]  (!%p3619_p6), %s406_s24, 3072, %s408_s28, [#allocation8], %s3482_s27, %s3482_s27, %s3483_s2  }
  0x25   : > { %2955 = dma.hbm_to_vmem [thread:$0]  (!%p3619_p6), %s423_s16, 1024, %s425_s23, [#allocation11], %s3484_s15, %s3484_s15, %s3485_s29  }
  0x26   : > { %s3486_s11 = smov [#allocation13]   ;;  %s4002_s10 = sld [smem:[#allocation37_spill]] }
  0x27   : > { %s450_s22 = sshll.u32 %s3486_s11, 4  ;;  %s3487_s28 = smov [#allocation16]   ;;  %s451_s22 = int_to_ptr.vmem [resolvable:$true] %s450_s22 }
  0x28   : > { %s484_s3 = sshll.u32 %s3487_s28, 4  ;;  %s3981_s16 = smov 128   ;;  %s485_s3 = int_to_ptr.vmem [resolvable:$true] %s484_s3 }
  0x29   : > { %s448_s13 = sshll.u32 %s4001_s6, 4  ;;  %s3982_s23 = smov 8   ;;  %s449_s13 = int_to_ptr.hbm [resolvable:$true] %s448_s13 }
  0x2a   : > { %2961 = dma.hbm_to_vmem [thread:$0]  (!%p3619_p6), %s449_s13, 3072, %s451_s22, [#allocation14], %s3482_s27, %s3482_s27, %s3483_s2  }
  0x2b   : > { %s4003_s5 = sld [smem:[#allocation32_spill]]  ;;  %s3490_s9 = smov [#allocation12]  }
  0x2c   : > { %s482_s24 = sshll.u32 %s4002_s10, 4  ;;  %s439_s30 = sshll.u32 %s3490_s9, 4  ;;  %s483_s24 = int_to_ptr.hbm [resolvable:$true] %s482_s24  ;;  %s440_s30 = int_to_ptr.vmem [resolvable:$true] %s439_s30 }
  0x2d   : > { %2967 = dma.hbm_to_vmem [thread:$0]  (!%p3619_p6), %s483_s24, 2048, %s485_s3, [#allocation17], %s3981_s16, %s3981_s16, %s3982_s23  }
  0x2e   : > { %s4004_s8 = sld [smem:[#allocation35_spill]]  ;;  %s3491_s3 = smov [#allocation15]  }
  0x2f   : > { %s467_s22 = sshll.u32 %s3491_s3, 4  ;;  %s4005_s12 = sld [smem:[#allocation39_spill]]  ;;  %s468_s22 = int_to_ptr.vmem [resolvable:$true] %s467_s22 }
  0x30   : > { %s4006_s14 = sld [smem:[#allocation41_spill]]  ;;  %s3493_s13 = smov [#allocation19]  }
  0x31   : > { %s437_s7 = sshll.u32 %s4003_s5, 4  ;;  %s3671_s3 = sadd.s32 1, %s3478_s21   ;;  %s438_s7 = int_to_ptr.hbm [resolvable:$true] %s437_s7 }
  0x32   : > { %2958 = dma.hbm_to_vmem [thread:$0]  (!%p3619_p6), %s438_s7, 16, %s440_s30, [#allocation11]  }
  0x33   : > { %s3492_s30 = smov [#allocation18]   ;;  %s45_s24 = sadd.s32 1, %s3474_s20 }
  0x34   : > { %s465_s27 = sshll.u32 %s4004_s8, 4  ;;  %s501_s2 = sshll.u32 %s3492_s30, 4  ;;  %s466_s27 = int_to_ptr.hbm [resolvable:$true] %s465_s27  ;;  %s502_s2 = int_to_ptr.vmem [resolvable:$true] %s501_s2 }
  0x35   : > { %s499_s4 = sshll.u32 %s4005_s12, 4  ;;  %p52_p8 = scmp.ne.s32.totalorder %s3474_s20, %s3470_s19  ;;  %s500_s4 = int_to_ptr.hbm [resolvable:$true] %s499_s4 }
  0x36   : > { %2964 = dma.hbm_to_vmem [thread:$0]  (!%p3619_p6), %s466_s27, 1024, %s468_s22, [#allocation14], %s3484_s15, %s3484_s15, %s3485_s29  }
  0x37   : > { %s517_s9 = sshll.u32 %s4006_s14, 4  ;;  %s2377_s27 = sadd.s32 4294967294, %s3478_s21   ;;  %s518_s9 = int_to_ptr.vmem [resolvable:$true] %s517_s9 }
  0x38   : > { %2970 = dma.hbm_to_vmem [thread:$0]  (!%p3619_p6), %s500_s4, 2048, %s502_s2, [#allocation17], %s3484_s15, %s3484_s15, %s3485_s29  }
  0x39   : > { %2973 = dma.vmem_to_smem (!%p3619_p6), %s518_s9, 64, %s3493_s13, [#allocation6]  }
  0x3a   : > { %s42_s22 = ssub.s32 %s3478_s21, %s3671_s3  ;;  %p53_p9 = scmp.eq.s32.totalorder %s3478_s21, 0 }
  0x3b   : > { %p43_p7 = scmp.eq.s32.totalorder %s42_s22, 0  ;;  %p58_p10 = scmp.ne.s32.totalorder %s3470_s19, %s3466_s18 }
  0x3c   : > { %p3684_p11 = por %p53_p9, %p52_p8  ;;  %p381_p13 = scmp.eq.s32.totalorder %s3602_s25, 1 }
  0x3d   : > { %s3682_s28 = scalar_select %p43_p7, %s3474_s20, %s45_s24  }
  0x3e   : > { %p3690_p12 = por %p59_p1, %p58_p10  ;;  %p387_p0 = scmp.eq.s32.totalorder %s2377_s27, 1 }
  0x3f   : > { %p2993_p2 = scmp.lt.s32.totalorder %s3478_s21, 2  ;;  %s3697_s29 = sand.u32 1, %s3474_s20  }
  0x40   : > { %p3699_p4 = por %p381_p13, %p52_p8  ;;  %p3703_p6 = por %p387_p0, %p58_p10 }
  0x41   : > { %s2388_s7 = sshll.u32 %s3697_s29, 3  ;;  %s2389_s9 = sshll.u32 %s3478_s21, 3 }
  0x42   : > { %s536_s13 = scalar_lea.hbm %s3963_s0, %s2389_s9  ;;  %s532_s27 = scalar_lea.vmem [#allocation3], %s2388_s7 }
  0x43   : > { %s540_s22 = sshll.u32 %s532_s27, 4  ;;  %s538_s24 = sshll.u32 %s536_s13, 4  ;;  %s541_s22 = int_to_ptr.vmem [resolvable:$true] %s540_s22  ;;  %s539_s24 = int_to_ptr.hbm [resolvable:$true] %s538_s24 }
  0x44   : > { %p3714_p7 = pnand %p2993_p2, %p3684_p11  ;;  %s2390_s23 = sshll.u32 %s3697_s29, 4 }
  0x45   : > { %s547_s5 = sand.u32 1, %s3478_s21   ;;  %s529_s6 = scalar_lea.sflag [#allocation4], %s3697_s29 }
  0x46   : > { %s3328_s8 = sshra.s32 %s539_s24, 4  ;;  %p3332_p9 = pneg %p3714_p7  ;;  %s3329_s8 = int_to_ptr.hbm [resolvable:$true] %s3328_s8 }
  0x47   : > { %s3330_s10 = scalar_lea.hbm %s3329_s8, 8  ;;  %s3335_s9 = scalar_lea.hbm %s3963_s0, 16 }
  0x48   : > { %p3331_p8 = scmp.ne.s32.totalorder %s3329_s8, %s3330_s10  ;;  %p3336_p11 = scmp.lt.s32.totalorder %s3329_s8, %s3963_s0 }
  0x49   : > { %p3337_p0 = scmp.lt.s32.totalorder %s3335_s9, %s3330_s10 }
  0x4a   : > { %p3333_p10 = pnand %p3332_p9, %p3331_p8 }
  0x4b   : > { %p3338_p2 = por %p3337_p0, %p3336_p11 }
  0x4c   : > { %p3334_p13 = pneg %p3333_p10 }
  0x4e   : > { %p3339_p5 = pnand %p3338_p2, %p3334_p13 }
  0x50   : > { %3342 = shalt.err (!%p3339_p5)
}
  0x51   : > { %2977 = dma.hbm_to_vmem [thread:$0]  (!%p3714_p7), %s539_s24, 128, %s541_s22, %s529_s6  }
  0x52   : > { %s551_s29 = scalar_lea.vmem [#allocation7], %s2390_s23  ;;  %s2814_s27 = sshll.u32 %s3478_s21, 4 }
  0x53   : > { %s559_s13 = sshll.u32 %s551_s29, 4  ;;  %s556_s7 = scalar_lea.hbm %s3964_s1, %s2814_s27  ;;  %s560_s13 = int_to_ptr.vmem [resolvable:$true] %s559_s13 }
  0x54   : > { %s557_s14 = sshll.u32 %s556_s7, 4  ;;  %s548_s8 = scalar_lea.sflag [#allocation8], %s547_s5  ;;  %s558_s14 = int_to_ptr.hbm [resolvable:$true] %s557_s14 }
  0x55   : > { %s3358_s10 = sshra.s32 %s558_s14, 4  ;;  %s3365_s22 = scalar_lea.hbm %s3964_s1, 32  ;;  %s3359_s10 = int_to_ptr.hbm [resolvable:$true] %s3358_s10 }
  0x56   : > { %s3360_s9 = scalar_lea.hbm %s3359_s10, 16  ;;  %p3366_p13 = scmp.lt.s32.totalorder %s3359_s10, %s3964_s1 }
  0x57   : > { %p3361_p5 = scmp.ne.s32.totalorder %s3359_s10, %s3360_s9  ;;  %p3367_p11 = scmp.lt.s32.totalorder %s3365_s22, %s3360_s9 }
  0x59   : > { %p3363_p8 = pnand %p3361_p5, %p3332_p9  ;;  %p3368_p0 = por %p3367_p11, %p3366_p13 }
  0x5b   : > { %p3364_p10 = pneg %p3363_p8 }
  0x5d   : > { %p3369_p2 = pnand %p3368_p0, %p3364_p10 }
  0x5f   : > { %3372 = shalt.err (!%p3369_p2)
}
  0x60   : > { %s4012_s5 = smov 8   ;;  %s4013_s12 = smov 128  }
  0x61   : > { %2980 = dma.hbm_to_vmem [thread:$0]  (!%p3714_p7), %s558_s14, 256, %s560_s13, %s548_s8, %s4013_s12, %s4013_s12, %s4012_s5  }
  0x62   : > { %571 = sbr.rel (%p3607_p3) target bundleno = 3365 (0xd25), region = 80  ;;  %s3755_s2 = sand.u32 (!%p3607_p3), 1, %s3470_s19  }
  0x63   : > { %s2394_s29 = sshll.u32 (!%p3607_p3), %s3755_s2, 3  ;;  %s574_s27 = scalar_lea.sflag (!%p3607_p3), [#allocation4], %s3755_s2 }
  0x64   : > { %s577_s15 = scalar_lea.vmem (!%p3607_p3), [#allocation3], %s2394_s29 }
  0x67   : > { %3433 = dma.done.wait (%p3690_p12), %s574_s27, 128  }
  0x68   : > { %3435 = vsyncadd (%p3690_p12), %s574_s27, 4294967168  ;;  %s583_s14 = sand.u32 1, %s3602_s25   ;;  %s2395_s26 = sshll.u32 %s3755_s2, 4 }
  0x69   : > { %s584_s16 = scalar_lea.sflag [#allocation8], %s583_s14  ;;  %s3767_s13 = scalar_lea.vmem [#allocation7], %s2395_s26 }
  0x6a   : > { %3437 = dma.done.wait (%p3690_p12), %s584_s16, 256  }
  0x6b   : > { %3439 = vsyncadd (%p3690_p12), %s584_s16, 4294967040 }
  0x6c   : > { %3441 = dma.done.wait (%p59_p1), [#allocation8], 3072  }
  0x6d   : > { %3443 = vsyncadd (%p59_p1), [#allocation8], 4294964224 }
  0x6e   : > { %3445 = dma.done.wait (%p59_p1), [#allocation11], 1040  }
  0x6f   : > { %3447 = vsyncadd (%p59_p1), [#allocation11], 4294966256 }
  0x70   : > { %3449 = dma.done.wait (%p59_p1), [#allocation14], 4096  }
  0x71   : > { %3451 = vsyncadd (%p59_p1), [#allocation14], 4294963200 }
  0x72   : > { %3453 = dma.done.wait (%p59_p1), [#allocation17], 4096  }
  0x73   : > { %3455 = vsyncadd (%p59_p1), [#allocation17], 4294963200 }
  0x74   : > { %3457 = dma.done.wait (%p59_p1), [#allocation6], 64  }
  0x75   : > { %3459 = vsyncadd (%p59_p1), [#allocation6], 4294967232 }
  0x76   : > { %633 = sfence }
  0x77   : > { %v3793_v0 = vld [vmem:[%s577_s15] sm:$0xff]  ;;  %v3494_v1 = vmov 128.0   ;;  %v2492_v12 = vld [vmem:[#allocation9 + $0xa8] sm:$0xf]  ;;  %v2836_v14 = vld [vmem:[#allocation9 + $0xac] sm:$0xf] }
  0x78   : > { %688 = vadd.xlane.f32.xlu0 %v3793_v0  ;;  %3057 = vrcp.f32 %v3494_v1  ;;  %v2837_v13 = vld [vmem:[#allocation9 + $0xb0] sm:$0xf0]  ;;  %v2494_v16 = vld [vmem:[#allocation9 + $0xb4] sm:$0xf0]  ;;  %v2500_v17 = vld [vmem:[#allocation9 + $0xb0] sm:$0xf] }
  0x79   : > { %v2493_v15 = vor.u32 %v2837_v13, %v2492_v12  ;;  %v2838_v18 = vld [vmem:[#allocation9 + $0xb8] sm:$0xf0]  ;;  %v2497_v19 = vor.u32 %v2836_v14, %v2494_v16  ;;  %v2480_v21 = vld [vmem:[#allocation9 + $0x90] sm:$0xf]  ;;  %v2833_v23 = vld [vmem:[#allocation9 + $0x94] sm:$0xf] }
  0x7a   : > { %v2501_v20 = vor.u32 %v2838_v18, %v2500_v17  ;;  %v2834_v22 = vld [vmem:[#allocation9 + $0x98] sm:$0xf0]  ;;  %v2482_v25 = vld [vmem:[#allocation9 + $0x9c] sm:$0xf0]  ;;  %v2488_v26 = vld [vmem:[#allocation9 + $0x98] sm:$0xf] }
  0x7b   : > { %904 = vmatpush.bf16.msra.mxu0 %v2493_v15  ;;  %917 = vmatpush.bf16.msra.mxu1 %v2497_v19  ;;  %v2481_v24 = vor.u32 %v2834_v22, %v2480_v21  ;;  %v2835_v27 = vld [vmem:[#allocation9 + $0xa0] sm:$0xf0]  ;;  %v2485_v28 = vor.u32 %v2833_v23, %v2482_v25  ;;  %v2468_v30 = vld [vmem:[#allocation9 + $0x78] sm:$0xf]  ;;  %v2830_v32 = vld [vmem:[#allocation9 + $0x7c] sm:$0xf] }
  0x7c   : > { %930 = vmatpush.bf16.msra.mxu2 %v2501_v20  ;;  %v2489_v29 = vor.u32 %v2835_v27, %v2488_v26  ;;  %v2831_v31 = vld [vmem:[#allocation9 + $0x80] sm:$0xf0]  ;;  %v2470_v34 = vld [vmem:[#allocation9 + $0x84] sm:$0xf0]  ;;  %v2476_v35 = vld [vmem:[#allocation9 + $0x80] sm:$0xf] }
  0x7d   : > { %v2469_v33 = vor.u32 %v2831_v31, %v2468_v30  ;;  %v2832_v36 = vld [vmem:[#allocation9 + $0x88] sm:$0xf0]  ;;  %v2473_v37 = vor.u32 %v2830_v32, %v2470_v34  ;;  %v2456_v39 = vld [vmem:[#allocation9 + $0x60] sm:$0xf]  ;;  %v2827_v41 = vld [vmem:[#allocation9 + $0x64] sm:$0xf] }
  0x7e   : > { %v3058_v2 = vpop.eup %3057  ;;  %v2477_v38 = vor.u32 %v2832_v36, %v2476_v35  ;;  %v2828_v40 = vld [vmem:[#allocation9 + $0x68] sm:$0xf0]  ;;  %v2458_v42 = vld [vmem:[#allocation9 + $0x6c] sm:$0xf0]  ;;  %v2464_v43 = vld [vmem:[#allocation9 + $0x68] sm:$0xf] }
  0x7f   : > { %v691_v3 = vmul.f32 128.0, %v3058_v2  ;;  %vm695_vm0 = vweird.f32 %v3058_v2  ;;  %905 = vmatpush.bf16.msra.mxu0 %v2481_v24  ;;  %918 = vmatpush.bf16.msra.mxu1 %v2485_v28  ;;  %v2829_v44 = vld [vmem:[#allocation9 + $0x70] sm:$0xf0]  ;;  %v2457_v45 = vor.u32 %v2828_v40, %v2456_v39  ;;  %v2461_v46 = vor.u32 %v2827_v41, %v2458_v42  ;;  %v2444_v48 = vld [vmem:[#allocation9 + $0x48] sm:$0xf]  ;;  %s686_s17 = sld [smem:[#allocation19]] }
  0x80   : > { %931 = vmatpush.bf16.msra.mxu2 %v2489_v29  ;;  %v2465_v47 = vor.u32 %v2829_v44, %v2464_v43  ;;  %v2825_v49 = vld [vmem:[#allocation9 + $0x50] sm:$0xf0]  ;;  %v2824_v50 = vld [vmem:[#allocation9 + $0x4c] sm:$0xf]  ;;  %v2446_v51 = vld [vmem:[#allocation9 + $0x54] sm:$0xf0] }
  0x81   : > { %v692_v4 = vsub.f32 1.0, %v691_v3  ;;  %v2452_v52 = vld [vmem:[#allocation9 + $0x50] sm:$0xf]  ;;  %v2826_v53 = vld [vmem:[#allocation9 + $0x58] sm:$0xf0]  ;;  %v2445_v54 = vor.u32 %v2825_v49, %v2444_v48  ;;  %v2449_v55 = vor.u32 %v2824_v50, %v2446_v51  ;;  %s2405_s7 = sld [smem:[#allocation19 + $0x1]] }
  0x82   : > { %v2453_v56 = vor.u32 %v2826_v53, %v2452_v52  ;;  %v2432_v57 = vld [vmem:[#allocation9 + $0x30] sm:$0xf]  ;;  %v2822_v58 = vld [vmem:[#allocation9 + $0x38] sm:$0xf0]  ;;  %v2821_v59 = vld [vmem:[#allocation9 + $0x34] sm:$0xf] }
  0x83   : > { %v693_v5 = vmul.f32 %v3058_v2, %v692_v4  ;;  %906 = vmatpush.bf16.msra.mxu0 %v2469_v33  ;;  %919 = vmatpush.bf16.msra.mxu1 %v2473_v37  ;;  %v2434_v61 = vld [vmem:[#allocation9 + $0x3c] sm:$0xf0]  ;;  %v2440_v62 = vld [vmem:[#allocation9 + $0x38] sm:$0xf]  ;;  %v2823_v63 = vld [vmem:[#allocation9 + $0x40] sm:$0xf0] }
  0x84   : > { %932 = vmatpush.bf16.msra.mxu2 %v2477_v38  ;;  %v2437_v3 = vor.u32 %v2821_v59, %v2434_v61  ;;  %v2441_v4 = vor.u32 %v2823_v63, %v2440_v62  ;;  %v2820_v12 = vld [vmem:[#allocation9 + $0x28] sm:$0xf0]  ;;  %v2408_v16 = vld [vmem:[#allocation9] sm:$0xf]  ;;  %v2815_v18 = vld [vmem:[#allocation9 + $0x4] sm:$0xf] }
  0x85   : > { %v694_v6 = vadd.f32 %v3058_v2, %v693_v5  ;;  %v2420_v5 = vld [vmem:[#allocation9 + $0x18] sm:$0xf]  ;;  %v2816_v17 = vld [vmem:[#allocation9 + $0x8] sm:$0xf0]  ;;  %v2410_v19 = vld [vmem:[#allocation9 + $0xc] sm:$0xf0]  ;;  %v730_v42 = vstv %s686_s17 }
  0x86   : > { %v2416_v20 = vld [vmem:[#allocation9 + $0x8] sm:$0xf]  ;;  %v2817_v21 = vld [vmem:[#allocation9 + $0x10] sm:$0xf0]  ;;  %v2409_v24 = vor.u32 %v2816_v17, %v2408_v16  ;;  %v2413_v25 = vor.u32 %v2815_v18, %v2410_v19  ;;  %s4014_s9 = sld [smem:[#allocation30_spill]]  ;;  %vm948_vm7 = vcmask 261120  }
  0x87   : > { %v3796_v7 = vsel %vm695_vm0, %v3058_v2, %v694_v6  ;;  %907 = vmatpush.bf16.msra.mxu0 %v2457_v45  ;;  %920 = vmatpush.bf16.msra.mxu1 %v2461_v46  ;;  %v2433_v2 = vor.u32 %v2822_v58, %v2432_v57  ;;  %v2819_v6 = vld [vmem:[#allocation9 + $0x20] sm:$0xf0]  ;;  %v2417_v26 = vor.u32 %v2817_v21, %v2416_v20  ;;  %v733_v48 = vstv %s2405_s7  ;;  %s3495_s6 = smov 32   ;;  %s3496_s23 = smov 64  }
  0x88   : > { %933 = vmatpush.bf16.msra.mxu2 %v2465_v47  ;;  %v2421_v13 = vor.u32 %v2819_v6, %v2420_v5  ;;  %vm1091_vm8 = vcmask 1043456   ;;  %s3497_s22 = smov 96   ;;  %vm1039_vm9 = vcmask 64512   ;;  %vm1187_vm10 = vcmask 523264   ;;  %s2542_s24 = sld [smem:[#allocation19 + $0x80]] }
  0x89   : > { %vm1189_vm11 = vcmask 785408   ;;  %s2543_s30 = sld [smem:[#allocation19 + $0x81]]  ;;  %s680_s14 = scalar_lea.vmem [#allocation20], %s2394_s29 }
  0x8a   : > { %s4015_s27 = sld [smem:[#allocation34_spill]]  ;;  %s2203_s26 = sshll.u32 %s680_s14, 4  ;;  %s2204_s26 = int_to_ptr.vmem [resolvable:$true] %s2203_s26 }
  0x8b   : > { %908 = vmatpush.bf16.msra.mxu0 %v2445_v54  ;;  %921 = vmatpush.bf16.msra.mxu1 %v2449_v55  ;;  %s2680_s17 = sld [smem:[#allocation19 + $0x100]] }
  0x8c   : > { %934 = vmatpush.bf16.msra.mxu2 %v2453_v56  ;;  %v768_v52 = vld [vmem:[%s4014_s9] sm:$0x7]  ;;  %s2681_s7 = sld [smem:[#allocation19 + $0x101]] }
  0x8d   : > { %v770_v53 = vperm.slane %v768_v52, 0  ;;  %v771_v54 = vperm.slane %v768_v52, 1  ;;  %v772_v59 = vperm.slane %v768_v52, 2  ;;  %s4017_s9 = sld [smem:[#allocation38_spill]] }
  0x8e   : > { %s4019_s12 = sld [smem:[#allocation42_spill]] }
  0x8f   : > { %909 = vmatpush.bf16.msra.mxu0 %v2433_v2  ;;  %922 = vmatpush.bf16.msra.mxu1 %v2437_v3 }
  0x90   : > { %935 = vmatpush.bf16.msra.mxu2 %v2441_v4 }
  0x93   : > { %910 = vmatpush.bf16.msra.mxu0 %v2421_v13 }
  0x94   : > { %s3408_s8 = scalar_lea.hbm %s4019_s12, 16 }
  0x97   : > { %911 = vmatpush.bf16.msra.mxu0 %v2409_v24 }
  0xeb   : > { %v689_v8 = vpop.xlane.xlu0 %688 }
  0xec   : > { %v697_v9 = vmul.f32 %v3796_v7, %v689_v8  ;;  %v2818_v8 = vld [vmem:[#allocation9 + $0x1c] sm:$0xf] }
  0xee   : > { %v3800_v10 = vsub.f32 %v3793_v0, %v697_v9  ;;  %v2422_v9 = vld [vmem:[#allocation9 + $0x24] sm:$0xf0] }
  0xef   : > { %v2425_v14 = vor.u32 %v2818_v8, %v2422_v9 }
  0xf0   : > { %v699_v11 = vmul.f32 %v3800_v10, %v3800_v10  ;;  %v731_v45 = vmul.f32 %v730_v42, %v3800_v10 }
  0xf1   : > { %923 = vmatpush.bf16.msra.mxu1 %v2425_v14 }
  0xf2   : > { %700 = vadd.xlane.f32.xlu0 %v699_v11  ;;  %v2428_v11 = vld [vmem:[#allocation9 + $0x20] sm:$0xf] }
  0xf3   : > { %v2429_v15 = vor.u32 %v2820_v12, %v2428_v11 }
  0xf5   : > { %936 = vmatpush.bf16.msra.mxu2 %v2429_v15  ;;  %924 = vmatpush.bf16.msra.mxu1 %v2413_v25 }
  0xf9   : > { %937 = vmatpush.bf16.msra.mxu2 %v2417_v26 }
 0x165   : > { %v701_v60 = vpop.xlane.xlu0 %700 }
 0x166   : > { %v702_v1 = vmul.f32 0.007874016, %v701_v60 }
 0x168   : > { %3059 = vrsqrt.f32 %v702_v1  ;;  %vm710_vm1 = vcmp.eq.f32.partialorder %v702_v1, inf  ;;  %v713_v32 = vand.u32 2147483648, %v702_v1  ;;  %vm712_vm2 = vcmp.eq.f32.partialorder %v702_v1, 0.0 }
 0x16e   : > { %v3060_v22 = vpop.eup %3059 }
 0x16f   : > { %v704_v23 = vmul.f32 %v3060_v22, %v702_v1 }
 0x171   : > { %v705_v27 = vmul.f32 %v3060_v22, %v704_v23 }
 0x173   : > { %v706_v28 = vmul.f32 0.5, %v705_v27 }
 0x175   : > { %v707_v29 = vsub.f32 1.5, %v706_v28 }
 0x177   : > { %v708_v30 = vmul.f32 %v3060_v22, %v707_v29 }
 0x179   : > { %v709_v31 = vmul.f32 %v708_v30, %v702_v1 }
 0x17b   : > { %v711_v33 = vsel %vm710_vm1, %v702_v1, %v709_v31 }
 0x17c   : > { %v714_v34 = vsel %vm712_vm2, %v713_v32, %v711_v33  ;;  %vm1629_vm2 = vcmask 130048  }
 0x17d   : > { %v715_v35 = vadd.f32 1e-06, %v714_v34 }
 0x17f   : > { %3061 = vrcp.f32 %v715_v35  ;;  %v727_v39 = vand.u32 2147483648, %v715_v35  ;;  %v725_v41 = vand.u32 2147483647, %v715_v35  ;;  %vm721_vm4 = vweird.f32 %v715_v35 }
 0x181   : > { %v728_v44 = vor.u32 1.1754944e-38, %v727_v39  ;;  %vm726_vm6 = vcmp.eq.f32.partialorder %v725_v41, 8.507059e+37 }
 0x185   : > { %v3062_v36 = vpop.eup %3061 }
 0x186   : > { %v717_v37 = vmul.f32 %v3062_v36, %v715_v35  ;;  %vm722_vm3 = vweird.f32 %v3062_v36 }
 0x187   : > { %vm723_vm5 = vmor %vm721_vm4, %vm722_vm3 }
 0x188   : > { %v718_v38 = vsub.f32 1.0, %v717_v37 }
 0x18a   : > { %v719_v40 = vmul.f32 %v3062_v36, %v718_v38 }
 0x18c   : > { %v720_v43 = vadd.f32 %v3062_v36, %v719_v40 }
 0x18e   : > { %v724_v46 = vsel %vm723_vm5, %v3062_v36, %v720_v43 }
 0x18f   : > { %v729_v47 = vsel %vm726_vm6, %v728_v44, %v724_v46 }
 0x190   : > { %v732_v49 = vmul.f32 %v731_v45, %v729_v47 }
 0x192   : > { %v734_v50 = vadd.f32 %v733_v48, %v732_v49 }
 0x194   : > { %v735_v51 = vpack.c.bf16 %v734_v50, %v734_v50 }
 0x196   : > { %912 = vmatmul.bf16.vlgmr.msra.gmra.mxu0 %v735_v51  ;;  %925 = vmatmul.bf16.vlgmr.msra.gmra.mxu1 %v735_v51 }
 0x197   : > { %938 = vmatmul.bf16.vlgmr.msra.gmra.mxu2 %v735_v51 }
 0x213   : > { %v913_v55 = vpop.f32.mrf.mxu0  ;;  %v926_v56 = vpop.f32.mrf.mxu1 }
 0x214   : > { %v914_v57 = vadd.f32 %v913_v55, %v770_v53  ;;  %v927_v10 = vadd.f32 %v926_v56, %v771_v54 }
 0x216   : > { %v943_v58 = vpack.c.bf16 %v927_v10, %v914_v57 }
 0x218   : > { %v946_v60 = vunpack.c.h.b16 %v943_v58  ;;  %v968_v5 = vunpack.c.l.b16 %v943_v58 }
 0x21a   : > { %v939_v61 = vpop.f32.mrf.mxu2  ;;  %v947_v62 = vpack.c.b16 %v946_v60, %v946_v60  ;;  %v969_v9 = vpack.c.b16 %v968_v5, %v968_v5 }
 0x21b   : > { %v940_v63 = vadd.f32 %v939_v61, %v772_v59  ;;  %v915_v1 = vpop.f32.mrf.mxu0  ;;  %v928_v2 = vpop.f32.mrf.mxu1 }
 0x21c   : > { %1018 = vrot.lane.b32.xlu0 %v947_v62, %s3495_s6  ;;  %995 = vrot.lane.b32.xlu2 %v947_v62, %s3496_s23  ;;  %v953_v3 = vsel %vm948_vm7, %v947_v62, 0 }
 0x21d   : > { %v944_v4 = vpack.c.bf16 %v940_v63, %v940_v63  ;;  %972 = vrot.lane.b32.xlu1 %v947_v62, %s3497_s22  ;;  %962 = vmatpush.bf16.xpose.msra.mxu3 %v953_v3 }
 0x21f   : > { %v1093_v6 = vsel %vm1091_vm8, %v944_v4, 0  ;;  %v1109_v37 = vunpack.c.l.b16 %v944_v4 }
 0x220   : > { %1102 = vmatpush.bf16.msrb.mxu2 %v1093_v6 }
 0x221   : > { %v1110_v38 = vpack.c.b16 %v1109_v37, %v1109_v37 }
 0x222   : > { %v941_v8 = vpop.f32.mrf.mxu2 }
 0x224   : > { %993 = vrot.lane.b32.xlu2 %v969_v9, %s3496_s23  ;;  %2502 = vmatmul.msk.bf16.vlgmr.msra.gmra.mxu3 %vm948_vm7, %v943_v58 }
 0x225   : > { %970 = vrot.lane.b32.xlu1 %v969_v9, %s3497_s22 }
 0x22d   : > { %1016 = vrot.lane.b32.xlu1 %v969_v9, %s3495_s6 }
 0x276   : > { %v996_v11 = vpop.permute.xlu2 %995 }
 0x277   : > { %v1001_v16 = vsel %vm948_vm7, %v996_v11, 0 }
 0x27e   : > { %v994_v19 = vpop.permute.xlu2 %993 }
 0x28e   : > { %v1019_v12 = vpop.permute.xlu0 %1018 }
 0x28f   : > { %v973_v13 = vpop.permute.xlu1 %972  ;;  %v1024_v14 = vsel %vm948_vm7, %v1019_v12, 0 }
 0x290   : > { %v978_v15 = vsel %vm948_vm7, %v973_v13, 0  ;;  %1033 = vmatpush.bf16.xpose.msrb.mxu0 %v1024_v14 }
 0x291   : > { %987 = vmatpush.bf16.xpose.msrb.mxu3 %v978_v15 }
 0x297   : > { %v971_v17 = vpop.permute.xlu1 %970 }
 0x298   : > { %2503 = vmatmul.msk.bf16.vlgmr.msrb.gmra.mxu3 %vm948_vm7, %v971_v17 }
 0x299   : > { %1010 = vmatpush.bf16.xpose.msra.mxu3 %v1001_v16 }
 0x29f   : > { %v1017_v18 = vpop.permute.xlu1 %1016 }
 0x2a0   : > { %2505 = vmatmul.msk.bf16.vlgmr.msrb.gmra.mxu0 %vm948_vm7, %v1017_v18 }
 0x2a7   : > { %v964_v20 = vpop.f32.mrf.mxu3 }
 0x2a8   : > { %2504 = vmatmul.msk.bf16.vlgmr.msra.gmra.mxu3 %vm948_vm7, %v994_v19  ;;  %v1040_v21 = vsel %vm1039_vm9, %v964_v20, -inf }
 0x2a9   : > { %1041 = vmax.xlane.f32.xlu2 %v1040_v21 }
 0x2af   : > { %v966_v22 = vpop.f32.mrf.mxu3 }
 0x2b0   : > { %v2846_v22 = vld [vmem:[#allocation10 + $0x38] sm:$0xff] }
 0x2b1   : > { %1262 = vmatpush.bf16.msrb.mxu1 %v2846_v22 }
 0x31b   : > { %v989_v23 = vpop.f32.mrf.mxu3 }
 0x31c   : > { %v1042_v24 = vpop.xlane.xlu2 %1041  ;;  %v1043_v25 = vsel %vm1039_vm9, %v989_v23, -inf }
 0x31d   : > { %v1035_v26 = vpop.f32.mrf.mxu0  ;;  %v1052_v27 = vsub.f32 %v964_v20, %v1042_v24  ;;  %1044 = vmax.xlane.f32.xlu1 %v1043_v25  ;;  %v2844_v24 = vld [vmem:[#allocation10 + $0x28] sm:$0xff]  ;;  %v2843_v25 = vld [vmem:[#allocation10 + $0x20] sm:$0xff] }
 0x31e   : > { %v1049_v28 = vsel %vm1039_vm9, %v1035_v26, -inf }
 0x31f   : > { %v1056_v29 = vmul.f32 1.442695, %v1052_v27  ;;  %1050 = vmax.xlane.f32.xlu2 %v1049_v28  ;;  %v2841_v27 = vld [vmem:[#allocation10 + $0x10] sm:$0xff]  ;;  %v2840_v28 = vld [vmem:[#allocation10 + $0x8] sm:$0xff] }
 0x321   : > { %3063 = vpow2.f32 %v1056_v29  ;;  %v2839_v29 = vld [vmem:[#allocation10] sm:$0xff] }
 0x323   : > { %v991_v30 = vpop.f32.mrf.mxu3 }
 0x325   : > { %v1037_v31 = vpop.f32.mrf.mxu0 }
 0x327   : > { %v3064_v32 = vpop.eup %3063 }
 0x328   : > { %v1064_v33 = vsel %vm1039_vm9, %v3064_v32, 0.0 }
 0x329   : > { %1065 = vadd.xlane.f32.xlu2 %v1064_v33 }
 0x32b   : > { %v1012_v34 = vpop.f32.mrf.mxu3 }
 0x32c   : > { %v1046_v35 = vsel %vm1039_vm9, %v1012_v34, -inf }
 0x32d   : > { %1047 = vmax.xlane.f32.xlu0 %v1046_v35 }
 0x333   : > { %v1014_v36 = vpop.f32.mrf.mxu3 }
 0x341   : > { %1111 = vrot.lane.b32.xlu0 %v1110_v38, %s3497_s22 }
 0x390   : > { %v1045_v39 = vpop.xlane.xlu1 %1044 }
 0x391   : > { %v1053_v42 = vsub.f32 %v989_v23, %v1045_v39  ;;  %v2845_v23 = vld [vmem:[#allocation10 + $0x30] sm:$0xff] }
 0x392   : > { %v1051_v40 = vpop.xlane.xlu2 %1050  ;;  %1263 = vmatpush.bf16.msrb.mxu1 %v2845_v23  ;;  %v2578_v23 = vld [vmem:[#allocation13 + $0x4] sm:$0xf] }
 0x393   : > { %v1055_v41 = vsub.f32 %v1035_v26, %v1051_v40  ;;  %v1058_v44 = vmul.f32 1.442695, %v1053_v42  ;;  %v2842_v26 = vld [vmem:[#allocation10 + $0x18] sm:$0xff] }
 0x395   : > { %v1062_v43 = vmul.f32 1.442695, %v1055_v41 }
 0x396   : > { %1264 = vmatpush.bf16.msrb.mxu1 %v2844_v24  ;;  %v2856_v24 = vld [vmem:[#allocation13 + $0xc] sm:$0xf0] }
 0x397   : > { %3065 = vpow2.f32 %v1062_v43  ;;  %v2634_v43 = vld [vmem:[#allocation13 + $0xac] sm:$0xf] }
 0x398   : > { %3067 = vpow2.f32 %v1058_v44  ;;  %v2870_v44 = vld [vmem:[#allocation13 + $0xb4] sm:$0xf0] }
 0x39a   : > { %1265 = vmatpush.bf16.msrb.mxu1 %v2843_v25  ;;  %v2579_v25 = vor.u32 %v2856_v24, %v2578_v23  ;;  %v1316_v23 = vstv %s2543_s30 }
 0x39c   : > { %v1066_v45 = vpop.xlane.xlu2 %1065 }
 0x39d   : > { %v3066_v46 = vpop.eup %3065  ;;  %3069 = vrcp.f32 %v1066_v45  ;;  %v2626_v45 = vld [vmem:[#allocation13 + $0x94] sm:$0xf] }
 0x39e   : > { %v1073_v47 = vsel %vm1039_vm9, %v3066_v46, 0.0  ;;  %v3068_v50 = vpop.eup %3067  ;;  %1266 = vmatpush.bf16.msrb.mxu1 %v2842_v26  ;;  %v2857_v26 = vld [vmem:[#allocation13 + $0x20] sm:$0xf] }
 0x39f   : > { %1074 = vadd.xlane.f32.xlu1 %v1073_v47  ;;  %v1067_v54 = vsel %vm1039_vm9, %v3068_v50, 0.0  ;;  %v2868_v47 = vld [vmem:[#allocation13 + $0x9c] sm:$0xf0] }
 0x3a0   : > { %v1048_v48 = vpop.xlane.xlu0 %1047 }
 0x3a1   : > { %v1054_v49 = vsub.f32 %v1012_v34, %v1048_v48  ;;  %v2869_v48 = vld [vmem:[#allocation13 + $0xb0] sm:$0xf] }
 0x3a2   : > { %1267 = vmatpush.bf16.msrb.mxu1 %v2841_v27  ;;  %v2588_v27 = vld [vmem:[#allocation13 + $0x28] sm:$0xf0] }
 0x3a3   : > { %v3070_v51 = vpop.eup %3069  ;;  %v1060_v52 = vmul.f32 1.442695, %v1054_v49  ;;  %v2636_v49 = vld [vmem:[#allocation13 + $0xb8] sm:$0xf0] }
 0x3a4   : > { %v1080_v53 = vmul.f32 %v3070_v51, %v3064_v32  ;;  %v2867_v51 = vld [vmem:[#allocation13 + $0x98] sm:$0xf] }
 0x3a5   : > { %3071 = vpow2.f32 %v1060_v52  ;;  %v2627_v52 = vor.u32 %v2868_v47, %v2626_v45  ;;  %v2562_v45 = vld [vmem:[#allocation13 + $0x60] sm:$0xf] }
 0x3a6   : > { %v1084_v55 = vpack.c.bf16 %v1080_v53, %v1080_v53  ;;  %1268 = vmatpush.bf16.msrb.mxu1 %v2840_v28  ;;  %v2628_v53 = vld [vmem:[#allocation13 + $0xa0] sm:$0xf0]  ;;  %v2591_v28 = vor.u32 %v2857_v26, %v2588_v27  ;;  %v1417_v27 = vld [vmem:[%s4015_s27 + $0x1] sm:$0x3] }
 0x3a7   : > { %1068 = vadd.xlane.f32.xlu1 %v1067_v54  ;;  %v2618_v54 = vld [vmem:[#allocation13 + $0x7c] sm:$0xf] }
 0x3a8   : > { %2506 = vmatmul.msk.bf16.vlgmr.msrb.gmra.mxu2 %vm1039_vm9, %v1084_v55  ;;  %v2866_v55 = vld [vmem:[#allocation13 + $0x84] sm:$0xf0] }
 0x3aa   : > { %1269 = vmatpush.bf16.msrb.mxu1 %v2839_v29  ;;  %v683_v29 = vld [vmem:[%s3767_s13] sm:$0xff] }
 0x3ab   : > { %v3072_v56 = vpop.eup %3071 }
 0x3ac   : > { %v1070_v57 = vsel %vm1039_vm9, %v3072_v56, 0.0 }
 0x3ad   : > { %1071 = vadd.xlane.f32.xlu2 %v1070_v57  ;;  %v2620_v57 = vld [vmem:[#allocation13 + $0x88] sm:$0xf0] }
 0x3b3   : > { %v1112_v10 = vpop.permute.xlu0 %1111 }
 0x3b4   : > { %v1117_v58 = vsel %vm1091_vm8, %v1112_v10, 0  ;;  %v2619_v10 = vor.u32 %v2866_v55, %v2618_v54 }
 0x3b5   : > { %1126 = vmatpush.bf16.msra.mxu2 %v1117_v58  ;;  %v2610_v58 = vld [vmem:[#allocation13 + $0x64] sm:$0xf] }
 0x3c0   : > { %1153 = vrot.lane.b32.xlu1 %v1110_v38, %s3495_s6 }
 0x3c5   : > { %1132 = vrot.lane.b32.xlu2 %v1110_v38, %s3496_s23  ;;  %v3053_v38 = vld [vmem:[#allocation12] ss:$0 sm:$0xff] }
 0x412   : > { %v1075_v59 = vpop.xlane.xlu1 %1074 }
 0x41a   : > { %v1069_v60 = vpop.xlane.xlu1 %1068 }
 0x41b   : > { %3073 = vrcp.f32 %v1069_v60 }
 0x420   : > { %v1072_v61 = vpop.xlane.xlu2 %1071 }
 0x421   : > { %v3074_v62 = vpop.eup %3073  ;;  %3075 = vrcp.f32 %v1072_v61  ;;  %v2863_v61 = vld [vmem:[#allocation13 + $0x68] sm:$0xf] }
 0x422   : > { %v1081_v63 = vmul.f32 %v3074_v62, %v3068_v50  ;;  %3077 = vrcp.f32 %v1075_v59  ;;  %v2639_v50 = vor.u32 %v2869_v48, %v2636_v49  ;;  %v2864_v59 = vld [vmem:[#allocation13 + $0x6c] sm:$0xf0]  ;;  %v2612_v62 = vld [vmem:[#allocation13 + $0x70] sm:$0xf0]  ;;  %v2558_v48 = vld [vmem:[#allocation13 + $0x48] sm:$0xf] }
 0x423   : > { %v2850_v49 = vld [vmem:[#allocation13 + $0x50] sm:$0xf0] }
 0x424   : > { %v1085_v1 = vpack.c.bf16 %v1081_v63, %v1081_v63  ;;  %v2611_v63 = vor.u32 %v2864_v59, %v2610_v58  ;;  %v2847_v58 = vld [vmem:[#allocation13 + $0x8] sm:$0xf0] }
 0x426   : > { %2507 = vmatmul.msk.bf16.vlgmr.msra.gmra.mxu2 %vm1039_vm9, %v1085_v1  ;;  %v2602_v1 = vld [vmem:[#allocation13 + $0x4c] sm:$0xf] }
 0x427   : > { %v3076_v2 = vpop.eup %3075 }
 0x428   : > { %v1082_v3 = vmul.f32 %v3076_v2, %v3072_v56  ;;  %v1133_v4 = vpop.permute.xlu2 %1132  ;;  %v3078_v9 = vpop.eup %3077  ;;  %v2865_v56 = vld [vmem:[#allocation13 + $0x80] sm:$0xf]  ;;  %v2862_v2 = vld [vmem:[#allocation13 + $0x54] sm:$0xf0] }
 0x429   : > { %v1138_v5 = vsel %vm1091_vm8, %v1133_v4, 0  ;;  %v1083_v11 = vmul.f32 %v3078_v9, %v3066_v46  ;;  %v2635_v46 = vor.u32 %v2870_v44, %v2634_v43  ;;  %v2623_v60 = vor.u32 %v2865_v56, %v2620_v57  ;;  %v2852_v43 = vld [vmem:[#allocation13 + $0x80] sm:$0xf0] }
 0x42a   : > { %v1086_v6 = vpack.c.bf16 %v1082_v3, %v1082_v3  ;;  %1147 = vmatpush.bf16.msrb.mxu3 %v1138_v5  ;;  %v2615_v3 = vor.u32 %v2863_v61, %v2612_v62  ;;  %v2603_v4 = vor.u32 %v2862_v2, %v2602_v1  ;;  %v2848_v56 = vld [vmem:[#allocation13 + $0x20] sm:$0xf0] }
 0x42b   : > { %v1104_v8 = vpop.f32.mrf.mxu2  ;;  %v1087_v15 = vpack.c.bf16 %v1083_v11, %v1083_v11  ;;  %v2594_v11 = vld [vmem:[#allocation13 + $0x34] sm:$0xf] }
 0x42d   : > { %2508 = vmatmul.msk.bf16.vlgmr.msrb.gmra.mxu3 %vm1039_vm9, %v1086_v6 }
 0x42e   : > { %1503 = vmatpush.bf16.msra.mxu3 %v2635_v46  ;;  %v2851_v46 = vld [vmem:[#allocation13 + $0x68] sm:$0xf0] }
 0x42f   : > { %v2563_v47 = vor.u32 %v2851_v46, %v2562_v45 }
 0x432   : > { %v1154_v12 = vpop.permute.xlu1 %1153  ;;  %1504 = vmatpush.bf16.msra.mxu3 %v2627_v52  ;;  %v2849_v52 = vld [vmem:[#allocation13 + $0x38] sm:$0xf0] }
 0x433   : > { %v1159_v13 = vsel %vm1091_vm8, %v1154_v12, 0  ;;  %v1106_v14 = vpop.f32.mrf.mxu2  ;;  %v2860_v12 = vld [vmem:[#allocation13 + $0x3c] sm:$0xf0] }
 0x434   : > { %1168 = vmatpush.bf16.msra.mxu0 %v1159_v13  ;;  %v2595_v13 = vor.u32 %v2860_v12, %v2594_v11  ;;  %v2861_v14 = vld [vmem:[#allocation13 + $0x50] sm:$0xf] }
 0x436   : > { %1505 = vmatpush.bf16.msra.mxu3 %v2619_v10  ;;  %v2546_v10 = vld [vmem:[#allocation13] sm:$0xf] }
 0x437   : > { %2509 = vmatmul.msk.bf16.vlgmr.msra.gmra.mxu0 %vm1039_vm9, %v1087_v15  ;;  %v2604_v15 = vld [vmem:[#allocation13 + $0x58] sm:$0xf0]  ;;  %v2547_v61 = vor.u32 %v2847_v58, %v2546_v10 }
 0x438   : > { %1517 = vmatpush.bf16.msrb.mxu0 %v2639_v50  ;;  %v2559_v50 = vor.u32 %v2850_v49, %v2558_v48 }
 0x43a   : > { %1506 = vmatpush.bf16.msra.mxu3 %v2611_v63 }
 0x43e   : > { %1507 = vmatpush.bf16.msra.mxu3 %v2603_v4 }
 0x442   : > { %1508 = vmatpush.bf16.msra.mxu3 %v2595_v13 }
 0x4a9   : > { %v1128_v16 = vpop.f32.mrf.mxu2 }
 0x4aa   : > { %1175 = vrot.lane.b32.xlu0 %v1128_v16, %s3495_s6  ;;  %v2607_v16 = vor.u32 %v2861_v14, %v2604_v15 }
 0x4b0   : > { %v1149_v17 = vpop.f32.mrf.mxu3 }
 0x4b1   : > { %v1130_v18 = vpop.f32.mrf.mxu2  ;;  %1179 = vrot.lane.b32.xlu2 %v1149_v17, %s3496_s23  ;;  %v2586_v17 = vld [vmem:[#allocation13 + $0x1c] sm:$0xf] }
 0x4b2   : > { %v2858_v18 = vld [vmem:[#allocation13 + $0x24] sm:$0xf0] }
 0x4b4   : > { %v1170_v19 = vpop.f32.mrf.mxu0 }
 0x4b5   : > { %1183 = vrot.lane.b32.xlu0 %v1170_v19, %s3497_s22  ;;  %v2587_v19 = vor.u32 %v2858_v18, %v2586_v17  ;;  %v1313_v17 = vstv %s2542_s24  ;;  %s4018_s24 = sld [smem:[#allocation40_spill]] }
 0x4b7   : > { %1509 = vmatpush.bf16.msra.mxu3 %v2587_v19 }
 0x4b8   : > { %v1151_v20 = vpop.f32.mrf.mxu3 }
 0x4b9   : > { %v2859_v20 = vld [vmem:[#allocation13 + $0x38] sm:$0xf] }
 0x4bb   : > { %1510 = vmatpush.bf16.msra.mxu3 %v2579_v25 }
 0x4bc   : > { %v1172_v21 = vpop.f32.mrf.mxu0 }
 0x4bd   : > { %v2596_v21 = vld [vmem:[#allocation13 + $0x40] sm:$0xf0] }
 0x4be   : > { %v2599_v22 = vor.u32 %v2859_v20, %v2596_v21 }
 0x50b   : > { %v1180_v32 = vpop.permute.xlu2 %1179 }
 0x51c   : > { %v1176_v30 = vpop.permute.xlu0 %1175 }
 0x51d   : > { %v1186_v31 = vsel %vm948_vm7, %v1104_v8, %v1176_v30  ;;  %v684_v30 = vld [vmem:[%s3767_s13 + $0x8] sm:$0xff]  ;;  %s4016_s13 = sld [smem:[#allocation36_spill]] }
 0x51e   : > { %v1188_v34 = vsel %vm1187_vm10, %v1186_v31, %v1180_v32  ;;  %v685_v31 = vpack.c.bf16 %v684_v30, %v683_v29  ;;  %v2855_v32 = vld [vmem:[#allocation13 + $0x8] sm:$0xf]  ;;  %v1420_v29 = vperm.slane %v1417_v27, 1 }
 0x520   : > { %1511 = vmatmul.bf16.vlgmr.msra.gmra.mxu3 %v685_v31 }
 0x527   : > { %v1184_v33 = vpop.permute.xlu0 %1183 }
 0x528   : > { %v1190_v35 = vsel %vm1189_vm11, %v1188_v34, %v1184_v33  ;;  %v2580_v33 = vld [vmem:[#allocation13 + $0x10] sm:$0xf0] }
 0x529   : > { %v1191_v36 = vpack.c.bf16 %v1190_v35, %v1190_v35  ;;  %v2583_v34 = vor.u32 %v2855_v32, %v2580_v33  ;;  %v2574_v35 = vld [vmem:[#allocation13 + $0xa8] sm:$0xf] }
 0x52b   : > { %1192 = vst [vmem:[#allocation2] sm:$0xf] %v1191_v36  ;;  %v2854_v36 = vld [vmem:[#allocation13 + $0xb0] sm:$0xf0] }
 0x532   : > { %v1193_v37 = vld [vmem:[#allocation2] sm:$0xf] }
 0x533   : > { %1270 = vmatmul.bf16.vlgmr.msrb.gmra.mxu1 %v1193_v37  ;;  %v2575_v37 = vor.u32 %v2854_v36, %v2574_v35 }
 0x535   : > { %1387 = vmatpush.bf16.msrb.mxu2 %v2575_v37 }
 0x5a3   : > { %v1512_v30 = vpop.f32.mrf.mxu3 }
 0x5b0   : > { %v1271_v39 = vpop.f32.mrf.mxu1 }
 0x5b1   : > { %v1272_v40 = vadd.f32 %v3053_v38, %v1271_v39  ;;  %v2570_v38 = vld [vmem:[#allocation13 + $0x90] sm:$0xf]  ;;  %v2853_v39 = vld [vmem:[#allocation13 + $0x98] sm:$0xf0] }
 0x5b3   : > { %v3848_v41 = vadd.f32 %v1272_v40, %v3793_v0  ;;  %v2631_v0 = vor.u32 %v2867_v51, %v2628_v53  ;;  %v2571_v40 = vor.u32 %v2853_v39, %v2570_v38  ;;  %v2554_v51 = vld [vmem:[#allocation13 + $0x30] sm:$0xf] }
 0x5b4   : > { %v2555_v55 = vor.u32 %v2849_v52, %v2554_v51 }
 0x5b5   : > { %1278 = vadd.xlane.f32.xlu1 %v3848_v41  ;;  %1518 = vmatpush.bf16.msrb.mxu0 %v2631_v0  ;;  %v2550_v0 = vld [vmem:[#allocation13 + $0x18] sm:$0xf] }
 0x5b6   : > { %1388 = vmatpush.bf16.msrb.mxu2 %v2571_v40  ;;  %v2551_v57 = vor.u32 %v2848_v56, %v2550_v0 }
 0x5b8   : > { %v1273_v42 = vpop.f32.mrf.mxu1 }
 0x5b9   : > { %1519 = vmatpush.bf16.msrb.mxu0 %v2623_v60  ;;  %v2566_v42 = vld [vmem:[#allocation13 + $0x78] sm:$0xf] }
 0x5ba   : > { %v2567_v44 = vor.u32 %v2852_v43, %v2566_v42 }
 0x5bc   : > { %1389 = vmatpush.bf16.msrb.mxu2 %v2567_v44 }
 0x5bd   : > { %1520 = vmatpush.bf16.msrb.mxu0 %v2615_v3 }
 0x5c0   : > { %1390 = vmatpush.bf16.msrb.mxu2 %v2563_v47  ;;  %v3054_v47 = vld [vmem:[%s4015_s27] ss:$0 sm:$0xff] }
 0x5c1   : > { %1521 = vmatpush.bf16.msrb.mxu0 %v2607_v16 }
 0x5c4   : > { %1391 = vmatpush.bf16.msrb.mxu2 %v2559_v50 }
 0x5c5   : > { %1522 = vmatpush.bf16.msrb.mxu0 %v2599_v22 }
 0x5c8   : > { %1392 = vmatpush.bf16.msrb.mxu2 %v2555_v55 }
 0x5c9   : > { %1523 = vmatpush.bf16.msrb.mxu0 %v2591_v28  ;;  %v1419_v28 = vperm.slane %v1417_v27, 0 }
 0x5cb   : > { %v1513_v32 = vadd.f32 %v1512_v30, %v1419_v28 }
 0x5cc   : > { %1393 = vmatpush.bf16.msrb.mxu2 %v2551_v57 }
 0x5cd   : > { %1524 = vmatpush.bf16.msrb.mxu0 %v2583_v34 }
 0x5d0   : > { %1525 = vmatmul.bf16.vlgmr.msrb.gmra.mxu0 %v685_v31  ;;  %1394 = vmatpush.bf16.msrb.mxu2 %v2547_v61 }
 0x628   : > { %v1279_v5 = vpop.xlane.xlu1 %1278 }
 0x629   : > { %v1280_v6 = vmul.f32 %v1279_v5, %v3796_v7 }
 0x62b   : > { %v3853_v8 = vsub.f32 %v3848_v41, %v1280_v6 }
 0x62d   : > { %v1282_v9 = vmul.f32 %v3853_v8, %v3853_v8  ;;  %v1314_v20 = vmul.f32 %v1313_v17, %v3853_v8  ;;  %v1514_v8 = vpop.f32.mrf.mxu3 }
 0x62e   : > { %v1515_v36 = vadd.f32 %v1514_v8, %v1419_v28 }
 0x62f   : > { %1283 = vadd.xlane.f32.xlu2 %v1282_v9 }
 0x64d   : > { %v1526_v31 = vpop.f32.mrf.mxu0 }
 0x64e   : > { %v1527_v33 = vadd.f32 %v1526_v31, %v1420_v29 }
 0x650   : > { %v1531_v34 = vpack.c.bf16 %v1527_v33, %v1513_v32 }
 0x652   : > { %v1535_v38 = vunpack.c.l.b16 %v1531_v34  ;;  %v1678_v39 = vunpack.c.h.b16 %v1531_v34 }
 0x655   : > { %v1528_v35 = vpop.f32.mrf.mxu0 }
 0x656   : > { %v1529_v37 = vadd.f32 %v1528_v35, %v1420_v29 }
 0x658   : > { %v1532_v40 = vpack.c.bf16 %v1529_v37, %v1515_v36 }
 0x65a   : > { %v1536_v42 = vunpack.c.l.b16 %v1532_v40  ;;  %v1679_v43 = vunpack.c.h.b16 %v1532_v40 }
 0x65c   : > { %v1537_v44 = vpack.c.b16 %v1536_v42, %v1535_v38  ;;  %v3863_v45 = vpack.c.b16 %v1679_v43, %v1678_v39 }
 0x65e   : > { %1562 = vrot.lane.b32.xlu0 %v1537_v44, %s3497_s22  ;;  %v1542_v46 = vsel %vm948_vm7, %v1537_v44, 0 }
 0x65f   : > { %1551 = vmatpush.bf16.xpose.msra.mxu1 %v1542_v46 }
 0x666   : > { %1585 = vrot.lane.b32.xlu0 %v1537_v44, %s3496_s23 }
 0x667   : > { %1692 = vmatpush.bf16.msrb.mxu1 %v3863_v45 }
 0x6a2   : > { %v1284_v53 = vpop.xlane.xlu2 %1283 }
 0x6a3   : > { %v1285_v54 = vmul.f32 0.007874016, %v1284_v53 }
 0x6a5   : > { %3079 = vrsqrt.f32 %v1285_v54  ;;  %vm1293_vm12 = vcmp.eq.f32.partialorder %v1285_v54, inf  ;;  %v1296_v4 = vand.u32 2147483648, %v1285_v54  ;;  %vm1295_vm13 = vcmp.eq.f32.partialorder %v1285_v54, 0.0 }
 0x6ab   : > { %v3080_v59 = vpop.eup %3079 }
 0x6ac   : > { %v1287_v60 = vmul.f32 %v3080_v59, %v1285_v54 }
 0x6ae   : > { %v1288_v62 = vmul.f32 %v3080_v59, %v1287_v60 }
 0x6b0   : > { %v1289_v63 = vmul.f32 0.5, %v1288_v62 }
 0x6b2   : > { %v1290_v1 = vsub.f32 1.5, %v1289_v63 }
 0x6b4   : > { %v1291_v2 = vmul.f32 %v3080_v59, %v1290_v1 }
 0x6b6   : > { %v1292_v3 = vmul.f32 %v1291_v2, %v1285_v54 }
 0x6b8   : > { %v1294_v5 = vsel %vm1293_vm12, %v1285_v54, %v1292_v3 }
 0x6b9   : > { %v1297_v6 = vsel %vm1295_vm13, %v1296_v4, %v1294_v5 }
 0x6ba   : > { %v1298_v9 = vadd.f32 1e-06, %v1297_v6 }
 0x6bc   : > { %3081 = vrcp.f32 %v1298_v9  ;;  %v1310_v14 = vand.u32 2147483648, %v1298_v9  ;;  %v1308_v16 = vand.u32 2147483647, %v1298_v9  ;;  %vm1304_vm15 = vweird.f32 %v1298_v9 }
 0x6be   : > { %v1311_v19 = vor.u32 1.1754944e-38, %v1310_v14  ;;  %vm1309_vm1 = vcmp.eq.f32.partialorder %v1308_v16, 8.507059e+37 }
 0x6c2   : > { %v3082_v11 = vpop.eup %3081 }
 0x6c3   : > { %v1300_v12 = vmul.f32 %v3082_v11, %v1298_v9  ;;  %vm1305_vm14 = vweird.f32 %v3082_v11 }
 0x6c4   : > { %vm1306_vm0 = vmor %vm1304_vm15, %vm1305_vm14 }
 0x6c5   : > { %v1301_v13 = vsub.f32 1.0, %v1300_v12 }
 0x6c7   : > { %v1302_v15 = vmul.f32 %v3082_v11, %v1301_v13 }
 0x6c9   : > { %v1303_v18 = vadd.f32 %v3082_v11, %v1302_v15 }
 0x6cb   : > { %v1307_v21 = vsel %vm1306_vm0, %v3082_v11, %v1303_v18 }
 0x6cc   : > { %v1312_v22 = vsel %vm1309_vm1, %v1311_v19, %v1307_v21 }
 0x6cd   : > { %v1315_v24 = vmul.f32 %v1314_v20, %v1312_v22 }
 0x6cf   : > { %v1317_v25 = vadd.f32 %v1316_v23, %v1315_v24 }
 0x6d0   : > { %v1563_v54 = vpop.permute.xlu0 %1562 }
 0x6d1   : > { %v1318_v26 = vpack.c.bf16 %v1317_v25, %v1317_v25  ;;  %v1568_v55 = vsel %vm948_vm7, %v1563_v54, 0 }
 0x6d2   : > { %1577 = vmatpush.bf16.xpose.msra.mxu2 %v1568_v55 }
 0x6d3   : > { %1395 = vmatmul.bf16.vlgmr.msrb.gmra.mxu2 %v1318_v26 }
 0x6d8   : > { %v1586_v0 = vpop.permute.xlu0 %1585 }
 0x6d9   : > { %v1591_v56 = vsel %vm948_vm7, %v1586_v0, 0 }
 0x6da   : > { %1600 = vmatpush.bf16.xpose.msrb.mxu3 %v1591_v56 }
 0x756   : > { %v1396_v48 = vpop.f32.mrf.mxu2 }
 0x757   : > { %v1397_v49 = vadd.f32 %v3054_v47, %v1396_v48 }
 0x759   : > { %v1400_v50 = vpack.c.bf16 %v1397_v49, %v1397_v49 }
 0x75b   : > { %v1558_v51 = vunpack.c.l.b16 %v1400_v50  ;;  %2640 = vmatmul.msk.bf16.vlgmr.msra.gmra.mxu1 %vm948_vm7, %v1400_v50 }
 0x75d   : > { %v1559_v52 = vpack.c.b16 %v1558_v51, %v1558_v51 }
 0x75e   : > { %v1398_v53 = vpop.f32.mrf.mxu2 }
 0x75f   : > { %1606 = vrot.lane.b32.xlu1 %v1559_v52, %s3495_s6  ;;  %1560 = vrot.lane.b32.xlu0 %v1559_v52, %s3497_s22 }
 0x767   : > { %1583 = vrot.lane.b32.xlu0 %v1559_v52, %s3496_s23 }
 0x76f   : > { %1608 = vrot.lane.b32.xlu0 %v1537_v44, %s3495_s6 }
 0x7d1   : > { %v1561_v57 = vpop.permute.xlu0 %1560  ;;  %v1607_v62 = vpop.permute.xlu1 %1606 }
 0x7d2   : > { %2641 = vmatmul.msk.bf16.vlgmr.msra.gmra.mxu2 %vm948_vm7, %v1561_v57 }
 0x7d8   : > { %v1553_v10 = vpop.f32.mrf.mxu1 }
 0x7d9   : > { %v1584_v58 = vpop.permute.xlu0 %1583  ;;  %v1630_v12 = vsel %vm1629_vm2, %v1553_v10, -inf }
 0x7da   : > { %2642 = vmatmul.msk.bf16.vlgmr.msrb.gmra.mxu3 %vm948_vm7, %v1584_v58  ;;  %v2878_v58 = vld [vmem:[#allocation15 + $0x38] sm:$0xff] }
 0x7db   : > { %1841 = vmatpush.bf16.msra.mxu1 %v2878_v58  ;;  %v2882_v58 = vld [vmem:[#allocation16 + $0x14] sm:$0xf0] }
 0x7e0   : > { %v1555_v59 = vpop.f32.mrf.mxu1 }
 0x7e1   : > { %v1609_v60 = vpop.permute.xlu0 %1608  ;;  %v2877_v59 = vld [vmem:[#allocation15 + $0x30] sm:$0xff] }
 0x7e2   : > { %v1614_v61 = vsel %vm948_vm7, %v1609_v60, 0  ;;  %1842 = vmatpush.bf16.msra.mxu1 %v2877_v59  ;;  %v2876_v60 = vld [vmem:[#allocation15 + $0x28] sm:$0xff]  ;;  %v2881_v59 = vld [vmem:[#allocation16 + $0x14] sm:$0xf] }
 0x7e3   : > { %1623 = vmatpush.bf16.xpose.msra.mxu0 %v1614_v61  ;;  %v2875_v61 = vld [vmem:[#allocation15 + $0x20] sm:$0xff] }
 0x7e6   : > { %1843 = vmatpush.bf16.msra.mxu1 %v2876_v60  ;;  %v2694_v60 = vld [vmem:[#allocation16 + $0x18] sm:$0xf0] }
 0x7ea   : > { %2643 = vmatmul.msk.bf16.vlgmr.msra.gmra.mxu0 %vm948_vm7, %v1607_v62  ;;  %1844 = vmatpush.bf16.msra.mxu1 %v2875_v61  ;;  %v2874_v62 = vld [vmem:[#allocation15 + $0x18] sm:$0xff] }
 0x7ee   : > { %1845 = vmatpush.bf16.msra.mxu1 %v2874_v62  ;;  %v2697_v62 = vor.u32 %v2881_v59, %v2694_v60 }
 0x855   : > { %v1579_v63 = vpop.f32.mrf.mxu2 }
 0x856   : > { %v1633_v1 = vsel %vm1629_vm2, %v1579_v63, -inf }
 0x857   : > { %1634 = vmax.xlane.f32.xlu0 %v1633_v1  ;;  %v2872_v1 = vld [vmem:[#allocation15 + $0x8] sm:$0xff] }
 0x85d   : > { %v1581_v2 = vpop.f32.mrf.mxu2  ;;  %v1602_v3 = vpop.f32.mrf.mxu3 }
 0x85e   : > { %v1636_v11 = vsel %vm1629_vm2, %v1602_v3, -inf  ;;  %v2871_v2 = vld [vmem:[#allocation15] sm:$0xff] }
 0x865   : > { %v1604_v4 = vpop.f32.mrf.mxu3 }
 0x867   : > { %v1625_v5 = vpop.f32.mrf.mxu0 }
 0x868   : > { %v1639_v6 = vsel %vm1629_vm2, %v1625_v5, -inf }
 0x869   : > { %1640 = vmax.xlane.f32.xlu2 %v1639_v6 }
 0x86b   : > { %1717 = vrot.lane.b32.xlu0 %v3863_v45, %s3496_s23 }
 0x86f   : > { %v1627_v9 = vpop.f32.mrf.mxu0 }
 0x871   : > { %1637 = vmax.xlane.f32.xlu2 %v1636_v11 }
 0x873   : > { %1736 = vrot.lane.b32.xlu0 %v3863_v45, %s3495_s6 }
 0x879   : > { %1631 = vmax.xlane.f32.xlu2 %v1630_v12 }
 0x8ca   : > { %v1635_v13 = vpop.xlane.xlu0 %1634 }
 0x8cb   : > { %v1643_v14 = vsub.f32 %v1579_v63, %v1635_v13  ;;  %v2873_v63 = vld [vmem:[#allocation15 + $0x10] sm:$0xff] }
 0x8cc   : > { %1846 = vmatpush.bf16.msra.mxu1 %v2873_v63  ;;  %v2684_v63 = vld [vmem:[#allocation16] sm:$0xf] }
 0x8cd   : > { %v1648_v15 = vmul.f32 1.442695, %v1643_v14  ;;  %v3055_v14 = vld [vmem:[%s4016_s13] ss:$0 sm:$0xff] }
 0x8cf   : > { %3083 = vpow2.f32 %v1648_v15 }
 0x8d0   : > { %1847 = vmatpush.bf16.msra.mxu1 %v2872_v1  ;;  %v2880_v1 = vld [vmem:[#allocation16 + $0x4] sm:$0xf0] }
 0x8d4   : > { %1848 = vmatpush.bf16.msra.mxu1 %v2871_v2  ;;  %v2879_v2 = vld [vmem:[#allocation16 + $0x4] sm:$0xf] }
 0x8d5   : > { %v3084_v16 = vpop.eup %3083 }
 0x8d6   : > { %v1657_v17 = vsel %vm1629_vm2, %v3084_v16, 0.0 }
 0x8d7   : > { %1658 = vadd.xlane.f32.xlu1 %v1657_v17 }
 0x8dc   : > { %v1641_v18 = vpop.xlane.xlu2 %1640 }
 0x8dd   : > { %v1645_v19 = vsub.f32 %v1625_v5, %v1641_v18  ;;  %v1718_v20 = vpop.permute.xlu0 %1717 }
 0x8de   : > { %1730 = vmatpush.bf16.msra.mxu3 %v1718_v20 }
 0x8df   : > { %v1652_v21 = vmul.f32 1.442695, %v1645_v19 }
 0x8e1   : > { %3085 = vpow2.f32 %v1652_v21 }
 0x8e4   : > { %v1638_v22 = vpop.xlane.xlu2 %1637 }
 0x8e5   : > { %v1644_v23 = vsub.f32 %v1602_v3, %v1638_v22  ;;  %v1737_v24 = vpop.permute.xlu0 %1736 }
 0x8e6   : > { %1749 = vmatpush.bf16.msrb.mxu0 %v1737_v24  ;;  %v2894_v24 = vld [vmem:[#allocation16 + $0x74] sm:$0xf0] }
 0x8e7   : > { %v3086_v25 = vpop.eup %3085  ;;  %v1650_v26 = vmul.f32 1.442695, %v1644_v23  ;;  %v2740_v23 = vld [vmem:[#allocation16 + $0x70] sm:$0xf] }
 0x8e8   : > { %v1663_v27 = vsel %vm1629_vm2, %v3086_v25, 0.0 }
 0x8e9   : > { %3087 = vpow2.f32 %v1650_v26  ;;  %1664 = vadd.xlane.f32.xlu2 %v1663_v27  ;;  %v2741_v26 = vor.u32 %v2894_v24, %v2740_v23  ;;  %v2742_v27 = vld [vmem:[#allocation16 + $0x78] sm:$0xf0] }
 0x8ec   : > { %v1632_v28 = vpop.xlane.xlu2 %1631 }
 0x8ed   : > { %v1642_v29 = vsub.f32 %v1553_v10, %v1632_v28  ;;  %v2732_v28 = vld [vmem:[#allocation16 + $0x60] sm:$0xf] }
 0x8ef   : > { %v3088_v30 = vpop.eup %3087  ;;  %v1646_v31 = vmul.f32 1.442695, %v1642_v29  ;;  %v2892_v29 = vld [vmem:[#allocation16 + $0x64] sm:$0xf0] }
 0x8f0   : > { %v1660_v32 = vsel %vm1629_vm2, %v3088_v30, 0.0 }
 0x8f1   : > { %3089 = vpow2.f32 %v1646_v31  ;;  %1661 = vadd.xlane.f32.xlu2 %v1660_v32  ;;  %v2733_v31 = vor.u32 %v2892_v29, %v2732_v28  ;;  %v2907_v28 = vld [vmem:[#allocation18 + $0x60] sm:$0xff]  ;;  %v2898_v29 = vld [vmem:[#allocation18 + $0x18] sm:$0xff] }
 0x8f7   : > { %v3090_v33 = vpop.eup %3089 }
 0x8f8   : > { %v1654_v34 = vsel %vm1629_vm2, %v3090_v33, 0.0 }
 0x8f9   : > { %1655 = vadd.xlane.f32.xlu1 %v1654_v34  ;;  %v2890_v34 = vld [vmem:[#allocation16 + $0x54] sm:$0xf0] }
 0x909   : > { %1698 = vrot.lane.b32.xlu2 %v3863_v45, %s3497_s22 }
 0x94a   : > { %v1659_v35 = vpop.xlane.xlu1 %1658 }
 0x95c   : > { %v1665_v8 = vpop.xlane.xlu2 %1664 }
 0x95d   : > { %3091 = vrcp.f32 %v1665_v8  ;;  %v2889_v8 = vld [vmem:[#allocation16 + $0x54] sm:$0xf] }
 0x95e   : > { %3093 = vrcp.f32 %v1659_v35 }
 0x963   : > { %v3092_v36 = vpop.eup %3091 }
 0x964   : > { %v1673_v37 = vmul.f32 %v3092_v36, %v3086_v25  ;;  %v1662_v38 = vpop.xlane.xlu2 %1661  ;;  %v3094_v40 = vpop.eup %3093  ;;  %v2893_v25 = vld [vmem:[#allocation16 + $0x74] sm:$0xf]  ;;  %v2726_v36 = vld [vmem:[#allocation16 + $0x58] sm:$0xf0] }
 0x965   : > { %3095 = vrcp.f32 %v1662_v38  ;;  %v1671_v42 = vmul.f32 %v3094_v40, %v3084_v16  ;;  %v2888_v38 = vld [vmem:[#allocation16 + $0x44] sm:$0xf0]  ;;  %v2887_v40 = vld [vmem:[#allocation16 + $0x44] sm:$0xf] }
 0x966   : > { %v1677_v39 = vpack.c.bf16 %v1673_v37, %v1673_v37  ;;  %v2716_v37 = vld [vmem:[#allocation16 + $0x40] sm:$0xf] }
 0x967   : > { %v1675_v45 = vpack.c.bf16 %v1671_v42, %v1671_v42  ;;  %v2718_v42 = vld [vmem:[#allocation16 + $0x48] sm:$0xf0] }
 0x968   : > { %2647 = vmatmul.msk.bf16.vlgmr.msrb.gmra.mxu0 %vm1629_vm2, %v1677_v39  ;;  %v2729_v39 = vor.u32 %v2889_v8, %v2726_v36 }
 0x96b   : > { %v3096_v43 = vpop.eup %3095 }
 0x96c   : > { %v1672_v44 = vmul.f32 %v3096_v43, %v3088_v30  ;;  %v1656_v46 = vpop.xlane.xlu1 %1655  ;;  %v1699_v47 = vpop.permute.xlu2 %1698  ;;  %v2891_v30 = vld [vmem:[#allocation16 + $0x64] sm:$0xf]  ;;  %v2717_v43 = vor.u32 %v2888_v38, %v2716_v37  ;;  %v1892_v37 = vstv %s2680_s17 }
 0x96d   : > { %3097 = vrcp.f32 %v1656_v46  ;;  %1711 = vmatpush.bf16.msrb.mxu2 %v1699_v47  ;;  %v2708_v46 = vld [vmem:[#allocation16 + $0x30] sm:$0xf]  ;;  %v2886_v47 = vld [vmem:[#allocation16 + $0x34] sm:$0xf0] }
 0x96e   : > { %v1676_v48 = vpack.c.bf16 %v1672_v44, %v1672_v44  ;;  %v2721_v44 = vor.u32 %v2887_v40, %v2718_v42 }
 0x970   : > { %2645 = vmatmul.msk.bf16.vlgmr.msrb.gmra.mxu2 %vm1629_vm2, %v1675_v45  ;;  %2646 = vmatmul.msk.bf16.vlgmr.msra.gmra.mxu3 %vm1629_vm2, %v1676_v48  ;;  %v2885_v45 = vld [vmem:[#allocation16 + $0x34] sm:$0xf]  ;;  %v2710_v48 = vld [vmem:[#allocation16 + $0x38] sm:$0xf0] }
 0x971   : > { %2000 = vmatpush.bf16.msra.mxu2 %v2741_v26  ;;  %v2908_v26 = vld [vmem:[#allocation18 + $0x68] sm:$0xff] }
 0x973   : > { %v3098_v49 = vpop.eup %3097 }
 0x974   : > { %v1670_v50 = vmul.f32 %v3098_v49, %v3090_v33  ;;  %v2724_v33 = vld [vmem:[#allocation16 + $0x50] sm:$0xf]  ;;  %v2709_v49 = vor.u32 %v2886_v47, %v2708_v46 }
 0x975   : > { %2001 = vmatpush.bf16.msra.mxu2 %v2733_v31  ;;  %v2725_v35 = vor.u32 %v2890_v34, %v2724_v33  ;;  %v2897_v33 = vld [vmem:[#allocation18 + $0x10] sm:$0xff] }
 0x976   : > { %v1674_v51 = vpack.c.bf16 %v1670_v50, %v1670_v50  ;;  %v2713_v50 = vor.u32 %v2885_v45, %v2710_v48  ;;  %v2905_v34 = vld [vmem:[#allocation18 + $0x50] sm:$0xff]  ;;  %v2896_v48 = vld [vmem:[#allocation18 + $0x8] sm:$0xff] }
 0x978   : > { %2644 = vmatmul.msk.bf16.vlgmr.msrb.gmra.mxu1 %vm1629_vm2, %v1674_v51  ;;  %v2700_v51 = vld [vmem:[#allocation16 + $0x20] sm:$0xf] }
 0x979   : > { %2002 = vmatpush.bf16.msra.mxu2 %v2725_v35 }
 0x97d   : > { %2003 = vmatpush.bf16.msra.mxu2 %v2717_v43 }
 0x981   : > { %2004 = vmatpush.bf16.msra.mxu2 %v2709_v49  ;;  %v2904_v49 = vld [vmem:[#allocation18 + $0x48] sm:$0xff] }
 0x9e5   : > { %v1751_v52 = vpop.f32.mrf.mxu0 }
 0x9e6   : > { %1764 = vrot.lane.b32.xlu1 %v1751_v52, %s3497_s22  ;;  %v2884_v52 = vld [vmem:[#allocation16 + $0x24] sm:$0xf0] }
 0x9ed   : > { %v1753_v53 = vpop.f32.mrf.mxu0 }
 0x9f3   : > { %v1713_v54 = vpop.f32.mrf.mxu2  ;;  %v1732_v55 = vpop.f32.mrf.mxu3 }
 0x9f4   : > { %1760 = vrot.lane.b32.xlu0 %v1732_v55, %s3496_s23  ;;  %1756 = vrot.lane.b32.xlu2 %v1713_v54, %s3495_s6  ;;  %v2883_v54 = vld [vmem:[#allocation16 + $0x24] sm:$0xf]  ;;  %v2702_v55 = vld [vmem:[#allocation16 + $0x28] sm:$0xf0]  ;;  %s2811_s6 = sshll.u32 %s3602_s25, 3  ;;  %s2191_s25 = scalar_lea.sflag [#allocation5], %s3755_s2 }
 0x9f5   : > { %v1694_v0 = vpop.f32.mrf.mxu1  ;;  %s2201_s15 = scalar_lea.hbm %s4019_s12, %s2811_s6 }
 0x9f6   : > { %s2205_s16 = sshll.u32 %s2201_s15, 4  ;;  %s2206_s16 = int_to_ptr.hbm [resolvable:$true] %s2205_s16 }
 0x9f7   : > { %s3402_s13 = sshra.s32 %s2206_s16, 4  ;;  %s3403_s13 = int_to_ptr.hbm [resolvable:$true] %s3402_s13 }
 0x9f8   : > { %s3404_s17 = scalar_lea.hbm %s3403_s13, 8  ;;  %p3409_p7 = scmp.lt.s32.totalorder %s3403_s13, %s4019_s12 }
 0x9f9   : > { %p3405_p1 = scmp.ne.s32.totalorder %s3403_s13, %s3404_s17  ;;  %p3410_p9 = scmp.lt.s32.totalorder %s3408_s8, %s3404_s17 }
 0x9fb   : > { %v1715_v56 = vpop.f32.mrf.mxu2  ;;  %v1734_v57 = vpop.f32.mrf.mxu3  ;;  %p3406_p3 = pnand %p3405_p1, %p3699_p4  ;;  %p3411_p5 = por %p3410_p9, %p3409_p7 }
 0x9fc   : > { %v2701_v56 = vor.u32 %v2884_v52, %v2700_v51  ;;  %v2705_v57 = vor.u32 %v2883_v54, %v2702_v55  ;;  %v2903_v51 = vld [vmem:[#allocation18 + $0x40] sm:$0xff] }
 0x9fd   : > { %v1696_v10 = vpop.f32.mrf.mxu1  ;;  %p3407_p12 = pneg %p3406_p3 }
 0x9fe   : > { %v2692_v10 = vld [vmem:[#allocation16 + $0x10] sm:$0xf]  ;;  %2005 = vmatpush.bf16.msra.mxu2 %v2701_v56 }
 0x9ff   : > { %v2693_v61 = vor.u32 %v2882_v58, %v2692_v10  ;;  %p3412_p8 = pnand %p3411_p5, %p3407_p12 }
 0xa02   : > { %2006 = vmatpush.bf16.msra.mxu2 %v2693_v61 }
 0xa4e   : > { %v1757_v3 = vpop.permute.xlu2 %1756 }
 0xa4f   : > { %v1767_v4 = vsel %vm948_vm7, %v1694_v0, %v1757_v3  ;;  %v2686_v3 = vld [vmem:[#allocation16 + $0x8] sm:$0xf0] }
 0xa58   : > { %v1765_v6 = vpop.permute.xlu1 %1764 }
 0xa66   : > { %v1761_v5 = vpop.permute.xlu0 %1760 }
 0xa67   : > { %v1768_v9 = vsel %vm1187_vm10, %v1767_v4, %v1761_v5 }
 0xa68   : > { %v1769_v11 = vsel %vm1189_vm11, %v1768_v9, %v1765_v6  ;;  %v2685_v6 = vor.u32 %v2880_v1, %v2684_v63  ;;  %v2689_v9 = vor.u32 %v2879_v2, %v2686_v3 }
 0xa69   : > { %v1770_v12 = vpack.c.bf16 %v1769_v11, %v1769_v11 }
 0xa6a   : > { %2007 = vmatpush.bf16.msra.mxu2 %v2685_v6 }
 0xa6b   : > { %1771 = vst [vmem:[#allocation2] sm:$0xf] %v1770_v12 }
 0xa72   : > { %v1772_v13 = vld [vmem:[#allocation2] sm:$0xf] }
 0xa73   : > { %1849 = vmatmul.bf16.vlgmr.msra.gmra.mxu1 %v1772_v13 }
 0xaf0   : > { %v1850_v15 = vpop.f32.mrf.mxu1 }
 0xaf1   : > { %v1851_v16 = vadd.f32 %v3055_v14, %v1850_v15  ;;  %v2902_v14 = vld [vmem:[#allocation18 + $0x38] sm:$0xff] }
 0xaf2   : > { %v2910_v15 = vld [vmem:[#allocation18 + $0x78] sm:$0xff]  ;;  %2162 = vmatpush.bf16.msra.mxu0 %v2902_v14 }
 0xaf3   : > { %v3911_v17 = vadd.f32 %v1851_v16, %v3848_v41  ;;  %v2745_v41 = vor.u32 %v2893_v25, %v2742_v27  ;;  %2175 = vmatpush.bf16.msrb.mxu1 %v2910_v15  ;;  %v2900_v25 = vld [vmem:[#allocation18 + $0x28] sm:$0xff] }
 0xaf5   : > { %1857 = vadd.xlane.f32.xlu2 %v3911_v17  ;;  %2013 = vmatpush.bf16.msrb.mxu3 %v2745_v41  ;;  %v2899_v41 = vld [vmem:[#allocation18 + $0x20] sm:$0xff] }
 0xaf8   : > { %v1852_v18 = vpop.f32.mrf.mxu1 }
 0xaf9   : > { %v2901_v18 = vld [vmem:[#allocation18 + $0x30] sm:$0xff] }
 0xafa   : > { %2163 = vmatpush.bf16.msra.mxu0 %v2901_v18 }
 0xafe   : > { %2164 = vmatpush.bf16.msra.mxu0 %v2900_v25 }
 0xb02   : > { %2165 = vmatpush.bf16.msra.mxu0 %v2899_v41 }
 0xb06   : > { %2166 = vmatpush.bf16.msra.mxu0 %v2898_v29 }
 0xb0a   : > { %2167 = vmatpush.bf16.msra.mxu0 %v2897_v33 }
 0xb0e   : > { %2168 = vmatpush.bf16.msra.mxu0 %v2896_v48 }
 0xb68   : > { %v1858_v19 = vpop.xlane.xlu2 %1857 }
 0xb69   : > { %v1859_v20 = vmul.f32 %v1858_v19, %v3796_v7  ;;  %v2734_v7 = vld [vmem:[#allocation16 + $0x68] sm:$0xf0]  ;;  %v2909_v19 = vld [vmem:[#allocation18 + $0x70] sm:$0xff] }
 0xb6a   : > { %v2737_v32 = vor.u32 %v2891_v30, %v2734_v7  ;;  %2176 = vmatpush.bf16.msrb.mxu1 %v2909_v19  ;;  %v2906_v30 = vld [vmem:[#allocation18 + $0x58] sm:$0xff] }
 0xb6b   : > { %v3916_v21 = vsub.f32 %v3911_v17, %v1859_v20 }
 0xb6c   : > { %2014 = vmatpush.bf16.msrb.mxu3 %v2737_v32 }
 0xb6d   : > { %v1861_v22 = vmul.f32 %v3916_v21, %v3916_v21  ;;  %v1893_v40 = vmul.f32 %v1892_v37, %v3916_v21  ;;  %v1914_v21 = vld [vmem:[%s4017_s9] sm:$0x3] }
 0xb6e   : > { %2177 = vmatpush.bf16.msrb.mxu1 %v2908_v26  ;;  %v1916_v52 = vperm.slane %v1914_v21, 0 }
 0xb6f   : > { %1862 = vadd.xlane.f32.xlu0 %v1861_v22 }
 0xb70   : > { %2015 = vmatpush.bf16.msrb.mxu3 %v2729_v39 }
 0xb72   : > { %2178 = vmatpush.bf16.msrb.mxu1 %v2907_v28 }
 0xb74   : > { %2016 = vmatpush.bf16.msrb.mxu3 %v2721_v44  ;;  %v1895_v44 = vstv %s2681_s7 }
 0xb76   : > { %2179 = vmatpush.bf16.msrb.mxu1 %v2906_v30 }
 0xb78   : > { %2017 = vmatpush.bf16.msrb.mxu3 %v2713_v50  ;;  %v2895_v50 = vld [vmem:[#allocation18] sm:$0xff] }
 0xb79   : > { %2169 = vmatpush.bf16.msra.mxu0 %v2895_v50 }
 0xb7a   : > { %2180 = vmatpush.bf16.msrb.mxu1 %v2905_v34 }
 0xb7c   : > { %2018 = vmatpush.bf16.msrb.mxu3 %v2705_v57 }
 0xb7e   : > { %2181 = vmatpush.bf16.msrb.mxu1 %v2904_v49 }
 0xb80   : > { %2019 = vmatpush.bf16.msrb.mxu3 %v2697_v62  ;;  %v3056_v62 = vld [vmem:[%s4018_s24] ss:$0 sm:$0xff] }
 0xb82   : > { %2182 = vmatpush.bf16.msrb.mxu1 %v2903_v51 }
 0xb84   : > { %2020 = vmatpush.bf16.msrb.mxu3 %v2689_v9 }
 0xbe2   : > { %v1863_v53 = vpop.xlane.xlu0 %1862 }
 0xbe3   : > { %v1864_v0 = vmul.f32 0.007874016, %v1863_v53  ;;  %v1917_v53 = vperm.slane %v1914_v21, 1 }
 0xbe5   : > { %3099 = vrsqrt.f32 %v1864_v0  ;;  %vm1872_vm3 = vcmp.eq.f32.partialorder %v1864_v0, inf  ;;  %v1875_v22 = vand.u32 2147483648, %v1864_v0  ;;  %vm1874_vm4 = vcmp.eq.f32.partialorder %v1864_v0, 0.0 }
 0xbeb   : > { %v3100_v4 = vpop.eup %3099 }
 0xbec   : > { %v1866_v5 = vmul.f32 %v3100_v4, %v1864_v0 }
 0xbee   : > { %v1867_v11 = vmul.f32 %v3100_v4, %v1866_v5 }
 0xbf0   : > { %v1868_v12 = vmul.f32 0.5, %v1867_v11 }
 0xbf2   : > { %v1869_v13 = vsub.f32 1.5, %v1868_v12 }
 0xbf4   : > { %v1870_v16 = vmul.f32 %v3100_v4, %v1869_v13 }
 0xbf6   : > { %v1871_v20 = vmul.f32 %v1870_v16, %v1864_v0 }
 0xbf8   : > { %v1873_v23 = vsel %vm1872_vm3, %v1864_v0, %v1871_v20 }
 0xbf9   : > { %v1876_v24 = vsel %vm1874_vm4, %v1875_v22, %v1873_v23 }
 0xbfa   : > { %v1877_v27 = vadd.f32 1e-06, %v1876_v24 }
 0xbfc   : > { %3101 = vrcp.f32 %v1877_v27  ;;  %v1889_v8 = vand.u32 2147483648, %v1877_v27  ;;  %v1887_v36 = vand.u32 2147483647, %v1877_v27  ;;  %vm1883_vm6 = vweird.f32 %v1877_v27 }
 0xbfe   : > { %v1890_v39 = vor.u32 1.1754944e-38, %v1889_v8  ;;  %vm1888_vm8 = vcmp.eq.f32.partialorder %v1887_v36, 8.507059e+37 }
 0xc02   : > { %v3102_v31 = vpop.eup %3101 }
 0xc03   : > { %v1879_v7 = vmul.f32 %v3102_v31, %v1877_v27  ;;  %vm1884_vm5 = vweird.f32 %v3102_v31 }
 0xc04   : > { %vm1885_vm7 = vmor %vm1883_vm6, %vm1884_vm5 }
 0xc05   : > { %v1880_v32 = vsub.f32 1.0, %v1879_v7 }
 0xc07   : > { %v1881_v35 = vmul.f32 %v3102_v31, %v1880_v32 }
 0xc09   : > { %v1882_v38 = vadd.f32 %v3102_v31, %v1881_v35 }
 0xc0b   : > { %v1886_v42 = vsel %vm1885_vm7, %v3102_v31, %v1882_v38 }
 0xc0c   : > { %v1891_v43 = vsel %vm1888_vm8, %v1890_v39, %v1886_v42 }
 0xc0d   : > { %v1894_v46 = vmul.f32 %v1893_v40, %v1891_v43 }
 0xc0f   : > { %v1896_v47 = vadd.f32 %v1895_v44, %v1894_v46 }
 0xc11   : > { %v1897_v45 = vpack.c.bf16 %v1896_v47, %v1896_v47 }
 0xc13   : > { %2008 = vmatmul.bf16.vlgmr.msra.gmra.mxu2 %v1897_v45  ;;  %2021 = vmatmul.bf16.vlgmr.msrb.gmra.mxu3 %v1897_v45 }
 0xc96   : > { %v2009_v54 = vpop.f32.mrf.mxu2  ;;  %v2022_v55 = vpop.f32.mrf.mxu3 }
 0xc97   : > { %v2010_v0 = vadd.f32 %v2009_v54, %v1916_v52  ;;  %v2023_v56 = vadd.f32 %v2022_v55, %v1917_v53 }
 0xc99   : > { %v2026_v57 = vmax.f32 %v2010_v0, 0.0  ;;  %v2027_v10 = vmax.f32 %v2023_v56, 0.0 }
 0xc9b   : > { %v2028_v58 = vpack.c.bf16 %v2026_v57, %v2026_v57  ;;  %v2029_v59 = vpack.c.bf16 %v2027_v10, %v2027_v10 }
 0xc9d   : > { %2170 = vmatmul.bf16.vlgmr.msra.gmra.mxu0 %v2028_v58  ;;  %2183 = vmatmul.bf16.vlgmr.msrb.gmra.mxu1 %v2029_v59 }
 0xc9e   : > { %v2011_v60 = vpop.f32.mrf.mxu2  ;;  %v2024_v61 = vpop.f32.mrf.mxu3 }
 0xd1a   : > { %v2171_v63 = vpop.f32.mrf.mxu0  ;;  %v2184_v1 = vpop.f32.mrf.mxu1 }
 0xd1b   : > { %v2172_v2 = vadd.f32 %v3056_v62, %v2171_v63 }
 0xd1d   : > { %v2185_v3 = vadd.f32 %v2184_v1, %v2172_v2 }
 0xd1f   : > { %v2188_v4 = vadd.f32 %v2185_v3, %v3911_v17 }
 0xd21   : > { %2189 = vst [vmem:[%s680_s14] sm:$0xff] %v2188_v4 }
 0xd22   : > { %v2173_v5 = vpop.f32.mrf.mxu0  ;;  %v2186_v6 = vpop.f32.mrf.mxu1 }
 0xd23   : > { %3415 = shalt.err (!%p3412_p8)
}
 0xd24   : > { %2947 = dma.vmem_to_hbm [thread:$0]  (%p3699_p4), %s2204_s26, 128, %s2206_s16, %s2191_s25  }
 0xd25 PF: > { %s2217_s2 = sand.u32 1, %s3466_s18   ;;  %p4020_p10 = scmp.ge.s32.totalorder %s3478_s21, 2 }
 0xd26   : > { %s2218_s6 = scalar_lea.sflag [#allocation5], %s2217_s2 }
 0xd27   : > { %p2982_p13 = pnand %p4020_p10, %p3703_p6 }
 0xd29   : > { %p2983_p11 = pneg %p2982_p13 }
 0xd2b   : > { %3461 = dma.done.wait (%p2983_p11), %s2218_s6, 128  }
 0xd2c   : > { %3463 = vsyncadd (%p2983_p11), %s2218_s6, 4294967168  ;;  %p35_p0 = scmp.ge.s32.totalorder %s3671_s3, 4   ;;  %s4021_s18 = smov %s3470_s19 }
 0xd2d   : > { %s4022_s19 = smov %s3474_s20  ;;  %s4023_s20 = smov %s3682_s28 }
 0xd2e   : > { %s4024_s21 = smov %s3671_s3  ;;  %37 = sbr.rel (!%p35_p0) target bundleno = 26 (0x1a), region = 171 }
 0xd33   :  { %2224 = vsyncpa [#allocation4], 1 }
 0xd34   :  { %2226 = vsyncpa [#allocation4 + $0x1], 1 }
 0xd35   :  { %2227 = vsyncpa [#allocation8], 1 }
 0xd36   :  { %2229 = vsyncpa [#allocation8 + $0x1], 1 }
 0xd37   :  { %2230 = vsyncpa [#allocation11], 1 }
 0xd38   :  { %2231 = vsyncpa [#allocation14], 1 }
 0xd39   :  { %2232 = vsyncpa [#allocation17], 1 }
 0xd3a   :  { %2233 = vsyncpa [#allocation5], 1 }
 0xd3b   :  { %2235 = vsyncpa [#allocation5 + $0x1], 1 }
 0xd3c   :  { %2236 = vsyncpa [#allocation6], 1 }
 0xd3d   :  { %2238 = vsyncpa [#allocation6 + $0x1], 1 }

// kernel: tpu_custom_call.1
= control target key start
LH: loop header
LB: loop body
LE: loop exit
PB: predicated region body
PF: predicated region fallthrough
CT: control target
= control target key end

     0   :  { %s3963_s0 = inlined_call_operand.hbm [shape: f32[2,8,128], index: 0, kind: input, shape index: {}]   ;;  %s3964_s1 = inlined_call_operand.hbm [shape: f32[2,16,128], index: 1, kind: input, shape index: {}]   ;;  %s3965_s2 = inlined_call_operand.hbm [shape: bf16[128,384], index: 2, kind: input, shape index: {}]   ;;  %s3966_s3 = inlined_call_operand.vmem [shape: f32[1,384], index: 3, kind: input, shape index: {}]   ;;  %s3967_s4 = inlined_call_operand.hbm [shape: bf16[128,128], index: 4, kind: input, shape index: {}]   ;;  %s3968_s5 = inlined_call_operand.hbm [shape: f32[1,128], index: 5, kind: input, shape index: {}]   ;;  %s3969_s6 = inlined_call_operand.hbm [shape: bf16[128,384], index: 6, kind: input, shape index: {}]   ;;  %s3970_s7 = inlined_call_operand.vmem [shape: f32[1,384], index: 7, kind: input, shape index: {}]   ;;  %s3971_s8 = inlined_call_operand.hbm [shape: bf16[128,128], index: 8, kind: input, shape index: {}]   ;;  %s3972_s9 = inlined_call_operand.vmem [shape: f32[1,128], index: 9, kind: input, shape index: {}]   ;;  %s3973_s10 = inlined_call_operand.hbm [shape: bf16[1,128,256], index: 10, kind: input, shape index: {}]   ;;  %s3974_s11 = inlined_call_operand.vmem [shape: f32[1,1,256], index: 11, kind: input, shape index: {}]   ;;  %s3975_s12 = inlined_call_operand.hbm [shape: bf16[1,256,128], index: 12, kind: input, shape index: {}]   ;;  %s3976_s13 = inlined_call_operand.vmem [shape: f32[1,128], index: 13, kind: input, shape index: {}]   ;;  %s3977_s14 = inlined_call_operand.vmem [shape: f32[3,2], index: 14, kind: input, shape index: {}]   ;;  %s3978_s15 = inlined_call_operand.hbm [shape: f32[2,8,128], index: 15, kind: output, shape index: {}]  }
   0x1   :  { %3983 = sst [smem:[#allocation29_spill]] %s3965_s2 }
   0x2   :  { %3984 = sst [smem:[#allocation30_spill]] %s3966_s3 }
   0x3   :  { %3985 = sst [smem:[#allocation31_spill]] %s3967_s4 }
   0x4   :  { %3986 = sst [smem:[#allocation32_spill]] %s3968_s5 }
   0x5   :  { %3987 = sst [smem:[#allocation33_spill]] %s3969_s6 }
   0x6   :  { %3988 = sst [smem:[#allocation34_spill]] %s3970_s7 }
   0x7   :  { %3989 = sst [smem:[#allocation35_spill]] %s3971_s8 }
   0x8   :  { %3990 = sst [smem:[#allocation36_spill]] %s3972_s9 }
   0x9   :  { %3991 = sst [smem:[#allocation37_spill]] %s3973_s10 }
   0xa   :  { %3992 = sst [smem:[#allocation38_spill]] %s3974_s11 }
   0xb   :  { %3993 = sst [smem:[#allocation39_spill]] %s3975_s12 }
   0xc   :  { %3994 = sst [smem:[#allocation40_spill]] %s3976_s13 }
   0xd   :  { %3995 = sst [smem:[#allocation41_spill]] %s3977_s14 }
   0xe   :  { %3996 = sst [smem:[#allocation42_spill]] %s3978_s15 }
   0xf   :  { %20 = vsyncpa [#allocation4], 0 }
  0x10   :  { %22 = vsyncpa [#allocation4 + $0x1], 0 }
  0x11   :  { %23 = vsyncpa [#allocation8], 0 }
  0x12   :  { %25 = vsyncpa [#allocation8 + $0x1], 0 }
  0x13   :  { %26 = vsyncpa [#allocation11], 0 }
  0x14   :  { %27 = vsyncpa [#allocation14], 0 }
  0x15   :  { %28 = vsyncpa [#allocation17], 0 }
  0x16   :  { %29 = vsyncpa [#allocation6], 0 }
  0x17   :  { %30 = vsyncpa [#allocation5], 0 }
  0x18   :  { %32 = vsyncpa [#allocation5 + $0x1], 0  ;;  %s3578_s18 = smov 0   ;;  %s3580_s19 = smov 0  }
  0x19   :  { %s3582_s20 = smov 0   ;;  %s3584_s21 = smov 0  }
  0x1a LB: > { %s3997_s2 = sld [smem:[#allocation29_spill]]  ;;  %s3602_s25 = sadd.s32 4294967295, %s3478_s21   ;;  %s3478_s21 = sphi %s3584_s21, %s4024_s21   ;;  %s3474_s20 = sphi %s3582_s20, %s4023_s20   ;;  %s3470_s19 = sphi %s3580_s19, %s4022_s19   ;;  %s3466_s18 = sphi %s3578_s18, %s4021_s18  }
  0x1b   : > { %p2378_p0 = scmp.ge.s32.totalorder %s3478_s21, 1  ;;  %p59_p1 = scmp.eq.s32.totalorder %s3602_s25, 0 }
  0x1c   : > { %p394_p2 = scmp.lt.s32.totalorder %s3478_s21, 3  ;;  %s3480_s27 = smov [#allocation9]  }
  0x1d   : > { %s407_s28 = sshll.u32 %s3480_s27, 4  ;;  %s3999_s4 = sld [smem:[#allocation31_spill]]  ;;  %s408_s28 = int_to_ptr.vmem [resolvable:$true] %s407_s28 }
  0x1e   : > { %p3607_p3 = pnand %p2378_p0, %p394_p2  ;;  %s3481_s22 = smov [#allocation10]  }
  0x1f   : > { %s424_s23 = sshll.u32 %s3481_s22, 4  ;;  %s3482_s27 = smov 192   ;;  %s425_s23 = int_to_ptr.vmem [resolvable:$true] %s424_s23 }
  0x20   : > { %s405_s24 = sshll.u32 %s3997_s2, 4  ;;  %p2949_p4 = pneg %p3607_p3  ;;  %s406_s24 = int_to_ptr.hbm [resolvable:$true] %s405_s24 }
  0x21   : > { %s3483_s2 = smov 12   ;;  %s3484_s15 = smov 64  }
  0x22   : > { %p3619_p6 = pnand %p2949_p4, %p59_p1  ;;  %s3485_s29 = smov 4  }
  0x23   : > { %s422_s16 = sshll.u32 %s3999_s4, 4  ;;  %s4001_s6 = sld [smem:[#allocation33_spill]]  ;;  %s423_s16 = int_to_ptr.hbm [resolvable:$true] %s422_s16 }
  0x24   : > { %2952 = dma.hbm_to_vmem [thread:$0]  (!%p3619_p6), %s406_s24, 3072, %s408_s28, [#allocation8], %s3482_s27, %s3482_s27, %s3483_s2  }
  0x25   : > { %2955 = dma.hbm_to_vmem [thread:$0]  (!%p3619_p6), %s423_s16, 1024, %s425_s23, [#allocation11], %s3484_s15, %s3484_s15, %s3485_s29  }
  0x26   : > { %s3486_s11 = smov [#allocation13]   ;;  %s4002_s10 = sld [smem:[#allocation37_spill]] }
  0x27   : > { %s450_s22 = sshll.u32 %s3486_s11, 4  ;;  %s3487_s28 = smov [#allocation16]   ;;  %s451_s22 = int_to_ptr.vmem [resolvable:$true] %s450_s22 }
  0x28   : > { %s484_s3 = sshll.u32 %s3487_s28, 4  ;;  %s3981_s16 = smov 128   ;;  %s485_s3 = int_to_ptr.vmem [resolvable:$true] %s484_s3 }
  0x29   : > { %s448_s13 = sshll.u32 %s4001_s6, 4  ;;  %s3982_s23 = smov 8   ;;  %s449_s13 = int_to_ptr.hbm [resolvable:$true] %s448_s13 }
  0x2a   : > { %2961 = dma.hbm_to_vmem [thread:$0]  (!%p3619_p6), %s449_s13, 3072, %s451_s22, [#allocation14], %s3482_s27, %s3482_s27, %s3483_s2  }
  0x2b   : > { %s4003_s5 = sld [smem:[#allocation32_spill]]  ;;  %s3490_s9 = smov [#allocation12]  }
  0x2c   : > { %s482_s24 = sshll.u32 %s4002_s10, 4  ;;  %s439_s30 = sshll.u32 %s3490_s9, 4  ;;  %s483_s24 = int_to_ptr.hbm [resolvable:$true] %s482_s24  ;;  %s440_s30 = int_to_ptr.vmem [resolvable:$true] %s439_s30 }
  0x2d   : > { %2967 = dma.hbm_to_vmem [thread:$0]  (!%p3619_p6), %s483_s24, 2048, %s485_s3, [#allocation17], %s3981_s16, %s3981_s16, %s3982_s23  }
  0x2e   : > { %s4004_s8 = sld [smem:[#allocation35_spill]]  ;;  %s3491_s3 = smov [#allocation15]  }
  0x2f   : > { %s467_s22 = sshll.u32 %s3491_s3, 4  ;;  %s4005_s12 = sld [smem:[#allocation39_spill]]  ;;  %s468_s22 = int_to_ptr.vmem [resolvable:$true] %s467_s22 }
  0x30   : > { %s4006_s14 = sld [smem:[#allocation41_spill]]  ;;  %s3493_s13 = smov [#allocation19]  }
  0x31   : > { %s437_s7 = sshll.u32 %s4003_s5, 4  ;;  %s3671_s3 = sadd.s32 1, %s3478_s21   ;;  %s438_s7 = int_to_ptr.hbm [resolvable:$true] %s437_s7 }
  0x32   : > { %2958 = dma.hbm_to_vmem [thread:$0]  (!%p3619_p6), %s438_s7, 16, %s440_s30, [#allocation11]  }
  0x33   : > { %s3492_s30 = smov [#allocation18]   ;;  %s45_s24 = sadd.s32 1, %s3474_s20 }
  0x34   : > { %s465_s27 = sshll.u32 %s4004_s8, 4  ;;  %s501_s2 = sshll.u32 %s3492_s30, 4  ;;  %s466_s27 = int_to_ptr.hbm [resolvable:$true] %s465_s27  ;;  %s502_s2 = int_to_ptr.vmem [resolvable:$true] %s501_s2 }
  0x35   : > { %s499_s4 = sshll.u32 %s4005_s12, 4  ;;  %p52_p8 = scmp.ne.s32.totalorder %s3474_s20, %s3470_s19  ;;  %s500_s4 = int_to_ptr.hbm [resolvable:$true] %s499_s4 }
  0x36   : > { %2964 = dma.hbm_to_vmem [thread:$0]  (!%p3619_p6), %s466_s27, 1024, %s468_s22, [#allocation14], %s3484_s15, %s3484_s15, %s3485_s29  }
  0x37   : > { %s517_s9 = sshll.u32 %s4006_s14, 4  ;;  %s2377_s27 = sadd.s32 4294967294, %s3478_s21   ;;  %s518_s9 = int_to_ptr.vmem [resolvable:$true] %s517_s9 }
  0x38   : > { %2970 = dma.hbm_to_vmem [thread:$0]  (!%p3619_p6), %s500_s4, 2048, %s502_s2, [#allocation17], %s3484_s15, %s3484_s15, %s3485_s29  }
  0x39   : > { %2973 = dma.vmem_to_smem (!%p3619_p6), %s518_s9, 64, %s3493_s13, [#allocation6]  }
  0x3a   : > { %s42_s22 = ssub.s32 %s3478_s21, %s3671_s3  ;;  %p53_p9 = scmp.eq.s32.totalorder %s3478_s21, 0 }
  0x3b   : > { %p43_p7 = scmp.eq.s32.totalorder %s42_s22, 0  ;;  %p58_p10 = scmp.ne.s32.totalorder %s3470_s19, %s3466_s18 }
  0x3c   : > { %p3684_p11 = por %p53_p9, %p52_p8  ;;  %p381_p13 = scmp.eq.s32.totalorder %s3602_s25, 1 }
  0x3d   : > { %s3682_s28 = scalar_select %p43_p7, %s3474_s20, %s45_s24  }
  0x3e   : > { %p3690_p12 = por %p59_p1, %p58_p10  ;;  %p387_p0 = scmp.eq.s32.totalorder %s2377_s27, 1 }
  0x3f   : > { %p2993_p2 = scmp.lt.s32.totalorder %s3478_s21, 2  ;;  %s3697_s29 = sand.u32 1, %s3474_s20  }
  0x40   : > { %p3699_p4 = por %p381_p13, %p52_p8  ;;  %p3703_p6 = por %p387_p0, %p58_p10 }
  0x41   : > { %s2388_s7 = sshll.u32 %s3697_s29, 3  ;;  %s2389_s9 = sshll.u32 %s3478_s21, 3 }
  0x42   : > { %s536_s13 = scalar_lea.hbm %s3963_s0, %s2389_s9  ;;  %s532_s27 = scalar_lea.vmem [#allocation3], %s2388_s7 }
  0x43   : > { %s540_s22 = sshll.u32 %s532_s27, 4  ;;  %s538_s24 = sshll.u32 %s536_s13, 4  ;;  %s541_s22 = int_to_ptr.vmem [resolvable:$true] %s540_s22  ;;  %s539_s24 = int_to_ptr.hbm [resolvable:$true] %s538_s24 }
  0x44   : > { %p3714_p7 = pnand %p2993_p2, %p3684_p11  ;;  %s2390_s23 = sshll.u32 %s3697_s29, 4 }
  0x45   : > { %s547_s5 = sand.u32 1, %s3478_s21   ;;  %s529_s6 = scalar_lea.sflag [#allocation4], %s3697_s29 }
  0x46   : > { %s3328_s8 = sshra.s32 %s539_s24, 4  ;;  %p3332_p9 = pneg %p3714_p7  ;;  %s3329_s8 = int_to_ptr.hbm [resolvable:$true] %s3328_s8 }
  0x47   : > { %s3330_s10 = scalar_lea.hbm %s3329_s8, 8  ;;  %s3335_s9 = scalar_lea.hbm %s3963_s0, 16 }
  0x48   : > { %p3331_p8 = scmp.ne.s32.totalorder %s3329_s8, %s3330_s10  ;;  %p3336_p11 = scmp.lt.s32.totalorder %s3329_s8, %s3963_s0 }
  0x49   : > { %p3337_p0 = scmp.lt.s32.totalorder %s3335_s9, %s3330_s10 }
  0x4a   : > { %p3333_p10 = pnand %p3332_p9, %p3331_p8 }
  0x4b   : > { %p3338_p2 = por %p3337_p0, %p3336_p11 }
  0x4c   : > { %p3334_p13 = pneg %p3333_p10 }
  0x4e   : > { %p3339_p5 = pnand %p3338_p2, %p3334_p13 }
  0x50   : > { %3342 = shalt.err (!%p3339_p5)
}
  0x51   : > { %2977 = dma.hbm_to_vmem [thread:$0]  (!%p3714_p7), %s539_s24, 128, %s541_s22, %s529_s6  }
  0x52   : > { %s551_s29 = scalar_lea.vmem [#allocation7], %s2390_s23  ;;  %s2814_s27 = sshll.u32 %s3478_s21, 4 }
  0x53   : > { %s559_s13 = sshll.u32 %s551_s29, 4  ;;  %s556_s7 = scalar_lea.hbm %s3964_s1, %s2814_s27  ;;  %s560_s13 = int_to_ptr.vmem [resolvable:$true] %s559_s13 }
  0x54   : > { %s557_s14 = sshll.u32 %s556_s7, 4  ;;  %s548_s8 = scalar_lea.sflag [#allocation8], %s547_s5  ;;  %s558_s14 = int_to_ptr.hbm [resolvable:$true] %s557_s14 }
  0x55   : > { %s3358_s10 = sshra.s32 %s558_s14, 4  ;;  %s3365_s22 = scalar_lea.hbm %s3964_s1, 32  ;;  %s3359_s10 = int_to_ptr.hbm [resolvable:$true] %s3358_s10 }
  0x56   : > { %s3360_s9 = scalar_lea.hbm %s3359_s10, 16  ;;  %p3366_p13 = scmp.lt.s32.totalorder %s3359_s10, %s3964_s1 }
  0x57   : > { %p3361_p5 = scmp.ne.s32.totalorder %s3359_s10, %s3360_s9  ;;  %p3367_p11 = scmp.lt.s32.totalorder %s3365_s22, %s3360_s9 }
  0x59   : > { %p3363_p8 = pnand %p3361_p5, %p3332_p9  ;;  %p3368_p0 = por %p3367_p11, %p3366_p13 }
  0x5b   : > { %p3364_p10 = pneg %p3363_p8 }
  0x5d   : > { %p3369_p2 = pnand %p3368_p0, %p3364_p10 }
  0x5f   : > { %3372 = shalt.err (!%p3369_p2)
}
  0x60   : > { %s4012_s5 = smov 8   ;;  %s4013_s12 = smov 128  }
  0x61   : > { %2980 = dma.hbm_to_vmem [thread:$0]  (!%p3714_p7), %s558_s14, 256, %s560_s13, %s548_s8, %s4013_s12, %s4013_s12, %s4012_s5  }
  0x62   : > { %571 = sbr.rel (%p3607_p3) target bundleno = 3365 (0xd25), region = 80  ;;  %s3755_s2 = sand.u32 (!%p3607_p3), 1, %s3470_s19  }
  0x63   : > { %s2394_s29 = sshll.u32 (!%p3607_p3), %s3755_s2, 3  ;;  %s574_s27 = scalar_lea.sflag (!%p3607_p3), [#allocation4], %s3755_s2 }
  0x64   : > { %s577_s15 = scalar_lea.vmem (!%p3607_p3), [#allocation3], %s2394_s29 }
  0x67   : > { %3433 = dma.done.wait (%p3690_p12), %s574_s27, 128  }
  0x68   : > { %3435 = vsyncadd (%p3690_p12), %s574_s27, 4294967168  ;;  %s583_s14 = sand.u32 1, %s3602_s25   ;;  %s2395_s26 = sshll.u32 %s3755_s2, 4 }
  0x69   : > { %s584_s16 = scalar_lea.sflag [#allocation8], %s583_s14  ;;  %s3767_s13 = scalar_lea.vmem [#allocation7], %s2395_s26 }
  0x6a   : > { %3437 = dma.done.wait (%p3690_p12), %s584_s16, 256  }
  0x6b   : > { %3439 = vsyncadd (%p3690_p12), %s584_s16, 4294967040 }
  0x6c   : > { %3441 = dma.done.wait (%p59_p1), [#allocation8], 3072  }
  0x6d   : > { %3443 = vsyncadd (%p59_p1), [#allocation8], 4294964224 }
  0x6e   : > { %3445 = dma.done.wait (%p59_p1), [#allocation11], 1040  }
  0x6f   : > { %3447 = vsyncadd (%p59_p1), [#allocation11], 4294966256 }
  0x70   : > { %3449 = dma.done.wait (%p59_p1), [#allocation14], 4096  }
  0x71   : > { %3451 = vsyncadd (%p59_p1), [#allocation14], 4294963200 }
  0x72   : > { %3453 = dma.done.wait (%p59_p1), [#allocation17], 4096  }
  0x73   : > { %3455 = vsyncadd (%p59_p1), [#allocation17], 4294963200 }
  0x74   : > { %3457 = dma.done.wait (%p59_p1), [#allocation6], 64  }
  0x75   : > { %3459 = vsyncadd (%p59_p1), [#allocation6], 4294967232 }
  0x76   : > { %633 = sfence }
  0x77   : > { %v3793_v0 = vld [vmem:[%s577_s15] sm:$0xff]  ;;  %v3494_v1 = vmov 128.0   ;;  %v2492_v12 = vld [vmem:[#allocation9 + $0xa8] sm:$0xf]  ;;  %v2836_v14 = vld [vmem:[#allocation9 + $0xac] sm:$0xf] }
  0x78   : > { %688 = vadd.xlane.f32.xlu0 %v3793_v0  ;;  %3057 = vrcp.f32 %v3494_v1  ;;  %v2837_v13 = vld [vmem:[#allocation9 + $0xb0] sm:$0xf0]  ;;  %v2494_v16 = vld [vmem:[#allocation9 + $0xb4] sm:$0xf0]  ;;  %v2500_v17 = vld [vmem:[#allocation9 + $0xb0] sm:$0xf] }
  0x79   : > { %v2493_v15 = vor.u32 %v2837_v13, %v2492_v12  ;;  %v2838_v18 = vld [vmem:[#allocation9 + $0xb8] sm:$0xf0]  ;;  %v2497_v19 = vor.u32 %v2836_v14, %v2494_v16  ;;  %v2480_v21 = vld [vmem:[#allocation9 + $0x90] sm:$0xf]  ;;  %v2833_v23 = vld [vmem:[#allocation9 + $0x94] sm:$0xf] }
  0x7a   : > { %v2501_v20 = vor.u32 %v2838_v18, %v2500_v17  ;;  %v2834_v22 = vld [vmem:[#allocation9 + $0x98] sm:$0xf0]  ;;  %v2482_v25 = vld [vmem:[#allocation9 + $0x9c] sm:$0xf0]  ;;  %v2488_v26 = vld [vmem:[#allocation9 + $0x98] sm:$0xf] }
  0x7b   : > { %904 = vmatpush.bf16.msra.mxu0 %v2493_v15  ;;  %917 = vmatpush.bf16.msra.mxu1 %v2497_v19  ;;  %v2481_v24 = vor.u32 %v2834_v22, %v2480_v21  ;;  %v2835_v27 = vld [vmem:[#allocation9 + $0xa0] sm:$0xf0]  ;;  %v2485_v28 = vor.u32 %v2833_v23, %v2482_v25  ;;  %v2468_v30 = vld [vmem:[#allocation9 + $0x78] sm:$0xf]  ;;  %v2830_v32 = vld [vmem:[#allocation9 + $0x7c] sm:$0xf] }
  0x7c   : > { %930 = vmatpush.bf16.msra.mxu2 %v2501_v20  ;;  %v2489_v29 = vor.u32 %v2835_v27, %v2488_v26  ;;  %v2831_v31 = vld [vmem:[#allocation9 + $0x80] sm:$0xf0]  ;;  %v2470_v34 = vld [vmem:[#allocation9 + $0x84] sm:$0xf0]  ;;  %v2476_v35 = vld [vmem:[#allocation9 + $0x80] sm:$0xf] }
  0x7d   : > { %v2469_v33 = vor.u32 %v2831_v31, %v2468_v30  ;;  %v2832_v36 = vld [vmem:[#allocation9 + $0x88] sm:$0xf0]  ;;  %v2473_v37 = vor.u32 %v2830_v32, %v2470_v34  ;;  %v2456_v39 = vld [vmem:[#allocation9 + $0x60] sm:$0xf]  ;;  %v2827_v41 = vld [vmem:[#allocation9 + $0x64] sm:$0xf] }
  0x7e   : > { %v3058_v2 = vpop.eup %3057  ;;  %v2477_v38 = vor.u32 %v2832_v36, %v2476_v35  ;;  %v2828_v40 = vld [vmem:[#allocation9 + $0x68] sm:$0xf0]  ;;  %v2458_v42 = vld [vmem:[#allocation9 + $0x6c] sm:$0xf0]  ;;  %v2464_v43 = vld [vmem:[#allocation9 + $0x68] sm:$0xf] }
  0x7f   : > { %v691_v3 = vmul.f32 128.0, %v3058_v2  ;;  %vm695_vm0 = vweird.f32 %v3058_v2  ;;  %905 = vmatpush.bf16.msra.mxu0 %v2481_v24  ;;  %918 = vmatpush.bf16.msra.mxu1 %v2485_v28  ;;  %v2829_v44 = vld [vmem:[#allocation9 + $0x70] sm:$0xf0]  ;;  %v2457_v45 = vor.u32 %v2828_v40, %v2456_v39  ;;  %v2461_v46 = vor.u32 %v2827_v41, %v2458_v42  ;;  %v2444_v48 = vld [vmem:[#allocation9 + $0x48] sm:$0xf]  ;;  %s686_s17 = sld [smem:[#allocation19]] }
  0x80   : > { %931 = vmatpush.bf16.msra.mxu2 %v2489_v29  ;;  %v2465_v47 = vor.u32 %v2829_v44, %v2464_v43  ;;  %v2825_v49 = vld [vmem:[#allocation9 + $0x50] sm:$0xf0]  ;;  %v2824_v50 = vld [vmem:[#allocation9 + $0x4c] sm:$0xf]  ;;  %v2446_v51 = vld [vmem:[#allocation9 + $0x54] sm:$0xf0] }
  0x81   : > { %v692_v4 = vsub.f32 1.0, %v691_v3  ;;  %v2452_v52 = vld [vmem:[#allocation9 + $0x50] sm:$0xf]  ;;  %v2826_v53 = vld [vmem:[#allocation9 + $0x58] sm:$0xf0]  ;;  %v2445_v54 = vor.u32 %v2825_v49, %v2444_v48  ;;  %v2449_v55 = vor.u32 %v2824_v50, %v2446_v51  ;;  %s2405_s7 = sld [smem:[#allocation19 + $0x1]] }
  0x82   : > { %v2453_v56 = vor.u32 %v2826_v53, %v2452_v52  ;;  %v2432_v57 = vld [vmem:[#allocation9 + $0x30] sm:$0xf]  ;;  %v2822_v58 = vld [vmem:[#allocation9 + $0x38] sm:$0xf0]  ;;  %v2821_v59 = vld [vmem:[#allocation9 + $0x34] sm:$0xf] }
  0x83   : > { %v693_v5 = vmul.f32 %v3058_v2, %v692_v4  ;;  %906 = vmatpush.bf16.msra.mxu0 %v2469_v33  ;;  %919 = vmatpush.bf16.msra.mxu1 %v2473_v37  ;;  %v2434_v61 = vld [vmem:[#allocation9 + $0x3c] sm:$0xf0]  ;;  %v2440_v62 = vld [vmem:[#allocation9 + $0x38] sm:$0xf]  ;;  %v2823_v63 = vld [vmem:[#allocation9 + $0x40] sm:$0xf0] }
  0x84   : > { %932 = vmatpush.bf16.msra.mxu2 %v2477_v38  ;;  %v2437_v3 = vor.u32 %v2821_v59, %v2434_v61  ;;  %v2441_v4 = vor.u32 %v2823_v63, %v2440_v62  ;;  %v2820_v12 = vld [vmem:[#allocation9 + $0x28] sm:$0xf0]  ;;  %v2408_v16 = vld [vmem:[#allocation9] sm:$0xf]  ;;  %v2815_v18 = vld [vmem:[#allocation9 + $0x4] sm:$0xf] }
  0x85   : > { %v694_v6 = vadd.f32 %v3058_v2, %v693_v5  ;;  %v2420_v5 = vld [vmem:[#allocation9 + $0x18] sm:$0xf]  ;;  %v2816_v17 = vld [vmem:[#allocation9 + $0x8] sm:$0xf0]  ;;  %v2410_v19 = vld [vmem:[#allocation9 + $0xc] sm:$0xf0]  ;;  %v730_v42 = vstv %s686_s17 }
  0x86   : > { %v2416_v20 = vld [vmem:[#allocation9 + $0x8] sm:$0xf]  ;;  %v2817_v21 = vld [vmem:[#allocation9 + $0x10] sm:$0xf0]  ;;  %v2409_v24 = vor.u32 %v2816_v17, %v2408_v16  ;;  %v2413_v25 = vor.u32 %v2815_v18, %v2410_v19  ;;  %s4014_s9 = sld [smem:[#allocation30_spill]]  ;;  %vm948_vm7 = vcmask 261120  }
  0x87   : > { %v3796_v7 = vsel %vm695_vm0, %v3058_v2, %v694_v6  ;;  %907 = vmatpush.bf16.msra.mxu0 %v2457_v45  ;;  %920 = vmatpush.bf16.msra.mxu1 %v2461_v46  ;;  %v2433_v2 = vor.u32 %v2822_v58, %v2432_v57  ;;  %v2819_v6 = vld [vmem:[#allocation9 + $0x20] sm:$0xf0]  ;;  %v2417_v26 = vor.u32 %v2817_v21, %v2416_v20  ;;  %v733_v48 = vstv %s2405_s7  ;;  %s3495_s6 = smov 32   ;;  %s3496_s23 = smov 64  }
  0x88   : > { %933 = vmatpush.bf16.msra.mxu2 %v2465_v47  ;;  %v2421_v13 = vor.u32 %v2819_v6, %v2420_v5  ;;  %vm1091_vm8 = vcmask 1043456   ;;  %s3497_s22 = smov 96   ;;  %vm1039_vm9 = vcmask 64512   ;;  %vm1187_vm10 = vcmask 523264   ;;  %s2542_s24 = sld [smem:[#allocation19 + $0x80]] }
  0x89   : > { %vm1189_vm11 = vcmask 785408   ;;  %s2543_s30 = sld [smem:[#allocation19 + $0x81]]  ;;  %s680_s14 = scalar_lea.vmem [#allocation20], %s2394_s29 }
  0x8a   : > { %s4015_s27 = sld [smem:[#allocation34_spill]]  ;;  %s2203_s26 = sshll.u32 %s680_s14, 4  ;;  %s2204_s26 = int_to_ptr.vmem [resolvable:$true] %s2203_s26 }
  0x8b   : > { %908 = vmatpush.bf16.msra.mxu0 %v2445_v54  ;;  %921 = vmatpush.bf16.msra.mxu1 %v2449_v55  ;;  %s2680_s17 = sld [smem:[#allocation19 + $0x100]] }
  0x8c   : > { %934 = vmatpush.bf16.msra.mxu2 %v2453_v56  ;;  %v768_v52 = vld [vmem:[%s4014_s9] sm:$0x7]  ;;  %s2681_s7 = sld [smem:[#allocation19 + $0x101]] }
  0x8d   : > { %v770_v53 = vperm.slane %v768_v52, 0  ;;  %v771_v54 = vperm.slane %v768_v52, 1  ;;  %v772_v59 = vperm.slane %v768_v52, 2  ;;  %s4017_s9 = sld [smem:[#allocation38_spill]] }
  0x8e   : > { %s4019_s12 = sld [smem:[#allocation42_spill]] }
  0x8f   : > { %909 = vmatpush.bf16.msra.mxu0 %v2433_v2  ;;  %922 = vmatpush.bf16.msra.mxu1 %v2437_v3 }
  0x90   : > { %935 = vmatpush.bf16.msra.mxu2 %v2441_v4 }
  0x93   : > { %910 = vmatpush.bf16.msra.mxu0 %v2421_v13 }
  0x94   : > { %s3408_s8 = scalar_lea.hbm %s4019_s12, 16 }
  0x97   : > { %911 = vmatpush.bf16.msra.mxu0 %v2409_v24 }
  0xeb   : > { %v689_v8 = vpop.xlane.xlu0 %688 }
  0xec   : > { %v697_v9 = vmul.f32 %v3796_v7, %v689_v8  ;;  %v2818_v8 = vld [vmem:[#allocation9 + $0x1c] sm:$0xf] }
  0xee   : > { %v3800_v10 = vsub.f32 %v3793_v0, %v697_v9  ;;  %v2422_v9 = vld [vmem:[#allocation9 + $0x24] sm:$0xf0] }
  0xef   : > { %v2425_v14 = vor.u32 %v2818_v8, %v2422_v9 }
  0xf0   : > { %v699_v11 = vmul.f32 %v3800_v10, %v3800_v10  ;;  %v731_v45 = vmul.f32 %v730_v42, %v3800_v10 }
  0xf1   : > { %923 = vmatpush.bf16.msra.mxu1 %v2425_v14 }
  0xf2   : > { %700 = vadd.xlane.f32.xlu0 %v699_v11  ;;  %v2428_v11 = vld [vmem:[#allocation9 + $0x20] sm:$0xf] }
  0xf3   : > { %v2429_v15 = vor.u32 %v2820_v12, %v2428_v11 }
  0xf5   : > { %936 = vmatpush.bf16.msra.mxu2 %v2429_v15  ;;  %924 = vmatpush.bf16.msra.mxu1 %v2413_v25 }
  0xf9   : > { %937 = vmatpush.bf16.msra.mxu2 %v2417_v26 }
 0x165   : > { %v701_v60 = vpop.xlane.xlu0 %700 }
 0x166   : > { %v702_v1 = vmul.f32 0.007874016, %v701_v60 }
 0x168   : > { %3059 = vrsqrt.f32 %v702_v1  ;;  %vm710_vm1 = vcmp.eq.f32.partialorder %v702_v1, inf  ;;  %v713_v32 = vand.u32 2147483648, %v702_v1  ;;  %vm712_vm2 = vcmp.eq.f32.partialorder %v702_v1, 0.0 }
 0x16e   : > { %v3060_v22 = vpop.eup %3059 }
 0x16f   : > { %v704_v23 = vmul.f32 %v3060_v22, %v702_v1 }
 0x171   : > { %v705_v27 = vmul.f32 %v3060_v22, %v704_v23 }
 0x173   : > { %v706_v28 = vmul.f32 0.5, %v705_v27 }
 0x175   : > { %v707_v29 = vsub.f32 1.5, %v706_v28 }
 0x177   : > { %v708_v30 = vmul.f32 %v3060_v22, %v707_v29 }
 0x179   : > { %v709_v31 = vmul.f32 %v708_v30, %v702_v1 }
 0x17b   : > { %v711_v33 = vsel %vm710_vm1, %v702_v1, %v709_v31 }
 0x17c   : > { %v714_v34 = vsel %vm712_vm2, %v713_v32, %v711_v33  ;;  %vm1629_vm2 = vcmask 130048  }
 0x17d   : > { %v715_v35 = vadd.f32 1e-06, %v714_v34 }
 0x17f   : > { %3061 = vrcp.f32 %v715_v35  ;;  %v727_v39 = vand.u32 2147483648, %v715_v35  ;;  %v725_v41 = vand.u32 2147483647, %v715_v35  ;;  %vm721_vm4 = vweird.f32 %v715_v35 }
 0x181   : > { %v728_v44 = vor.u32 1.1754944e-38, %v727_v39  ;;  %vm726_vm6 = vcmp.eq.f32.partialorder %v725_v41, 8.507059e+37 }
 0x185   : > { %v3062_v36 = vpop.eup %3061 }
 0x186   : > { %v717_v37 = vmul.f32 %v3062_v36, %v715_v35  ;;  %vm722_vm3 = vweird.f32 %v3062_v36 }
 0x187   : > { %vm723_vm5 = vmor %vm721_vm4, %vm722_vm3 }
 0x188   : > { %v718_v38 = vsub.f32 1.0, %v717_v37 }
 0x18a   : > { %v719_v40 = vmul.f32 %v3062_v36, %v718_v38 }
 0x18c   : > { %v720_v43 = vadd.f32 %v3062_v36, %v719_v40 }
 0x18e   : > { %v724_v46 = vsel %vm723_vm5, %v3062_v36, %v720_v43 }
 0x18f   : > { %v729_v47 = vsel %vm726_vm6, %v728_v44, %v724_v46 }
 0x190   : > { %v732_v49 = vmul.f32 %v731_v45, %v729_v47 }
 0x192   : > { %v734_v50 = vadd.f32 %v733_v48, %v732_v49 }
 0x194   : > { %v735_v51 = vpack.c.bf16 %v734_v50, %v734_v50 }
 0x196   : > { %912 = vmatmul.bf16.vlgmr.msra.gmra.mxu0 %v735_v51  ;;  %925 = vmatmul.bf16.vlgmr.msra.gmra.mxu1 %v735_v51 }
 0x197   : > { %938 = vmatmul.bf16.vlgmr.msra.gmra.mxu2 %v735_v51 }
 0x213   : > { %v913_v55 = vpop.f32.mrf.mxu0  ;;  %v926_v56 = vpop.f32.mrf.mxu1 }
 0x214   : > { %v914_v57 = vadd.f32 %v913_v55, %v770_v53  ;;  %v927_v10 = vadd.f32 %v926_v56, %v771_v54 }
 0x216   : > { %v943_v58 = vpack.c.bf16 %v927_v10, %v914_v57 }
 0x218   : > { %v946_v60 = vunpack.c.h.b16 %v943_v58  ;;  %v968_v5 = vunpack.c.l.b16 %v943_v58 }
 0x21a   : > { %v939_v61 = vpop.f32.mrf.mxu2  ;;  %v947_v62 = vpack.c.b16 %v946_v60, %v946_v60  ;;  %v969_v9 = vpack.c.b16 %v968_v5, %v968_v5 }
 0x21b   : > { %v940_v63 = vadd.f32 %v939_v61, %v772_v59  ;;  %v915_v1 = vpop.f32.mrf.mxu0  ;;  %v928_v2 = vpop.f32.mrf.mxu1 }
 0x21c   : > { %1018 = vrot.lane.b32.xlu0 %v947_v62, %s3495_s6  ;;  %995 = vrot.lane.b32.xlu2 %v947_v62, %s3496_s23  ;;  %v953_v3 = vsel %vm948_vm7, %v947_v62, 0 }
 0x21d   : > { %v944_v4 = vpack.c.bf16 %v940_v63, %v940_v63  ;;  %972 = vrot.lane.b32.xlu1 %v947_v62, %s3497_s22  ;;  %962 = vmatpush.bf16.xpose.msra.mxu3 %v953_v3 }
 0x21f   : > { %v1093_v6 = vsel %vm1091_vm8, %v944_v4, 0  ;;  %v1109_v37 = vunpack.c.l.b16 %v944_v4 }
 0x220   : > { %1102 = vmatpush.bf16.msrb.mxu2 %v1093_v6 }
 0x221   : > { %v1110_v38 = vpack.c.b16 %v1109_v37, %v1109_v37 }
 0x222   : > { %v941_v8 = vpop.f32.mrf.mxu2 }
 0x224   : > { %993 = vrot.lane.b32.xlu2 %v969_v9, %s3496_s23  ;;  %2502 = vmatmul.msk.bf16.vlgmr.msra.gmra.mxu3 %vm948_vm7, %v943_v58 }
 0x225   : > { %970 = vrot.lane.b32.xlu1 %v969_v9, %s3497_s22 }
 0x22d   : > { %1016 = vrot.lane.b32.xlu1 %v969_v9, %s3495_s6 }
 0x276   : > { %v996_v11 = vpop.permute.xlu2 %995 }
 0x277   : > { %v1001_v16 = vsel %vm948_vm7, %v996_v11, 0 }
 0x27e   : > { %v994_v19 = vpop.permute.xlu2 %993 }
 0x28e   : > { %v1019_v12 = vpop.permute.xlu0 %1018 }
 0x28f   : > { %v973_v13 = vpop.permute.xlu1 %972  ;;  %v1024_v14 = vsel %vm948_vm7, %v1019_v12, 0 }
 0x290   : > { %v978_v15 = vsel %vm948_vm7, %v973_v13, 0  ;;  %1033 = vmatpush.bf16.xpose.msrb.mxu0 %v1024_v14 }
 0x291   : > { %987 = vmatpush.bf16.xpose.msrb.mxu3 %v978_v15 }
 0x297   : > { %v971_v17 = vpop.permute.xlu1 %970 }
 0x298   : > { %2503 = vmatmul.msk.bf16.vlgmr.msrb.gmra.mxu3 %vm948_vm7, %v971_v17 }
 0x299   : > { %1010 = vmatpush.bf16.xpose.msra.mxu3 %v1001_v16 }
 0x29f   : > { %v1017_v18 = vpop.permute.xlu1 %1016 }
 0x2a0   : > { %2505 = vmatmul.msk.bf16.vlgmr.msrb.gmra.mxu0 %vm948_vm7, %v1017_v18 }
 0x2a7   : > { %v964_v20 = vpop.f32.mrf.mxu3 }
 0x2a8   : > { %2504 = vmatmul.msk.bf16.vlgmr.msra.gmra.mxu3 %vm948_vm7, %v994_v19  ;;  %v1040_v21 = vsel %vm1039_vm9, %v964_v20, -inf }
 0x2a9   : > { %1041 = vmax.xlane.f32.xlu2 %v1040_v21 }
 0x2af   : > { %v966_v22 = vpop.f32.mrf.mxu3 }
 0x2b0   : > { %v2846_v22 = vld [vmem:[#allocation10 + $0x38] sm:$0xff] }
 0x2b1   : > { %1262 = vmatpush.bf16.msrb.mxu1 %v2846_v22 }
 0x31b   : > { %v989_v23 = vpop.f32.mrf.mxu3 }
 0x31c   : > { %v1042_v24 = vpop.xlane.xlu2 %1041  ;;  %v1043_v25 = vsel %vm1039_vm9, %v989_v23, -inf }
 0x31d   : > { %v1035_v26 = vpop.f32.mrf.mxu0  ;;  %v1052_v27 = vsub.f32 %v964_v20, %v1042_v24  ;;  %1044 = vmax.xlane.f32.xlu1 %v1043_v25  ;;  %v2844_v24 = vld [vmem:[#allocation10 + $0x28] sm:$0xff]  ;;  %v2843_v25 = vld [vmem:[#allocation10 + $0x20] sm:$0xff] }
 0x31e   : > { %v1049_v28 = vsel %vm1039_vm9, %v1035_v26, -inf }
 0x31f   : > { %v1056_v29 = vmul.f32 1.442695, %v1052_v27  ;;  %1050 = vmax.xlane.f32.xlu2 %v1049_v28  ;;  %v2841_v27 = vld [vmem:[#allocation10 + $0x10] sm:$0xff]  ;;  %v2840_v28 = vld [vmem:[#allocation10 + $0x8] sm:$0xff] }
 0x321   : > { %3063 = vpow2.f32 %v1056_v29  ;;  %v2839_v29 = vld [vmem:[#allocation10] sm:$0xff] }
 0x323   : > { %v991_v30 = vpop.f32.mrf.mxu3 }
 0x325   : > { %v1037_v31 = vpop.f32.mrf.mxu0 }
 0x327   : > { %v3064_v32 = vpop.eup %3063 }
 0x328   : > { %v1064_v33 = vsel %vm1039_vm9, %v3064_v32, 0.0 }
 0x329   : > { %1065 = vadd.xlane.f32.xlu2 %v1064_v33 }
 0x32b   : > { %v1012_v34 = vpop.f32.mrf.mxu3 }
 0x32c   : > { %v1046_v35 = vsel %vm1039_vm9, %v1012_v34, -inf }
 0x32d   : > { %1047 = vmax.xlane.f32.xlu0 %v1046_v35 }
 0x333   : > { %v1014_v36 = vpop.f32.mrf.mxu3 }
 0x341   : > { %1111 = vrot.lane.b32.xlu0 %v1110_v38, %s3497_s22 }
 0x390   : > { %v1045_v39 = vpop.xlane.xlu1 %1044 }
 0x391   : > { %v1053_v42 = vsub.f32 %v989_v23, %v1045_v39  ;;  %v2845_v23 = vld [vmem:[#allocation10 + $0x30] sm:$0xff] }
 0x392   : > { %v1051_v40 = vpop.xlane.xlu2 %1050  ;;  %1263 = vmatpush.bf16.msrb.mxu1 %v2845_v23  ;;  %v2578_v23 = vld [vmem:[#allocation13 + $0x4] sm:$0xf] }
 0x393   : > { %v1055_v41 = vsub.f32 %v1035_v26, %v1051_v40  ;;  %v1058_v44 = vmul.f32 1.442695, %v1053_v42  ;;  %v2842_v26 = vld [vmem:[#allocation10 + $0x18] sm:$0xff] }
 0x395   : > { %v1062_v43 = vmul.f32 1.442695, %v1055_v41 }
 0x396   : > { %1264 = vmatpush.bf16.msrb.mxu1 %v2844_v24  ;;  %v2856_v24 = vld [vmem:[#allocation13 + $0xc] sm:$0xf0] }
 0x397   : > { %3065 = vpow2.f32 %v1062_v43  ;;  %v2634_v43 = vld [vmem:[#allocation13 + $0xac] sm:$0xf] }
 0x398   : > { %3067 = vpow2.f32 %v1058_v44  ;;  %v2870_v44 = vld [vmem:[#allocation13 + $0xb4] sm:$0xf0] }
 0x39a   : > { %1265 = vmatpush.bf16.msrb.mxu1 %v2843_v25  ;;  %v2579_v25 = vor.u32 %v2856_v24, %v2578_v23  ;;  %v1316_v23 = vstv %s2543_s30 }
 0x39c   : > { %v1066_v45 = vpop.xlane.xlu2 %1065 }
 0x39d   : > { %v3066_v46 = vpop.eup %3065  ;;  %3069 = vrcp.f32 %v1066_v45  ;;  %v2626_v45 = vld [vmem:[#allocation13 + $0x94] sm:$0xf] }
 0x39e   : > { %v1073_v47 = vsel %vm1039_vm9, %v3066_v46, 0.0  ;;  %v3068_v50 = vpop.eup %3067  ;;  %1266 = vmatpush.bf16.msrb.mxu1 %v2842_v26  ;;  %v2857_v26 = vld [vmem:[#allocation13 + $0x20] sm:$0xf] }
 0x39f   : > { %1074 = vadd.xlane.f32.xlu1 %v1073_v47  ;;  %v1067_v54 = vsel %vm1039_vm9, %v3068_v50, 0.0  ;;  %v2868_v47 = vld [vmem:[#allocation13 + $0x9c] sm:$0xf0] }
 0x3a0   : > { %v1048_v48 = vpop.xlane.xlu0 %1047 }
 0x3a1   : > { %v1054_v49 = vsub.f32 %v1012_v34, %v1048_v48  ;;  %v2869_v48 = vld [vmem:[#allocation13 + $0xb0] sm:$0xf] }
 0x3a2   : > { %1267 = vmatpush.bf16.msrb.mxu1 %v2841_v27  ;;  %v2588_v27 = vld [vmem:[#allocation13 + $0x28] sm:$0xf0] }
 0x3a3   : > { %v3070_v51 = vpop.eup %3069  ;;  %v1060_v52 = vmul.f32 1.442695, %v1054_v49  ;;  %v2636_v49 = vld [vmem:[#allocation13 + $0xb8] sm:$0xf0] }
 0x3a4   : > { %v1080_v53 = vmul.f32 %v3070_v51, %v3064_v32  ;;  %v2867_v51 = vld [vmem:[#allocation13 + $0x98] sm:$0xf] }
 0x3a5   : > { %3071 = vpow2.f32 %v1060_v52  ;;  %v2627_v52 = vor.u32 %v2868_v47, %v2626_v45  ;;  %v2562_v45 = vld [vmem:[#allocation13 + $0x60] sm:$0xf] }
 0x3a6   : > { %v1084_v55 = vpack.c.bf16 %v1080_v53, %v1080_v53  ;;  %1268 = vmatpush.bf16.msrb.mxu1 %v2840_v28  ;;  %v2628_v53 = vld [vmem:[#allocation13 + $0xa0] sm:$0xf0]  ;;  %v2591_v28 = vor.u32 %v2857_v26, %v2588_v27  ;;  %v1417_v27 = vld [vmem:[%s4015_s27 + $0x1] sm:$0x3] }
 0x3a7   : > { %1068 = vadd.xlane.f32.xlu1 %v1067_v54  ;;  %v2618_v54 = vld [vmem:[#allocation13 + $0x7c] sm:$0xf] }
 0x3a8   : > { %2506 = vmatmul.msk.bf16.vlgmr.msrb.gmra.mxu2 %vm1039_vm9, %v1084_v55  ;;  %v2866_v55 = vld [vmem:[#allocation13 + $0x84] sm:$0xf0] }
 0x3aa   : > { %1269 = vmatpush.bf16.msrb.mxu1 %v2839_v29  ;;  %v683_v29 = vld [vmem:[%s3767_s13] sm:$0xff] }
 0x3ab   : > { %v3072_v56 = vpop.eup %3071 }
 0x3ac   : > { %v1070_v57 = vsel %vm1039_vm9, %v3072_v56, 0.0 }
 0x3ad   : > { %1071 = vadd.xlane.f32.xlu2 %v1070_v57  ;;  %v2620_v57 = vld [vmem:[#allocation13 + $0x88] sm:$0xf0] }
 0x3b3   : > { %v1112_v10 = vpop.permute.xlu0 %1111 }
 0x3b4   : > { %v1117_v58 = vsel %vm1091_vm8, %v1112_v10, 0  ;;  %v2619_v10 = vor.u32 %v2866_v55, %v2618_v54 }
 0x3b5   : > { %1126 = vmatpush.bf16.msra.mxu2 %v1117_v58  ;;  %v2610_v58 = vld [vmem:[#allocation13 + $0x64] sm:$0xf] }
 0x3c0   : > { %1153 = vrot.lane.b32.xlu1 %v1110_v38, %s3495_s6 }
 0x3c5   : > { %1132 = vrot.lane.b32.xlu2 %v1110_v38, %s3496_s23  ;;  %v3053_v38 = vld [vmem:[#allocation12] ss:$0 sm:$0xff] }
 0x412   : > { %v1075_v59 = vpop.xlane.xlu1 %1074 }
 0x41a   : > { %v1069_v60 = vpop.xlane.xlu1 %1068 }
 0x41b   : > { %3073 = vrcp.f32 %v1069_v60 }
 0x420   : > { %v1072_v61 = vpop.xlane.xlu2 %1071 }
 0x421   : > { %v3074_v62 = vpop.eup %3073  ;;  %3075 = vrcp.f32 %v1072_v61  ;;  %v2863_v61 = vld [vmem:[#allocation13 + $0x68] sm:$0xf] }
 0x422   : > { %v1081_v63 = vmul.f32 %v3074_v62, %v3068_v50  ;;  %3077 = vrcp.f32 %v1075_v59  ;;  %v2639_v50 = vor.u32 %v2869_v48, %v2636_v49  ;;  %v2864_v59 = vld [vmem:[#allocation13 + $0x6c] sm:$0xf0]  ;;  %v2612_v62 = vld [vmem:[#allocation13 + $0x70] sm:$0xf0]  ;;  %v2558_v48 = vld [vmem:[#allocation13 + $0x48] sm:$0xf] }
 0x423   : > { %v2850_v49 = vld [vmem:[#allocation13 + $0x50] sm:$0xf0] }
 0x424   : > { %v1085_v1 = vpack.c.bf16 %v1081_v63, %v1081_v63  ;;  %v2611_v63 = vor.u32 %v2864_v59, %v2610_v58  ;;  %v2847_v58 = vld [vmem:[#allocation13 + $0x8] sm:$0xf0] }
 0x426   : > { %2507 = vmatmul.msk.bf16.vlgmr.msra.gmra.mxu2 %vm1039_vm9, %v1085_v1  ;;  %v2602_v1 = vld [vmem:[#allocation13 + $0x4c] sm:$0xf] }
 0x427   : > { %v3076_v2 = vpop.eup %3075 }
 0x428   : > { %v1082_v3 = vmul.f32 %v3076_v2, %v3072_v56  ;;  %v1133_v4 = vpop.permute.xlu2 %1132  ;;  %v3078_v9 = vpop.eup %3077  ;;  %v2865_v56 = vld [vmem:[#allocation13 + $0x80] sm:$0xf]  ;;  %v2862_v2 = vld [vmem:[#allocation13 + $0x54] sm:$0xf0] }
 0x429   : > { %v1138_v5 = vsel %vm1091_vm8, %v1133_v4, 0  ;;  %v1083_v11 = vmul.f32 %v3078_v9, %v3066_v46  ;;  %v2635_v46 = vor.u32 %v2870_v44, %v2634_v43  ;;  %v2623_v60 = vor.u32 %v2865_v56, %v2620_v57  ;;  %v2852_v43 = vld [vmem:[#allocation13 + $0x80] sm:$0xf0] }
 0x42a   : > { %v1086_v6 = vpack.c.bf16 %v1082_v3, %v1082_v3  ;;  %1147 = vmatpush.bf16.msrb.mxu3 %v1138_v5  ;;  %v2615_v3 = vor.u32 %v2863_v61, %v2612_v62  ;;  %v2603_v4 = vor.u32 %v2862_v2, %v2602_v1  ;;  %v2848_v56 = vld [vmem:[#allocation13 + $0x20] sm:$0xf0] }
 0x42b   : > { %v1104_v8 = vpop.f32.mrf.mxu2  ;;  %v1087_v15 = vpack.c.bf16 %v1083_v11, %v1083_v11  ;;  %v2594_v11 = vld [vmem:[#allocation13 + $0x34] sm:$0xf] }
 0x42d   : > { %2508 = vmatmul.msk.bf16.vlgmr.msrb.gmra.mxu3 %vm1039_vm9, %v1086_v6 }
 0x42e   : > { %1503 = vmatpush.bf16.msra.mxu3 %v2635_v46  ;;  %v2851_v46 = vld [vmem:[#allocation13 + $0x68] sm:$0xf0] }
 0x42f   : > { %v2563_v47 = vor.u32 %v2851_v46, %v2562_v45 }
 0x432   : > { %v1154_v12 = vpop.permute.xlu1 %1153  ;;  %1504 = vmatpush.bf16.msra.mxu3 %v2627_v52  ;;  %v2849_v52 = vld [vmem:[#allocation13 + $0x38] sm:$0xf0] }
 0x433   : > { %v1159_v13 = vsel %vm1091_vm8, %v1154_v12, 0  ;;  %v1106_v14 = vpop.f32.mrf.mxu2  ;;  %v2860_v12 = vld [vmem:[#allocation13 + $0x3c] sm:$0xf0] }
 0x434   : > { %1168 = vmatpush.bf16.msra.mxu0 %v1159_v13  ;;  %v2595_v13 = vor.u32 %v2860_v12, %v2594_v11  ;;  %v2861_v14 = vld [vmem:[#allocation13 + $0x50] sm:$0xf] }
 0x436   : > { %1505 = vmatpush.bf16.msra.mxu3 %v2619_v10  ;;  %v2546_v10 = vld [vmem:[#allocation13] sm:$0xf] }
 0x437   : > { %2509 = vmatmul.msk.bf16.vlgmr.msra.gmra.mxu0 %vm1039_vm9, %v1087_v15  ;;  %v2604_v15 = vld [vmem:[#allocation13 + $0x58] sm:$0xf0]  ;;  %v2547_v61 = vor.u32 %v2847_v58, %v2546_v10 }
 0x438   : > { %1517 = vmatpush.bf16.msrb.mxu0 %v2639_v50  ;;  %v2559_v50 = vor.u32 %v2850_v49, %v2558_v48 }
 0x43a   : > { %1506 = vmatpush.bf16.msra.mxu3 %v2611_v63 }
 0x43e   : > { %1507 = vmatpush.bf16.msra.mxu3 %v2603_v4 }
 0x442   : > { %1508 = vmatpush.bf16.msra.mxu3 %v2595_v13 }
 0x4a9   : > { %v1128_v16 = vpop.f32.mrf.mxu2 }
 0x4aa   : > { %1175 = vrot.lane.b32.xlu0 %v1128_v16, %s3495_s6  ;;  %v2607_v16 = vor.u32 %v2861_v14, %v2604_v15 }
 0x4b0   : > { %v1149_v17 = vpop.f32.mrf.mxu3 }
 0x4b1   : > { %v1130_v18 = vpop.f32.mrf.mxu2  ;;  %1179 = vrot.lane.b32.xlu2 %v1149_v17, %s3496_s23  ;;  %v2586_v17 = vld [vmem:[#allocation13 + $0x1c] sm:$0xf] }
 0x4b2   : > { %v2858_v18 = vld [vmem:[#allocation13 + $0x24] sm:$0xf0] }
 0x4b4   : > { %v1170_v19 = vpop.f32.mrf.mxu0 }
 0x4b5   : > { %1183 = vrot.lane.b32.xlu0 %v1170_v19, %s3497_s22  ;;  %v2587_v19 = vor.u32 %v2858_v18, %v2586_v17  ;;  %v1313_v17 = vstv %s2542_s24  ;;  %s4018_s24 = sld [smem:[#allocation40_spill]] }
 0x4b7   : > { %1509 = vmatpush.bf16.msra.mxu3 %v2587_v19 }
 0x4b8   : > { %v1151_v20 = vpop.f32.mrf.mxu3 }
 0x4b9   : > { %v2859_v20 = vld [vmem:[#allocation13 + $0x38] sm:$0xf] }
 0x4bb   : > { %1510 = vmatpush.bf16.msra.mxu3 %v2579_v25 }
 0x4bc   : > { %v1172_v21 = vpop.f32.mrf.mxu0 }
 0x4bd   : > { %v2596_v21 = vld [vmem:[#allocation13 + $0x40] sm:$0xf0] }
 0x4be   : > { %v2599_v22 = vor.u32 %v2859_v20, %v2596_v21 }
 0x50b   : > { %v1180_v32 = vpop.permute.xlu2 %1179 }
 0x51c   : > { %v1176_v30 = vpop.permute.xlu0 %1175 }
 0x51d   : > { %v1186_v31 = vsel %vm948_vm7, %v1104_v8, %v1176_v30  ;;  %v684_v30 = vld [vmem:[%s3767_s13 + $0x8] sm:$0xff]  ;;  %s4016_s13 = sld [smem:[#allocation36_spill]] }
 0x51e   : > { %v1188_v34 = vsel %vm1187_vm10, %v1186_v31, %v1180_v32  ;;  %v685_v31 = vpack.c.bf16 %v684_v30, %v683_v29  ;;  %v2855_v32 = vld [vmem:[#allocation13 + $0x8] sm:$0xf]  ;;  %v1420_v29 = vperm.slane %v1417_v27, 1 }
 0x520   : > { %1511 = vmatmul.bf16.vlgmr.msra.gmra.mxu3 %v685_v31 }
 0x527   : > { %v1184_v33 = vpop.permute.xlu0 %1183 }
 0x528   : > { %v1190_v35 = vsel %vm1189_vm11, %v1188_v34, %v1184_v33  ;;  %v2580_v33 = vld [vmem:[#allocation13 + $0x10] sm:$0xf0] }
 0x529   : > { %v1191_v36 = vpack.c.bf16 %v1190_v35, %v1190_v35  ;;  %v2583_v34 = vor.u32 %v2855_v32, %v2580_v33  ;;  %v2574_v35 = vld [vmem:[#allocation13 + $0xa8] sm:$0xf] }
 0x52b   : > { %1192 = vst [vmem:[#allocation2] sm:$0xf] %v1191_v36  ;;  %v2854_v36 = vld [vmem:[#allocation13 + $0xb0] sm:$0xf0] }
 0x532   : > { %v1193_v37 = vld [vmem:[#allocation2] sm:$0xf] }
 0x533   : > { %1270 = vmatmul.bf16.vlgmr.msrb.gmra.mxu1 %v1193_v37  ;;  %v2575_v37 = vor.u32 %v2854_v36, %v2574_v35 }
 0x535   : > { %1387 = vmatpush.bf16.msrb.mxu2 %v2575_v37 }
 0x5a3   : > { %v1512_v30 = vpop.f32.mrf.mxu3 }
 0x5b0   : > { %v1271_v39 = vpop.f32.mrf.mxu1 }
 0x5b1   : > { %v1272_v40 = vadd.f32 %v3053_v38, %v1271_v39  ;;  %v2570_v38 = vld [vmem:[#allocation13 + $0x90] sm:$0xf]  ;;  %v2853_v39 = vld [vmem:[#allocation13 + $0x98] sm:$0xf0] }
 0x5b3   : > { %v3848_v41 = vadd.f32 %v1272_v40, %v3793_v0  ;;  %v2631_v0 = vor.u32 %v2867_v51, %v2628_v53  ;;  %v2571_v40 = vor.u32 %v2853_v39, %v2570_v38  ;;  %v2554_v51 = vld [vmem:[#allocation13 + $0x30] sm:$0xf] }
 0x5b4   : > { %v2555_v55 = vor.u32 %v2849_v52, %v2554_v51 }
 0x5b5   : > { %1278 = vadd.xlane.f32.xlu1 %v3848_v41  ;;  %1518 = vmatpush.bf16.msrb.mxu0 %v2631_v0  ;;  %v2550_v0 = vld [vmem:[#allocation13 + $0x18] sm:$0xf] }
 0x5b6   : > { %1388 = vmatpush.bf16.msrb.mxu2 %v2571_v40  ;;  %v2551_v57 = vor.u32 %v2848_v56, %v2550_v0 }
 0x5b8   : > { %v1273_v42 = vpop.f32.mrf.mxu1 }
 0x5b9   : > { %1519 = vmatpush.bf16.msrb.mxu0 %v2623_v60  ;;  %v2566_v42 = vld [vmem:[#allocation13 + $0x78] sm:$0xf] }
 0x5ba   : > { %v2567_v44 = vor.u32 %v2852_v43, %v2566_v42 }
 0x5bc   : > { %1389 = vmatpush.bf16.msrb.mxu2 %v2567_v44 }
 0x5bd   : > { %1520 = vmatpush.bf16.msrb.mxu0 %v2615_v3 }
 0x5c0   : > { %1390 = vmatpush.bf16.msrb.mxu2 %v2563_v47  ;;  %v3054_v47 = vld [vmem:[%s4015_s27] ss:$0 sm:$0xff] }
 0x5c1   : > { %1521 = vmatpush.bf16.msrb.mxu0 %v2607_v16 }
 0x5c4   : > { %1391 = vmatpush.bf16.msrb.mxu2 %v2559_v50 }
 0x5c5   : > { %1522 = vmatpush.bf16.msrb.mxu0 %v2599_v22 }
 0x5c8   : > { %1392 = vmatpush.bf16.msrb.mxu2 %v2555_v55 }
 0x5c9   : > { %1523 = vmatpush.bf16.msrb.mxu0 %v2591_v28  ;;  %v1419_v28 = vperm.slane %v1417_v27, 0 }
 0x5cb   : > { %v1513_v32 = vadd.f32 %v1512_v30, %v1419_v28 }
 0x5cc   : > { %1393 = vmatpush.bf16.msrb.mxu2 %v2551_v57 }
 0x5cd   : > { %1524 = vmatpush.bf16.msrb.mxu0 %v2583_v34 }
 0x5d0   : > { %1525 = vmatmul.bf16.vlgmr.msrb.gmra.mxu0 %v685_v31  ;;  %1394 = vmatpush.bf16.msrb.mxu2 %v2547_v61 }
 0x628   : > { %v1279_v5 = vpop.xlane.xlu1 %1278 }
 0x629   : > { %v1280_v6 = vmul.f32 %v1279_v5, %v3796_v7 }
 0x62b   : > { %v3853_v8 = vsub.f32 %v3848_v41, %v1280_v6 }
 0x62d   : > { %v1282_v9 = vmul.f32 %v3853_v8, %v3853_v8  ;;  %v1314_v20 = vmul.f32 %v1313_v17, %v3853_v8  ;;  %v1514_v8 = vpop.f32.mrf.mxu3 }
 0x62e   : > { %v1515_v36 = vadd.f32 %v1514_v8, %v1419_v28 }
 0x62f   : > { %1283 = vadd.xlane.f32.xlu2 %v1282_v9 }
 0x64d   : > { %v1526_v31 = vpop.f32.mrf.mxu0 }
 0x64e   : > { %v1527_v33 = vadd.f32 %v1526_v31, %v1420_v29 }
 0x650   : > { %v1531_v34 = vpack.c.bf16 %v1527_v33, %v1513_v32 }
 0x652   : > { %v1535_v38 = vunpack.c.l.b16 %v1531_v34  ;;  %v1678_v39 = vunpack.c.h.b16 %v1531_v34 }
 0x655   : > { %v1528_v35 = vpop.f32.mrf.mxu0 }
 0x656   : > { %v1529_v37 = vadd.f32 %v1528_v35, %v1420_v29 }
 0x658   : > { %v1532_v40 = vpack.c.bf16 %v1529_v37, %v1515_v36 }
 0x65a   : > { %v1536_v42 = vunpack.c.l.b16 %v1532_v40  ;;  %v1679_v43 = vunpack.c.h.b16 %v1532_v40 }
 0x65c   : > { %v1537_v44 = vpack.c.b16 %v1536_v42, %v1535_v38  ;;  %v3863_v45 = vpack.c.b16 %v1679_v43, %v1678_v39 }
 0x65e   : > { %1562 = vrot.lane.b32.xlu0 %v1537_v44, %s3497_s22  ;;  %v1542_v46 = vsel %vm948_vm7, %v1537_v44, 0 }
 0x65f   : > { %1551 = vmatpush.bf16.xpose.msra.mxu1 %v1542_v46 }
 0x666   : > { %1585 = vrot.lane.b32.xlu0 %v1537_v44, %s3496_s23 }
 0x667   : > { %1692 = vmatpush.bf16.msrb.mxu1 %v3863_v45 }
 0x6a2   : > { %v1284_v53 = vpop.xlane.xlu2 %1283 }
 0x6a3   : > { %v1285_v54 = vmul.f32 0.007874016, %v1284_v53 }
 0x6a5   : > { %3079 = vrsqrt.f32 %v1285_v54  ;;  %vm1293_vm12 = vcmp.eq.f32.partialorder %v1285_v54, inf  ;;  %v1296_v4 = vand.u32 2147483648, %v1285_v54  ;;  %vm1295_vm13 = vcmp.eq.f32.partialorder %v1285_v54, 0.0 }
 0x6ab   : > { %v3080_v59 = vpop.eup %3079 }
 0x6ac   : > { %v1287_v60 = vmul.f32 %v3080_v59, %v1285_v54 }
 0x6ae   : > { %v1288_v62 = vmul.f32 %v3080_v59, %v1287_v60 }
 0x6b0   : > { %v1289_v63 = vmul.f32 0.5, %v1288_v62 }
 0x6b2   : > { %v1290_v1 = vsub.f32 1.5, %v1289_v63 }
 0x6b4   : > { %v1291_v2 = vmul.f32 %v3080_v59, %v1290_v1 }
 0x6b6   : > { %v1292_v3 = vmul.f32 %v1291_v2, %v1285_v54 }
 0x6b8   : > { %v1294_v5 = vsel %vm1293_vm12, %v1285_v54, %v1292_v3 }
 0x6b9   : > { %v1297_v6 = vsel %vm1295_vm13, %v1296_v4, %v1294_v5 }
 0x6ba   : > { %v1298_v9 = vadd.f32 1e-06, %v1297_v6 }
 0x6bc   : > { %3081 = vrcp.f32 %v1298_v9  ;;  %v1310_v14 = vand.u32 2147483648, %v1298_v9  ;;  %v1308_v16 = vand.u32 2147483647, %v1298_v9  ;;  %vm1304_vm15 = vweird.f32 %v1298_v9 }
 0x6be   : > { %v1311_v19 = vor.u32 1.1754944e-38, %v1310_v14  ;;  %vm1309_vm1 = vcmp.eq.f32.partialorder %v1308_v16, 8.507059e+37 }
 0x6c2   : > { %v3082_v11 = vpop.eup %3081 }
 0x6c3   : > { %v1300_v12 = vmul.f32 %v3082_v11, %v1298_v9  ;;  %vm1305_vm14 = vweird.f32 %v3082_v11 }
 0x6c4   : > { %vm1306_vm0 = vmor %vm1304_vm15, %vm1305_vm14 }
 0x6c5   : > { %v1301_v13 = vsub.f32 1.0, %v1300_v12 }
 0x6c7   : > { %v1302_v15 = vmul.f32 %v3082_v11, %v1301_v13 }
 0x6c9   : > { %v1303_v18 = vadd.f32 %v3082_v11, %v1302_v15 }
 0x6cb   : > { %v1307_v21 = vsel %vm1306_vm0, %v3082_v11, %v1303_v18 }
 0x6cc   : > { %v1312_v22 = vsel %vm1309_vm1, %v1311_v19, %v1307_v21 }
 0x6cd   : > { %v1315_v24 = vmul.f32 %v1314_v20, %v1312_v22 }
 0x6cf   : > { %v1317_v25 = vadd.f32 %v1316_v23, %v1315_v24 }
 0x6d0   : > { %v1563_v54 = vpop.permute.xlu0 %1562 }
 0x6d1   : > { %v1318_v26 = vpack.c.bf16 %v1317_v25, %v1317_v25  ;;  %v1568_v55 = vsel %vm948_vm7, %v1563_v54, 0 }
 0x6d2   : > { %1577 = vmatpush.bf16.xpose.msra.mxu2 %v1568_v55 }
 0x6d3   : > { %1395 = vmatmul.bf16.vlgmr.msrb.gmra.mxu2 %v1318_v26 }
 0x6d8   : > { %v1586_v0 = vpop.permute.xlu0 %1585 }
 0x6d9   : > { %v1591_v56 = vsel %vm948_vm7, %v1586_v0, 0 }
 0x6da   : > { %1600 = vmatpush.bf16.xpose.msrb.mxu3 %v1591_v56 }
 0x756   : > { %v1396_v48 = vpop.f32.mrf.mxu2 }
 0x757   : > { %v1397_v49 = vadd.f32 %v3054_v47, %v1396_v48 }
 0x759   : > { %v1400_v50 = vpack.c.bf16 %v1397_v49, %v1397_v49 }
 0x75b   : > { %v1558_v51 = vunpack.c.l.b16 %v1400_v50  ;;  %2640 = vmatmul.msk.bf16.vlgmr.msra.gmra.mxu1 %vm948_vm7, %v1400_v50 }
 0x75d   : > { %v1559_v52 = vpack.c.b16 %v1558_v51, %v1558_v51 }
 0x75e   : > { %v1398_v53 = vpop.f32.mrf.mxu2 }
 0x75f   : > { %1606 = vrot.lane.b32.xlu1 %v1559_v52, %s3495_s6  ;;  %1560 = vrot.lane.b32.xlu0 %v1559_v52, %s3497_s22 }
 0x767   : > { %1583 = vrot.lane.b32.xlu0 %v1559_v52, %s3496_s23 }
 0x76f   : > { %1608 = vrot.lane.b32.xlu0 %v1537_v44, %s3495_s6 }
 0x7d1   : > { %v1561_v57 = vpop.permute.xlu0 %1560  ;;  %v1607_v62 = vpop.permute.xlu1 %1606 }
 0x7d2   : > { %2641 = vmatmul.msk.bf16.vlgmr.msra.gmra.mxu2 %vm948_vm7, %v1561_v57 }
 0x7d8   : > { %v1553_v10 = vpop.f32.mrf.mxu1 }
 0x7d9   : > { %v1584_v58 = vpop.permute.xlu0 %1583  ;;  %v1630_v12 = vsel %vm1629_vm2, %v1553_v10, -inf }
 0x7da   : > { %2642 = vmatmul.msk.bf16.vlgmr.msrb.gmra.mxu3 %vm948_vm7, %v1584_v58  ;;  %v2878_v58 = vld [vmem:[#allocation15 + $0x38] sm:$0xff] }
 0x7db   : > { %1841 = vmatpush.bf16.msra.mxu1 %v2878_v58  ;;  %v2882_v58 = vld [vmem:[#allocation16 + $0x14] sm:$0xf0] }
 0x7e0   : > { %v1555_v59 = vpop.f32.mrf.mxu1 }
 0x7e1   : > { %v1609_v60 = vpop.permute.xlu0 %1608  ;;  %v2877_v59 = vld [vmem:[#allocation15 + $0x30] sm:$0xff] }
 0x7e2   : > { %v1614_v61 = vsel %vm948_vm7, %v1609_v60, 0  ;;  %1842 = vmatpush.bf16.msra.mxu1 %v2877_v59  ;;  %v2876_v60 = vld [vmem:[#allocation15 + $0x28] sm:$0xff]  ;;  %v2881_v59 = vld [vmem:[#allocation16 + $0x14] sm:$0xf] }
 0x7e3   : > { %1623 = vmatpush.bf16.xpose.msra.mxu0 %v1614_v61  ;;  %v2875_v61 = vld [vmem:[#allocation15 + $0x20] sm:$0xff] }
 0x7e6   : > { %1843 = vmatpush.bf16.msra.mxu1 %v2876_v60  ;;  %v2694_v60 = vld [vmem:[#allocation16 + $0x18] sm:$0xf0] }
 0x7ea   : > { %2643 = vmatmul.msk.bf16.vlgmr.msra.gmra.mxu0 %vm948_vm7, %v1607_v62  ;;  %1844 = vmatpush.bf16.msra.mxu1 %v2875_v61  ;;  %v2874_v62 = vld [vmem:[#allocation15 + $0x18] sm:$0xff] }
 0x7ee   : > { %1845 = vmatpush.bf16.msra.mxu1 %v2874_v62  ;;  %v2697_v62 = vor.u32 %v2881_v59, %v2694_v60 }
 0x855   : > { %v1579_v63 = vpop.f32.mrf.mxu2 }
 0x856   : > { %v1633_v1 = vsel %vm1629_vm2, %v1579_v63, -inf }
 0x857   : > { %1634 = vmax.xlane.f32.xlu0 %v1633_v1  ;;  %v2872_v1 = vld [vmem:[#allocation15 + $0x8] sm:$0xff] }
 0x85d   : > { %v1581_v2 = vpop.f32.mrf.mxu2  ;;  %v1602_v3 = vpop.f32.mrf.mxu3 }
 0x85e   : > { %v1636_v11 = vsel %vm1629_vm2, %v1602_v3, -inf  ;;  %v2871_v2 = vld [vmem:[#allocation15] sm:$0xff] }
 0x865   : > { %v1604_v4 = vpop.f32.mrf.mxu3 }
 0x867   : > { %v1625_v5 = vpop.f32.mrf.mxu0 }
 0x868   : > { %v1639_v6 = vsel %vm1629_vm2, %v1625_v5, -inf }
 0x869   : > { %1640 = vmax.xlane.f32.xlu2 %v1639_v6 }
 0x86b   : > { %1717 = vrot.lane.b32.xlu0 %v3863_v45, %s3496_s23 }
 0x86f   : > { %v1627_v9 = vpop.f32.mrf.mxu0 }
 0x871   : > { %1637 = vmax.xlane.f32.xlu2 %v1636_v11 }
 0x873   : > { %1736 = vrot.lane.b32.xlu0 %v3863_v45, %s3495_s6 }
 0x879   : > { %1631 = vmax.xlane.f32.xlu2 %v1630_v12 }
 0x8ca   : > { %v1635_v13 = vpop.xlane.xlu0 %1634 }
 0x8cb   : > { %v1643_v14 = vsub.f32 %v1579_v63, %v1635_v13  ;;  %v2873_v63 = vld [vmem:[#allocation15 + $0x10] sm:$0xff] }
 0x8cc   : > { %1846 = vmatpush.bf16.msra.mxu1 %v2873_v63  ;;  %v2684_v63 = vld [vmem:[#allocation16] sm:$0xf] }
 0x8cd   : > { %v1648_v15 = vmul.f32 1.442695, %v1643_v14  ;;  %v3055_v14 = vld [vmem:[%s4016_s13] ss:$0 sm:$0xff] }
 0x8cf   : > { %3083 = vpow2.f32 %v1648_v15 }
 0x8d0   : > { %1847 = vmatpush.bf16.msra.mxu1 %v2872_v1  ;;  %v2880_v1 = vld [vmem:[#allocation16 + $0x4] sm:$0xf0] }
 0x8d4   : > { %1848 = vmatpush.bf16.msra.mxu1 %v2871_v2  ;;  %v2879_v2 = vld [vmem:[#allocation16 + $0x4] sm:$0xf] }
 0x8d5   : > { %v3084_v16 = vpop.eup %3083 }
 0x8d6   : > { %v1657_v17 = vsel %vm1629_vm2, %v3084_v16, 0.0 }
 0x8d7   : > { %1658 = vadd.xlane.f32.xlu1 %v1657_v17 }
 0x8dc   : > { %v1641_v18 = vpop.xlane.xlu2 %1640 }
 0x8dd   : > { %v1645_v19 = vsub.f32 %v1625_v5, %v1641_v18  ;;  %v1718_v20 = vpop.permute.xlu0 %1717 }
 0x8de   : > { %1730 = vmatpush.bf16.msra.mxu3 %v1718_v20 }
 0x8df   : > { %v1652_v21 = vmul.f32 1.442695, %v1645_v19 }
 0x8e1   : > { %3085 = vpow2.f32 %v1652_v21 }
 0x8e4   : > { %v1638_v22 = vpop.xlane.xlu2 %1637 }
 0x8e5   : > { %v1644_v23 = vsub.f32 %v1602_v3, %v1638_v22  ;;  %v1737_v24 = vpop.permute.xlu0 %1736 }
 0x8e6   : > { %1749 = vmatpush.bf16.msrb.mxu0 %v1737_v24  ;;  %v2894_v24 = vld [vmem:[#allocation16 + $0x74] sm:$0xf0] }
 0x8e7   : > { %v3086_v25 = vpop.eup %3085  ;;  %v1650_v26 = vmul.f32 1.442695, %v1644_v23  ;;  %v2740_v23 = vld [vmem:[#allocation16 + $0x70] sm:$0xf] }
 0x8e8   : > { %v1663_v27 = vsel %vm1629_vm2, %v3086_v25, 0.0 }
 0x8e9   : > { %3087 = vpow2.f32 %v1650_v26  ;;  %1664 = vadd.xlane.f32.xlu2 %v1663_v27  ;;  %v2741_v26 = vor.u32 %v2894_v24, %v2740_v23  ;;  %v2742_v27 = vld [vmem:[#allocation16 + $0x78] sm:$0xf0] }
 0x8ec   : > { %v1632_v28 = vpop.xlane.xlu2 %1631 }
 0x8ed   : > { %v1642_v29 = vsub.f32 %v1553_v10, %v1632_v28  ;;  %v2732_v28 = vld [vmem:[#allocation16 + $0x60] sm:$0xf] }
 0x8ef   : > { %v3088_v30 = vpop.eup %3087  ;;  %v1646_v31 = vmul.f32 1.442695, %v1642_v29  ;;  %v2892_v29 = vld [vmem:[#allocation16 + $0x64] sm:$0xf0] }
 0x8f0   : > { %v1660_v32 = vsel %vm1629_vm2, %v3088_v30, 0.0 }
 0x8f1   : > { %3089 = vpow2.f32 %v1646_v31  ;;  %1661 = vadd.xlane.f32.xlu2 %v1660_v32  ;;  %v2733_v31 = vor.u32 %v2892_v29, %v2732_v28  ;;  %v2907_v28 = vld [vmem:[#allocation18 + $0x60] sm:$0xff]  ;;  %v2898_v29 = vld [vmem:[#allocation18 + $0x18] sm:$0xff] }
 0x8f7   : > { %v3090_v33 = vpop.eup %3089 }
 0x8f8   : > { %v1654_v34 = vsel %vm1629_vm2, %v3090_v33, 0.0 }
 0x8f9   : > { %1655 = vadd.xlane.f32.xlu1 %v1654_v34  ;;  %v2890_v34 = vld [vmem:[#allocation16 + $0x54] sm:$0xf0] }
 0x909   : > { %1698 = vrot.lane.b32.xlu2 %v3863_v45, %s3497_s22 }
 0x94a   : > { %v1659_v35 = vpop.xlane.xlu1 %1658 }
 0x95c   : > { %v1665_v8 = vpop.xlane.xlu2 %1664 }
 0x95d   : > { %3091 = vrcp.f32 %v1665_v8  ;;  %v2889_v8 = vld [vmem:[#allocation16 + $0x54] sm:$0xf] }
 0x95e   : > { %3093 = vrcp.f32 %v1659_v35 }
 0x963   : > { %v3092_v36 = vpop.eup %3091 }
 0x964   : > { %v1673_v37 = vmul.f32 %v3092_v36, %v3086_v25  ;;  %v1662_v38 = vpop.xlane.xlu2 %1661  ;;  %v3094_v40 = vpop.eup %3093  ;;  %v2893_v25 = vld [vmem:[#allocation16 + $0x74] sm:$0xf]  ;;  %v2726_v36 = vld [vmem:[#allocation16 + $0x58] sm:$0xf0] }
 0x965   : > { %3095 = vrcp.f32 %v1662_v38  ;;  %v1671_v42 = vmul.f32 %v3094_v40, %v3084_v16  ;;  %v2888_v38 = vld [vmem:[#allocation16 + $0x44] sm:$0xf0]  ;;  %v2887_v40 = vld [vmem:[#allocation16 + $0x44] sm:$0xf] }
 0x966   : > { %v1677_v39 = vpack.c.bf16 %v1673_v37, %v1673_v37  ;;  %v2716_v37 = vld [vmem:[#allocation16 + $0x40] sm:$0xf] }
 0x967   : > { %v1675_v45 = vpack.c.bf16 %v1671_v42, %v1671_v42  ;;  %v2718_v42 = vld [vmem:[#allocation16 + $0x48] sm:$0xf0] }
 0x968   : > { %2647 = vmatmul.msk.bf16.vlgmr.msrb.gmra.mxu0 %vm1629_vm2, %v1677_v39  ;;  %v2729_v39 = vor.u32 %v2889_v8, %v2726_v36 }
 0x96b   : > { %v3096_v43 = vpop.eup %3095 }
 0x96c   : > { %v1672_v44 = vmul.f32 %v3096_v43, %v3088_v30  ;;  %v1656_v46 = vpop.xlane.xlu1 %1655  ;;  %v1699_v47 = vpop.permute.xlu2 %1698  ;;  %v2891_v30 = vld [vmem:[#allocation16 + $0x64] sm:$0xf]  ;;  %v2717_v43 = vor.u32 %v2888_v38, %v2716_v37  ;;  %v1892_v37 = vstv %s2680_s17 }
 0x96d   : > { %3097 = vrcp.f32 %v1656_v46  ;;  %1711 = vmatpush.bf16.msrb.mxu2 %v1699_v47  ;;  %v2708_v46 = vld [vmem:[#allocation16 + $0x30] sm:$0xf]  ;;  %v2886_v47 = vld [vmem:[#allocation16 + $0x34] sm:$0xf0] }
 0x96e   : > { %v1676_v48 = vpack.c.bf16 %v1672_v44, %v1672_v44  ;;  %v2721_v44 = vor.u32 %v2887_v40, %v2718_v42 }
 0x970   : > { %2645 = vmatmul.msk.bf16.vlgmr.msrb.gmra.mxu2 %vm1629_vm2, %v1675_v45  ;;  %2646 = vmatmul.msk.bf16.vlgmr.msra.gmra.mxu3 %vm1629_vm2, %v1676_v48  ;;  %v2885_v45 = vld [vmem:[#allocation16 + $0x34] sm:$0xf]  ;;  %v2710_v48 = vld [vmem:[#allocation16 + $0x38] sm:$0xf0] }
 0x971   : > { %2000 = vmatpush.bf16.msra.mxu2 %v2741_v26  ;;  %v2908_v26 = vld [vmem:[#allocation18 + $0x68] sm:$0xff] }
 0x973   : > { %v3098_v49 = vpop.eup %3097 }
 0x974   : > { %v1670_v50 = vmul.f32 %v3098_v49, %v3090_v33  ;;  %v2724_v33 = vld [vmem:[#allocation16 + $0x50] sm:$0xf]  ;;  %v2709_v49 = vor.u32 %v2886_v47, %v2708_v46 }
 0x975   : > { %2001 = vmatpush.bf16.msra.mxu2 %v2733_v31  ;;  %v2725_v35 = vor.u32 %v2890_v34, %v2724_v33  ;;  %v2897_v33 = vld [vmem:[#allocation18 + $0x10] sm:$0xff] }
 0x976   : > { %v1674_v51 = vpack.c.bf16 %v1670_v50, %v1670_v50  ;;  %v2713_v50 = vor.u32 %v2885_v45, %v2710_v48  ;;  %v2905_v34 = vld [vmem:[#allocation18 + $0x50] sm:$0xff]  ;;  %v2896_v48 = vld [vmem:[#allocation18 + $0x8] sm:$0xff] }
 0x978   : > { %2644 = vmatmul.msk.bf16.vlgmr.msrb.gmra.mxu1 %vm1629_vm2, %v1674_v51  ;;  %v2700_v51 = vld [vmem:[#allocation16 + $0x20] sm:$0xf] }
 0x979   : > { %2002 = vmatpush.bf16.msra.mxu2 %v2725_v35 }
 0x97d   : > { %2003 = vmatpush.bf16.msra.mxu2 %v2717_v43 }
 0x981   : > { %2004 = vmatpush.bf16.msra.mxu2 %v2709_v49  ;;  %v2904_v49 = vld [vmem:[#allocation18 + $0x48] sm:$0xff] }
 0x9e5   : > { %v1751_v52 = vpop.f32.mrf.mxu0 }
 0x9e6   : > { %1764 = vrot.lane.b32.xlu1 %v1751_v52, %s3497_s22  ;;  %v2884_v52 = vld [vmem:[#allocation16 + $0x24] sm:$0xf0] }
 0x9ed   : > { %v1753_v53 = vpop.f32.mrf.mxu0 }
 0x9f3   : > { %v1713_v54 = vpop.f32.mrf.mxu2  ;;  %v1732_v55 = vpop.f32.mrf.mxu3 }
 0x9f4   : > { %1760 = vrot.lane.b32.xlu0 %v1732_v55, %s3496_s23  ;;  %1756 = vrot.lane.b32.xlu2 %v1713_v54, %s3495_s6  ;;  %v2883_v54 = vld [vmem:[#allocation16 + $0x24] sm:$0xf]  ;;  %v2702_v55 = vld [vmem:[#allocation16 + $0x28] sm:$0xf0]  ;;  %s2811_s6 = sshll.u32 %s3602_s25, 3  ;;  %s2191_s25 = scalar_lea.sflag [#allocation5], %s3755_s2 }
 0x9f5   : > { %v1694_v0 = vpop.f32.mrf.mxu1  ;;  %s2201_s15 = scalar_lea.hbm %s4019_s12, %s2811_s6 }
 0x9f6   : > { %s2205_s16 = sshll.u32 %s2201_s15, 4  ;;  %s2206_s16 = int_to_ptr.hbm [resolvable:$true] %s2205_s16 }
 0x9f7   : > { %s3402_s13 = sshra.s32 %s2206_s16, 4  ;;  %s3403_s13 = int_to_ptr.hbm [resolvable:$true] %s3402_s13 }
 0x9f8   : > { %s3404_s17 = scalar_lea.hbm %s3403_s13, 8  ;;  %p3409_p7 = scmp.lt.s32.totalorder %s3403_s13, %s4019_s12 }
 0x9f9   : > { %p3405_p1 = scmp.ne.s32.totalorder %s3403_s13, %s3404_s17  ;;  %p3410_p9 = scmp.lt.s32.totalorder %s3408_s8, %s3404_s17 }
 0x9fb   : > { %v1715_v56 = vpop.f32.mrf.mxu2  ;;  %v1734_v57 = vpop.f32.mrf.mxu3  ;;  %p3406_p3 = pnand %p3405_p1, %p3699_p4  ;;  %p3411_p5 = por %p3410_p9, %p3409_p7 }
 0x9fc   : > { %v2701_v56 = vor.u32 %v2884_v52, %v2700_v51  ;;  %v2705_v57 = vor.u32 %v2883_v54, %v2702_v55  ;;  %v2903_v51 = vld [vmem:[#allocation18 + $0x40] sm:$0xff] }
 0x9fd   : > { %v1696_v10 = vpop.f32.mrf.mxu1  ;;  %p3407_p12 = pneg %p3406_p3 }
 0x9fe   : > { %v2692_v10 = vld [vmem:[#allocation16 + $0x10] sm:$0xf]  ;;  %2005 = vmatpush.bf16.msra.mxu2 %v2701_v56 }
 0x9ff   : > { %v2693_v61 = vor.u32 %v2882_v58, %v2692_v10  ;;  %p3412_p8 = pnand %p3411_p5, %p3407_p12 }
 0xa02   : > { %2006 = vmatpush.bf16.msra.mxu2 %v2693_v61 }
 0xa4e   : > { %v1757_v3 = vpop.permute.xlu2 %1756 }
 0xa4f   : > { %v1767_v4 = vsel %vm948_vm7, %v1694_v0, %v1757_v3  ;;  %v2686_v3 = vld [vmem:[#allocation16 + $0x8] sm:$0xf0] }
 0xa58   : > { %v1765_v6 = vpop.permute.xlu1 %1764 }
 0xa66   : > { %v1761_v5 = vpop.permute.xlu0 %1760 }
 0xa67   : > { %v1768_v9 = vsel %vm1187_vm10, %v1767_v4, %v1761_v5 }
 0xa68   : > { %v1769_v11 = vsel %vm1189_vm11, %v1768_v9, %v1765_v6  ;;  %v2685_v6 = vor.u32 %v2880_v1, %v2684_v63  ;;  %v2689_v9 = vor.u32 %v2879_v2, %v2686_v3 }
 0xa69   : > { %v1770_v12 = vpack.c.bf16 %v1769_v11, %v1769_v11 }
 0xa6a   : > { %2007 = vmatpush.bf16.msra.mxu2 %v2685_v6 }
 0xa6b   : > { %1771 = vst [vmem:[#allocation2] sm:$0xf] %v1770_v12 }
 0xa72   : > { %v1772_v13 = vld [vmem:[#allocation2] sm:$0xf] }
 0xa73   : > { %1849 = vmatmul.bf16.vlgmr.msra.gmra.mxu1 %v1772_v13 }
 0xaf0   : > { %v1850_v15 = vpop.f32.mrf.mxu1 }
 0xaf1   : > { %v1851_v16 = vadd.f32 %v3055_v14, %v1850_v15  ;;  %v2902_v14 = vld [vmem:[#allocation18 + $0x38] sm:$0xff] }
 0xaf2   : > { %v2910_v15 = vld [vmem:[#allocation18 + $0x78] sm:$0xff]  ;;  %2162 = vmatpush.bf16.msra.mxu0 %v2902_v14 }
 0xaf3   : > { %v3911_v17 = vadd.f32 %v1851_v16, %v3848_v41  ;;  %v2745_v41 = vor.u32 %v2893_v25, %v2742_v27  ;;  %2175 = vmatpush.bf16.msrb.mxu1 %v2910_v15  ;;  %v2900_v25 = vld [vmem:[#allocation18 + $0x28] sm:$0xff] }
 0xaf5   : > { %1857 = vadd.xlane.f32.xlu2 %v3911_v17  ;;  %2013 = vmatpush.bf16.msrb.mxu3 %v2745_v41  ;;  %v2899_v41 = vld [vmem:[#allocation18 + $0x20] sm:$0xff] }
 0xaf8   : > { %v1852_v18 = vpop.f32.mrf.mxu1 }
 0xaf9   : > { %v2901_v18 = vld [vmem:[#allocation18 + $0x30] sm:$0xff] }
 0xafa   : > { %2163 = vmatpush.bf16.msra.mxu0 %v2901_v18 }
 0xafe   : > { %2164 = vmatpush.bf16.msra.mxu0 %v2900_v25 }
 0xb02   : > { %2165 = vmatpush.bf16.msra.mxu0 %v2899_v41 }
 0xb06   : > { %2166 = vmatpush.bf16.msra.mxu0 %v2898_v29 }
 0xb0a   : > { %2167 = vmatpush.bf16.msra.mxu0 %v2897_v33 }
 0xb0e   : > { %2168 = vmatpush.bf16.msra.mxu0 %v2896_v48 }
 0xb68   : > { %v1858_v19 = vpop.xlane.xlu2 %1857 }
 0xb69   : > { %v1859_v20 = vmul.f32 %v1858_v19, %v3796_v7  ;;  %v2734_v7 = vld [vmem:[#allocation16 + $0x68] sm:$0xf0]  ;;  %v2909_v19 = vld [vmem:[#allocation18 + $0x70] sm:$0xff] }
 0xb6a   : > { %v2737_v32 = vor.u32 %v2891_v30, %v2734_v7  ;;  %2176 = vmatpush.bf16.msrb.mxu1 %v2909_v19  ;;  %v2906_v30 = vld [vmem:[#allocation18 + $0x58] sm:$0xff] }
 0xb6b   : > { %v3916_v21 = vsub.f32 %v3911_v17, %v1859_v20 }
 0xb6c   : > { %2014 = vmatpush.bf16.msrb.mxu3 %v2737_v32 }
 0xb6d   : > { %v1861_v22 = vmul.f32 %v3916_v21, %v3916_v21  ;;  %v1893_v40 = vmul.f32 %v1892_v37, %v3916_v21  ;;  %v1914_v21 = vld [vmem:[%s4017_s9] sm:$0x3] }
 0xb6e   : > { %2177 = vmatpush.bf16.msrb.mxu1 %v2908_v26  ;;  %v1916_v52 = vperm.slane %v1914_v21, 0 }
 0xb6f   : > { %1862 = vadd.xlane.f32.xlu0 %v1861_v22 }
 0xb70   : > { %2015 = vmatpush.bf16.msrb.mxu3 %v2729_v39 }
 0xb72   : > { %2178 = vmatpush.bf16.msrb.mxu1 %v2907_v28 }
 0xb74   : > { %2016 = vmatpush.bf16.msrb.mxu3 %v2721_v44  ;;  %v1895_v44 = vstv %s2681_s7 }
 0xb76   : > { %2179 = vmatpush.bf16.msrb.mxu1 %v2906_v30 }
 0xb78   : > { %2017 = vmatpush.bf16.msrb.mxu3 %v2713_v50  ;;  %v2895_v50 = vld [vmem:[#allocation18] sm:$0xff] }
 0xb79   : > { %2169 = vmatpush.bf16.msra.mxu0 %v2895_v50 }
 0xb7a   : > { %2180 = vmatpush.bf16.msrb.mxu1 %v2905_v34 }
 0xb7c   : > { %2018 = vmatpush.bf16.msrb.mxu3 %v2705_v57 }
 0xb7e   : > { %2181 = vmatpush.bf16.msrb.mxu1 %v2904_v49 }
 0xb80   : > { %2019 = vmatpush.bf16.msrb.mxu3 %v2697_v62  ;;  %v3056_v62 = vld [vmem:[%s4018_s24] ss:$0 sm:$0xff] }
 0xb82   : > { %2182 = vmatpush.bf16.msrb.mxu1 %v2903_v51 }
 0xb84   : > { %2020 = vmatpush.bf16.msrb.mxu3 %v2689_v9 }
 0xbe2   : > { %v1863_v53 = vpop.xlane.xlu0 %1862 }
 0xbe3   : > { %v1864_v0 = vmul.f32 0.007874016, %v1863_v53  ;;  %v1917_v53 = vperm.slane %v1914_v21, 1 }
 0xbe5   : > { %3099 = vrsqrt.f32 %v1864_v0  ;;  %vm1872_vm3 = vcmp.eq.f32.partialorder %v1864_v0, inf  ;;  %v1875_v22 = vand.u32 2147483648, %v1864_v0  ;;  %vm1874_vm4 = vcmp.eq.f32.partialorder %v1864_v0, 0.0 }
 0xbeb   : > { %v3100_v4 = vpop.eup %3099 }
 0xbec   : > { %v1866_v5 = vmul.f32 %v3100_v4, %v1864_v0 }
 0xbee   : > { %v1867_v11 = vmul.f32 %v3100_v4, %v1866_v5 }
 0xbf0   : > { %v1868_v12 = vmul.f32 0.5, %v1867_v11 }
 0xbf2   : > { %v1869_v13 = vsub.f32 1.5, %v1868_v12 }
 0xbf4   : > { %v1870_v16 = vmul.f32 %v3100_v4, %v1869_v13 }
 0xbf6   : > { %v1871_v20 = vmul.f32 %v1870_v16, %v1864_v0 }
 0xbf8   : > { %v1873_v23 = vsel %vm1872_vm3, %v1864_v0, %v1871_v20 }
 0xbf9   : > { %v1876_v24 = vsel %vm1874_vm4, %v1875_v22, %v1873_v23 }
 0xbfa   : > { %v1877_v27 = vadd.f32 1e-06, %v1876_v24 }
 0xbfc   : > { %3101 = vrcp.f32 %v1877_v27  ;;  %v1889_v8 = vand.u32 2147483648, %v1877_v27  ;;  %v1887_v36 = vand.u32 2147483647, %v1877_v27  ;;  %vm1883_vm6 = vweird.f32 %v1877_v27 }
 0xbfe   : > { %v1890_v39 = vor.u32 1.1754944e-38, %v1889_v8  ;;  %vm1888_vm8 = vcmp.eq.f32.partialorder %v1887_v36, 8.507059e+37 }
 0xc02   : > { %v3102_v31 = vpop.eup %3101 }
 0xc03   : > { %v1879_v7 = vmul.f32 %v3102_v31, %v1877_v27  ;;  %vm1884_vm5 = vweird.f32 %v3102_v31 }
 0xc04   : > { %vm1885_vm7 = vmor %vm1883_vm6, %vm1884_vm5 }
 0xc05   : > { %v1880_v32 = vsub.f32 1.0, %v1879_v7 }
 0xc07   : > { %v1881_v35 = vmul.f32 %v3102_v31, %v1880_v32 }
 0xc09   : > { %v1882_v38 = vadd.f32 %v3102_v31, %v1881_v35 }
 0xc0b   : > { %v1886_v42 = vsel %vm1885_vm7, %v3102_v31, %v1882_v38 }
 0xc0c   : > { %v1891_v43 = vsel %vm1888_vm8, %v1890_v39, %v1886_v42 }
 0xc0d   : > { %v1894_v46 = vmul.f32 %v1893_v40, %v1891_v43 }
 0xc0f   : > { %v1896_v47 = vadd.f32 %v1895_v44, %v1894_v46 }
 0xc11   : > { %v1897_v45 = vpack.c.bf16 %v1896_v47, %v1896_v47 }
 0xc13   : > { %2008 = vmatmul.bf16.vlgmr.msra.gmra.mxu2 %v1897_v45  ;;  %2021 = vmatmul.bf16.vlgmr.msrb.gmra.mxu3 %v1897_v45 }
 0xc96   : > { %v2009_v54 = vpop.f32.mrf.mxu2  ;;  %v2022_v55 = vpop.f32.mrf.mxu3 }
 0xc97   : > { %v2010_v0 = vadd.f32 %v2009_v54, %v1916_v52  ;;  %v2023_v56 = vadd.f32 %v2022_v55, %v1917_v53 }
 0xc99   : > { %v2026_v57 = vmax.f32 %v2010_v0, 0.0  ;;  %v2027_v10 = vmax.f32 %v2023_v56, 0.0 }
 0xc9b   : > { %v2028_v58 = vpack.c.bf16 %v2026_v57, %v2026_v57  ;;  %v2029_v59 = vpack.c.bf16 %v2027_v10, %v2027_v10 }
 0xc9d   : > { %2170 = vmatmul.bf16.vlgmr.msra.gmra.mxu0 %v2028_v58  ;;  %2183 = vmatmul.bf16.vlgmr.msrb.gmra.mxu1 %v2029_v59 }
 0xc9e   : > { %v2011_v60 = vpop.f32.mrf.mxu2  ;;  %v2024_v61 = vpop.f32.mrf.mxu3 }
 0xd1a   : > { %v2171_v63 = vpop.f32.mrf.mxu0  ;;  %v2184_v1 = vpop.f32.mrf.mxu1 }
 0xd1b   : > { %v2172_v2 = vadd.f32 %v3056_v62, %v2171_v63 }
 0xd1d   : > { %v2185_v3 = vadd.f32 %v2184_v1, %v2172_v2 }
 0xd1f   : > { %v2188_v4 = vadd.f32 %v2185_v3, %v3911_v17 }
 0xd21   : > { %2189 = vst [vmem:[%s680_s14] sm:$0xff] %v2188_v4 }
 0xd22   : > { %v2173_v5 = vpop.f32.mrf.mxu0  ;;  %v2186_v6 = vpop.f32.mrf.mxu1 }
 0xd23   : > { %3415 = shalt.err (!%p3412_p8)
}
 0xd24   : > { %2947 = dma.vmem_to_hbm [thread:$0]  (%p3699_p4), %s2204_s26, 128, %s2206_s16, %s2191_s25  }
 0xd25 PF: > { %s2217_s2 = sand.u32 1, %s3466_s18   ;;  %p4020_p10 = scmp.ge.s32.totalorder %s3478_s21, 2 }
 0xd26   : > { %s2218_s6 = scalar_lea.sflag [#allocation5], %s2217_s2 }
 0xd27   : > { %p2982_p13 = pnand %p4020_p10, %p3703_p6 }
 0xd29   : > { %p2983_p11 = pneg %p2982_p13 }
 0xd2b   : > { %3461 = dma.done.wait (%p2983_p11), %s2218_s6, 128  }
 0xd2c   : > { %3463 = vsyncadd (%p2983_p11), %s2218_s6, 4294967168  ;;  %p35_p0 = scmp.ge.s32.totalorder %s3671_s3, 4   ;;  %s4021_s18 = smov %s3470_s19 }
 0xd2d   : > { %s4022_s19 = smov %s3474_s20  ;;  %s4023_s20 = smov %s3682_s28 }
 0xd2e   : > { %s4024_s21 = smov %s3671_s3  ;;  %37 = sbr.rel (!%p35_p0) target bundleno = 26 (0x1a), region = 171 }
 0xd33   :  { %2224 = vsyncpa [#allocation4], 1 }
 0xd34   :  { %2226 = vsyncpa [#allocation4 + $0x1], 1 }
 0xd35   :  { %2227 = vsyncpa [#allocation8], 1 }
 0xd36   :  { %2229 = vsyncpa [#allocation8 + $0x1], 1 }
 0xd37   :  { %2230 = vsyncpa [#allocation11], 1 }
 0xd38   :  { %2231 = vsyncpa [#allocation14], 1 }
 0xd39   :  { %2232 = vsyncpa [#allocation17], 1 }
 0xd3a   :  { %2233 = vsyncpa [#allocation5], 1 }
 0xd3b   :  { %2235 = vsyncpa [#allocation5 + $0x1], 1 }
 0xd3c   :  { %2236 = vsyncpa [#allocation6], 1 }
 0xd3d   :  { %2238 = vsyncpa [#allocation6 + $0x1], 1 }

</bundles_post_ra>
